<compile_context>
chip_gen: v7x
topology: tpu7x:2x2x1
jax: 0.10.0
libtpu: 0.0.40
codegen_flags: <defaults>
</compile_context>

<pallas_src>
import functools

import jax
import jax.numpy as jnp
from jax.experimental import pallas as pl
from jax.experimental.pallas import tpu as pltpu


# ----------------------------------------------------------------------------
# Pallas kernels
# ----------------------------------------------------------------------------
def _accumulate_phase(x_ref, w_ref, acc_ref, *, ww, r_out):
    """acc += sum_{a,b in {0,1}} x[a*ww + b : a*ww + b + r_out, :] @ w[a*2 + b]."""
    part = None
    for a in range(2):
        for b in range(2):
            off = a * ww + b                              # static Python int
            lhs = x_ref[off:off + r_out, :]               # (r_out, Cin) bf16
            d = jnp.dot(lhs, w_ref[a * 2 + b],
                        preferred_element_type=jnp.float32)
            part = d if part is None else part + d
    acc_ref[...] += part


def _conv_s2_kernel(x_ref, w_ref, b_ref, o_ref, acc_ref, *, ww, r_out, slope):
    """One 4x4 / stride-2 / pad-1 conv layer + bias + LeakyReLU.

    Grid axis 0 iterates over the 4 input phases (reduction)."""
    s = pl.program_id(0)

    @pl.when(s == 0)
    def _init():
        acc_ref[...] = jnp.zeros_like(acc_ref)

    _accumulate_phase(x_ref, w_ref, acc_ref, ww=ww, r_out=r_out)

    @pl.when(s == pl.num_programs(0) - 1)
    def _finalize():
        y = acc_ref[...] + b_ref[...]                     # f32 (r_out, Cout)
        y = jnp.where(y >= 0.0, y, slope * y)             # LeakyReLU(0.2)
        o_ref[...] = y.astype(o_ref.dtype)


def _conv3_conv4_kernel(x_ref, w_ref, b_ref, w4_ref, sel_ref, b4_ref,
                        o_ref, acc_ref, *, ww, r_out, slope):
    """conv3 (stride-2 + LeakyReLU) with the conv4 head fused as an epilogue.

    w4_ref holds the conv4 weights laid out per accumulator row (zero on the
    invalid slab rows); sel_ref is the per-image row selector."""
    s = pl.program_id(0)

    @pl.when(s == 0)
    def _init():
        acc_ref[...] = jnp.zeros_like(acc_ref)

    _accumulate_phase(x_ref, w_ref, acc_ref, ww=ww, r_out=r_out)

    @pl.when(s == pl.num_programs(0) - 1)
    def _finalize():
        y = acc_ref[...] + b_ref[...]                     # conv3 pre-activation
        y = jnp.where(y >= 0.0, y, slope * y)             # LeakyReLU(0.2)
        t = y * w4_ref[...]                               # (r_out, C3) f32
        per_img = jnp.dot(sel_ref[...], t,                # (N, C3)
                          preferred_element_type=jnp.float32)
        o_ref[...] = jnp.sum(per_img, axis=1, keepdims=True) + b4_ref[...]


# ----------------------------------------------------------------------------
# pallas_call wrappers
# ----------------------------------------------------------------------------
def _conv_s2_call(xph, wp, bias, *, ww, r_out, cout, slope):
    n_phase, r_full, cin = xph.shape
    kernel = functools.partial(_conv_s2_kernel, ww=ww, r_out=r_out, slope=slope)
    return pl.pallas_call(
        kernel,
        out_shape=jax.ShapeDtypeStruct((r_out, cout), jnp.bfloat16),
        grid_spec=pltpu.PrefetchScalarGridSpec(
            num_scalar_prefetch=0,
            grid=(n_phase,),
            in_specs=[
                pl.BlockSpec((None, r_full, cin), lambda s: (s, 0, 0)),
                pl.BlockSpec((None, 4, cin, cout), lambda s: (s, 0, 0, 0)),
                pl.BlockSpec((1, cout), lambda s: (0, 0)),
            ],
            out_specs=pl.BlockSpec((r_out, cout), lambda s: (0, 0)),
            scratch_shapes=[pltpu.VMEM((r_out, cout), jnp.float32)],
        ),
        compiler_params=pltpu.CompilerParams(
            dimension_semantics=("arbitrary",)),
    )(xph, wp, bias)


def _conv3_conv4_call(xph, wp, b3, w4rep, sel, b4, *, ww, r_out, slope):
    n_phase, r_full, cin = xph.shape
    c3 = wp.shape[-1]
    n = sel.shape[0]
    kernel = functools.partial(_conv3_conv4_kernel,
                               ww=ww, r_out=r_out, slope=slope)
    return pl.pallas_call(
        kernel,
        out_shape=jax.ShapeDtypeStruct((n, 1), jnp.float32),
        grid_spec=pltpu.PrefetchScalarGridSpec(
            num_scalar_prefetch=0,
            grid=(n_phase,),
            in_specs=[
                pl.BlockSpec((None, r_full, cin), lambda s: (s, 0, 0)),
                pl.BlockSpec((None, 4, cin, c3), lambda s: (s, 0, 0, 0)),
                pl.BlockSpec((1, c3), lambda s: (0, 0)),
                pl.BlockSpec((r_out, c3), lambda s: (0, 0)),
                pl.BlockSpec((n, r_out), lambda s: (0, 0)),
                pl.BlockSpec((1, 1), lambda s: (0, 0)),
            ],
            out_specs=pl.BlockSpec((n, 1), lambda s: (0, 0)),
            scratch_shapes=[pltpu.VMEM((r_out, c3), jnp.float32)],
        ),
        compiler_params=pltpu.CompilerParams(
            dimension_semantics=("arbitrary",)),
    )(xph, wp, b3, w4rep, sel, b4)


# ----------------------------------------------------------------------------
# Plain-JAX glue (cheap, no im2col amplification)
# ----------------------------------------------------------------------------
def _phase_split(x_nhwc):
    """NHWC activation -> (4, N*HH*WW, C) bf16 phase-split zero-padded slabs.

    slab[p*2+q, n*HH*WW + u*WW + v, c] == pad(x)[n, 2u+p, 2v+q, c]."""
    n, h, w, c = x_nhwc.shape
    assert h % 2 == 0 and w % 2 == 0
    p = jnp.pad(x_nhwc, ((0, 0), (1, 1), (1, 1), (0, 0)))
    hh, ww = (h + 2) // 2, (w + 2) // 2
    p = p.reshape(n, hh, 2, ww, 2, c)
    p = jnp.transpose(p, (2, 4, 0, 1, 3, 5))              # (p, q, n, u, v, c)
    p = p.reshape(4, n * hh * ww, c).astype(jnp.bfloat16)
    return p, (n, hh, ww)


def _prep_weights(w_oihw):
    """(Cout, Cin, 4, 4) -> (4 phases, 4 shifts, Cin, Cout) bf16.

    Entry [p*2+q, a*2+b] is the (Cin, Cout) matrix for kernel tap
    (i, j) = (p + 2a, q + 2b)."""
    cout, cin, kh, kw = w_oihw.shape
    assert kh == 4 and kw == 4
    w = jnp.transpose(w_oihw, (2, 3, 1, 0))               # (i, j, Cin, Cout)
    w = w.reshape(2, 2, 2, 2, cin, cout)                  # (a, p, b, q, ., .)
    w = jnp.transpose(w, (1, 3, 0, 2, 4, 5))              # (p, q, a, b, ., .)
    return w.reshape(4, 4, cin, cout).astype(jnp.bfloat16)


def _conv_lrelu_s2(x_nhwc, w_oihw, bias, slope=0.2):
    """Conv2d(k=4, s=2, p=1) + LeakyReLU, NHWC -> NHWC (bf16 activations)."""
    xph, (n, hh, ww) = _phase_split(x_nhwc)
    r_full = n * hh * ww
    r_out = r_full - ww - 1
    cout = w_oihw.shape[0]
    wp = _prep_weights(w_oihw)
    y = _conv_s2_call(xph, wp, bias.reshape(1, cout).astype(jnp.float32),
                      ww=ww, r_out=r_out, cout=cout, slope=slope)
    ho, wo = hh - 1, ww - 1
    y = jnp.pad(y, ((0, r_full - r_out), (0, 0)))
    return y.reshape(n, hh, ww, cout)[:, :ho, :wo, :]


def _conv3_conv4(x_nhwc, w3, b3, w4, b4, slope=0.2):
    """Fused conv3(k4,s2,p1)+LeakyReLU and conv4(k4,s1,p0) -> (N,1,1,1)."""
    xph, (n, hh, ww) = _phase_split(x_nhwc)
    r_full = n * hh * ww
    r_out = r_full - ww - 1
    c3 = w3.shape[0]
    ho, wo = hh - 1, ww - 1
    assert ho == 4 and wo == 4, "conv4 expects a 4x4 spatial input"
    wp = _prep_weights(w3)
    # conv4 weights on the (hh, ww) slab grid, zero outside the valid 4x4
    # window, replicated over the batch: one (C3,) vector per accumulator row.
    w4_hwc = jnp.transpose(w4, (2, 3, 1, 0)).reshape(4, 4, c3).astype(jnp.float32)
    w4_slab = jnp.zeros((hh, ww, c3), jnp.float32).at[:4, :4, :].set(w4_hwc)
    w4rep = jnp.tile(w4_slab[None], (n, 1, 1, 1)).reshape(r_full, c3)[:r_out]
    # per-image row selector for the final reduction
    img = jnp.arange(r_out) // (hh * ww)
    sel = (img[None, :] == jnp.arange(n)[:, None]).astype(jnp.float32)
    out = _conv3_conv4_call(
        xph, wp, b3.reshape(1, c3).astype(jnp.float32), w4rep, sel,
        b4.reshape(1, 1).astype(jnp.float32), ww=ww, r_out=r_out, slope=slope)
    return out.reshape(n, 1, 1, 1)


# ----------------------------------------------------------------------------
# Discriminator forward
# ----------------------------------------------------------------------------
def init_params(key):
    """Deterministic synthetic parameters (shapes match nn.Conv2d in __init__)."""
    shapes = [
        (64, 3, 4, 4),     # conv1
        (128, 64, 4, 4),   # conv2
        (256, 128, 4, 4),  # conv3
        (1, 256, 4, 4),    # conv4
    ]
    params = []
    for s in shapes:
        key, kw_, kb_ = jax.random.split(key, 3)
        fan_in = s[1] * s[2] * s[3]
        w = jax.random.normal(kw_, s, jnp.float32) * (1.0 / jnp.sqrt(fan_in))
        b = jax.random.normal(kb_, (s[0],), jnp.float32) * 0.01
        params.append((w, b))
    return params


@jax.jit
def discriminator_forward(x_nchw, params):
    (w1, b1), (w2, b2), (w3, b3), (w4, b4) = params
    x = jnp.transpose(x_nchw, (0, 2, 3, 1)).astype(jnp.float32)   # NCHW -> NHWC
    x = _conv_lrelu_s2(x, w1, b1)            # (N,32,32,3)  -> (N,16,16,64)
    x = _conv_lrelu_s2(x, w2, b2)            # (N,16,16,64) -> (N,8,8,128)
    x = _conv3_conv4(x, w3, b3, w4, b4)      # conv3+LReLU+conv4 -> (N,1,1,1)
    return jnp.transpose(x, (0, 3, 1, 2))    # NHWC -> NCHW


if __name__ == "__main__":
    key = jax.random.PRNGKey(0)
    kx, kp = jax.random.split(key)
    # Small DCGAN-style input: 32x32 -> 16 -> 8 -> 4 -> 1
    x = jax.random.normal(kx, (2, 3, 32, 32), jnp.float32)
    params = init_params(kp)
    out = discriminator_forward(x, params)
    jax.block_until_ready(out)
    assert out.shape == (2, 1, 1, 1)
    print("KERNEL_OK")
</pallas_src>

<mosaic_0001>
module attributes {stable_mosaic.version = 11 : i64} {
  func.func @_conv_s2_kernel(%arg0: i32, %arg1: memref<1x578x3xbf16, #tpu.memory_space<vmem>>, %arg2: memref<1x4x3x64xbf16, #tpu.memory_space<vmem>>, %arg3: memref<1x64xf32, #tpu.memory_space<vmem>>, %arg4: memref<560x64xbf16, #tpu.memory_space<vmem>>, %arg5: memref<560x64xf32, #tpu.memory_space<vmem>>) attributes {dimension_semantics = [#tpu.dimension_semantics<arbitrary>], iteration_bounds = array<i64: 4>, scalar_prefetch = 0 : i64, scratch_operands = 1 : i64, tpu.core_type = #tpu.core_type<tc>, window_params = [{transform_indices = @transform_0, window_bounds = array<i64: 1, 578, 3>}, {transform_indices = @transform_1, window_bounds = array<i64: 1, 4, 3, 64>}, {pipeline_mode = #tpu.pipeline_mode<synchronous>, transform_indices = @transform_2, window_bounds = array<i64: 1, 64>}, {pipeline_mode = #tpu.pipeline_mode<synchronous>, transform_indices = @transform_3, window_bounds = array<i64: 560, 64>}]} {
    %c0_i32 = arith.constant 0 : i32
    %0 = arith.cmpi eq, %arg0, %c0_i32 : i32
    %1 = arith.extui %0 : i1 to i32
    %c0_i32_0 = arith.constant 0 : i32
    %2 = arith.cmpi ne, %1, %c0_i32_0 : i32
    scf.if %2 {
      %cst_31 = arith.constant 0.000000e+00 : f32
      %32 = vector.broadcast %cst_31 : f32 to vector<560x64xf32>
      %c0_32 = arith.constant 0 : index
      %c0_33 = arith.constant 0 : index
      %33 = vector.load %arg5[%c0_32, %c0_33] : memref<560x64xf32, #tpu.memory_space<vmem>>, vector<560x64xf32>
      tpu.vector_store %arg5[%c0_32, %c0_33], %32 {strides = array<i32>} : memref<560x64xf32, #tpu.memory_space<vmem>>, vector<560x64xf32>,
    } else {
    }
    %c0 = arith.constant 0 : index
    %c0_1 = arith.constant 0 : index
    %c0_2 = arith.constant 0 : index
    %3 = vector.load %arg1[%c0, %c0_1, %c0_2] : memref<1x578x3xbf16, #tpu.memory_space<vmem>>, vector<1x560x3xbf16>
    %4 = vector.shape_cast %3 : vector<1x560x3xbf16> to vector<560x3xbf16>
    %c0_3 = arith.constant 0 : index
    %c0_4 = arith.constant 0 : index
    %c0_5 = arith.constant 0 : index
    %c0_6 = arith.constant 0 : index
    %5 = vector.load %arg2[%c0_3, %c0_4, %c0_5, %c0_6] : memref<1x4x3x64xbf16, #tpu.memory_space<vmem>>, vector<1x1x3x64xbf16>
    %6 = vector.shape_cast %5 : vector<1x1x3x64xbf16> to vector<3x64xbf16>
    %cst = arith.constant dense<0.000000e+00> : vector<560x64xf32>
    %7 = tpu.matmul %4, %6, %cst {dimension_numbers = #tpu.dot_dimension_numbers<[1], [0], [0], [1], [0, 0, 1, 1], [], []>} : vector<560x3xbf16>, vector<3x64xbf16>, vector<560x64xf32> -> vector<560x64xf32>
    %c0_7 = arith.constant 0 : index
    %c1 = arith.constant 1 : index
    %c0_8 = arith.constant 0 : index
    %8 = vector.load %arg1[%c0_7, %c1, %c0_8] : memref<1x578x3xbf16, #tpu.memory_space<vmem>>, vector<1x560x3xbf16>
    %9 = vector.shape_cast %8 : vector<1x560x3xbf16> to vector<560x3xbf16>
    %c0_9 = arith.constant 0 : index
    %c1_10 = arith.constant 1 : index
    %c0_11 = arith.constant 0 : index
    %c0_12 = arith.constant 0 : index
    %10 = vector.load %arg2[%c0_9, %c1_10, %c0_11, %c0_12] : memref<1x4x3x64xbf16, #tpu.memory_space<vmem>>, vector<1x1x3x64xbf16>
    %11 = vector.shape_cast %10 : vector<1x1x3x64xbf16> to vector<3x64xbf16>
    %cst_13 = arith.constant dense<0.000000e+00> : vector<560x64xf32>
    %12 = tpu.matmul %9, %11, %cst_13 {dimension_numbers = #tpu.dot_dimension_numbers<[1], [0], [0], [1], [0, 0, 1, 1], [], []>} : vector<560x3xbf16>, vector<3x64xbf16>, vector<560x64xf32> -> vector<560x64xf32>
    %13 = arith.addf %7, %12 : vector<560x64xf32>
    %c0_14 = arith.constant 0 : index
    %c17 = arith.constant 17 : index
    %c0_15 = arith.constant 0 : index
    %14 = vector.load %arg1[%c0_14, %c17, %c0_15] : memref<1x578x3xbf16, #tpu.memory_space<vmem>>, vector<1x560x3xbf16>
    %15 = vector.shape_cast %14 : vector<1x560x3xbf16> to vector<560x3xbf16>
    %c0_16 = arith.constant 0 : index
    %c2 = arith.constant 2 : index
    %c0_17 = arith.constant 0 : index
    %c0_18 = arith.constant 0 : index
    %16 = vector.load %arg2[%c0_16, %c2, %c0_17, %c0_18] : memref<1x4x3x64xbf16, #tpu.memory_space<vmem>>, vector<1x1x3x64xbf16>
    %17 = vector.shape_cast %16 : vector<1x1x3x64xbf16> to vector<3x64xbf16>
    %cst_19 = arith.constant dense<0.000000e+00> : vector<560x64xf32>
    %18 = tpu.matmul %15, %17, %cst_19 {dimension_numbers = #tpu.dot_dimension_numbers<[1], [0], [0], [1], [0, 0, 1, 1], [], []>} : vector<560x3xbf16>, vector<3x64xbf16>, vector<560x64xf32> -> vector<560x64xf32>
    %19 = arith.addf %13, %18 : vector<560x64xf32>
    %c0_20 = arith.constant 0 : index
    %c18 = arith.constant 18 : index
    %c0_21 = arith.constant 0 : index
    %20 = vector.load %arg1[%c0_20, %c18, %c0_21] : memref<1x578x3xbf16, #tpu.memory_space<vmem>>, vector<1x560x3xbf16>
    %21 = vector.shape_cast %20 : vector<1x560x3xbf16> to vector<560x3xbf16>
    %c0_22 = arith.constant 0 : index
    %c3 = arith.constant 3 : index
    %c0_23 = arith.constant 0 : index
    %c0_24 = arith.constant 0 : index
    %22 = vector.load %arg2[%c0_22, %c3, %c0_23, %c0_24] : memref<1x4x3x64xbf16, #tpu.memory_space<vmem>>, vector<1x1x3x64xbf16>
    %23 = vector.shape_cast %22 : vector<1x1x3x64xbf16> to vector<3x64xbf16>
    %cst_25 = arith.constant dense<0.000000e+00> : vector<560x64xf32>
    %24 = tpu.matmul %21, %23, %cst_25 {dimension_numbers = #tpu.dot_dimension_numbers<[1], [0], [0], [1], [0, 0, 1, 1], [], []>} : vector<560x3xbf16>, vector<3x64xbf16>, vector<560x64xf32> -> vector<560x64xf32>
    %25 = arith.addf %19, %24 : vector<560x64xf32>
    %c0_26 = arith.constant 0 : index
    %c0_27 = arith.constant 0 : index
    %26 = vector.load %arg5[%c0_26, %c0_27] : memref<560x64xf32, #tpu.memory_space<vmem>>, vector<560x64xf32>
    %27 = arith.addf %26, %25 : vector<560x64xf32>
    %c0_28 = arith.constant 0 : index
    %c0_29 = arith.constant 0 : index
    %28 = vector.load %arg5[%c0_28, %c0_29] : memref<560x64xf32, #tpu.memory_space<vmem>>, vector<560x64xf32>
    tpu.vector_store %arg5[%c0_28, %c0_29], %27 {strides = array<i32>} : memref<560x64xf32, #tpu.memory_space<vmem>>, vector<560x64xf32>,
    %c3_i32 = arith.constant 3 : i32
    %29 = arith.cmpi eq, %arg0, %c3_i32 : i32
    %30 = arith.extui %29 : i1 to i32
    %c0_i32_30 = arith.constant 0 : i32
    %31 = arith.cmpi ne, %30, %c0_i32_30 : i32
    scf.if %31 {
      %c0_31 = arith.constant 0 : index
      %c0_32 = arith.constant 0 : index
      %32 = vector.load %arg5[%c0_31, %c0_32] : memref<560x64xf32, #tpu.memory_space<vmem>>, vector<560x64xf32>
      %c0_33 = arith.constant 0 : index
      %c0_34 = arith.constant 0 : index
      %33 = vector.load %arg3[%c0_33, %c0_34] : memref<1x64xf32, #tpu.memory_space<vmem>>, vector<1x64xf32>
      %34 = vector.broadcast %33 : vector<1x64xf32> to vector<560x64xf32>
      %35 = arith.addf %32, %34 : vector<560x64xf32>
      %cst_35 = arith.constant 0.000000e+00 : f32
      %36 = vector.broadcast %cst_35 : f32 to vector<560x64xf32>
      %37 = arith.cmpf oge, %35, %36 : vector<560x64xf32>
      %cst_36 = arith.constant 2.000000e-01 : f32
      %38 = vector.broadcast %cst_36 : f32 to vector<560x64xf32>
      %39 = arith.mulf %38, %35 : vector<560x64xf32>
      %40 = arith.select %37, %35, %39 : vector<560x64xi1>, vector<560x64xf32>
      %41 = arith.truncf %40 : vector<560x64xf32> to vector<560x64xbf16>
      %c0_37 = arith.constant 0 : index
      %c0_38 = arith.constant 0 : index
      %42 = vector.load %arg4[%c0_37, %c0_38] : memref<560x64xbf16, #tpu.memory_space<vmem>>, vector<560x64xbf16>
      tpu.vector_store %arg4[%c0_37, %c0_38], %41 {strides = array<i32>} : memref<560x64xbf16, #tpu.memory_space<vmem>>, vector<560x64xbf16>,
    } else {
    }
    return
  }
  func.func @transform_0(%arg0: i32) -> (i32, i32, i32) {
    %c0_i32 = arith.constant 0 : i32
    %c0_i32_0 = arith.constant 0 : i32
    %c0_i32_1 = arith.constant 0 : i32
    return %arg0, %c0_i32, %c0_i32_0 : i32, i32, i32
  }
  func.func @transform_1(%arg0: i32) -> (i32, i32, i32, i32) {
    %c0_i32 = arith.constant 0 : i32
    %c0_i32_0 = arith.constant 0 : i32
    %c0_i32_1 = arith.constant 0 : i32
    %c0_i32_2 = arith.constant 0 : i32
    return %arg0, %c0_i32, %c0_i32_0, %c0_i32_1 : i32, i32, i32, i32
  }
  func.func @transform_2(%arg0: i32) -> (i32, i32) {
    %c0_i32 = arith.constant 0 : i32
    %c0_i32_0 = arith.constant 0 : i32
    %c0_i32_1 = arith.constant 0 : i32
    return %c0_i32, %c0_i32_0 : i32, i32
  }
  func.func @transform_3(%arg0: i32) -> (i32, i32) {
    %c0_i32 = arith.constant 0 : i32
    %c0_i32_0 = arith.constant 0 : i32
    %c0_i32_1 = arith.constant 0 : i32
    return %c0_i32, %c0_i32_0 : i32, i32
  }
}

module attributes {stable_mosaic.version = 11 : i64} {
  func.func @_conv_s2_kernel(%arg0: i32, %arg1: memref<1x162x64xbf16, #tpu.memory_space<vmem>>, %arg2: memref<1x4x64x128xbf16, #tpu.memory_space<vmem>>, %arg3: memref<1x128xf32, #tpu.memory_space<vmem>>, %arg4: memref<152x128xbf16, #tpu.memory_space<vmem>>, %arg5: memref<152x128xf32, #tpu.memory_space<vmem>>) attributes {dimension_semantics = [#tpu.dimension_semantics<arbitrary>], iteration_bounds = array<i64: 4>, scalar_prefetch = 0 : i64, scratch_operands = 1 : i64, tpu.core_type = #tpu.core_type<tc>, window_params = [{transform_indices = @transform_0, window_bounds = array<i64: 1, 162, 64>}, {transform_indices = @transform_1, window_bounds = array<i64: 1, 4, 64, 128>}, {pipeline_mode = #tpu.pipeline_mode<synchronous>, transform_indices = @transform_2, window_bounds = array<i64: 1, 128>}, {pipeline_mode = #tpu.pipeline_mode<synchronous>, transform_indices = @transform_3, window_bounds = array<i64: 152, 128>}]} {
    %c0_i32 = arith.constant 0 : i32
    %0 = arith.cmpi eq, %arg0, %c0_i32 : i32
    %1 = arith.extui %0 : i1 to i32
    %c0_i32_0 = arith.constant 0 : i32
    %2 = arith.cmpi ne, %1, %c0_i32_0 : i32
    scf.if %2 {
      %cst_31 = arith.constant 0.000000e+00 : f32
      %32 = vector.broadcast %cst_31 : f32 to vector<152x128xf32>
      %c0_32 = arith.constant 0 : index
      %c0_33 = arith.constant 0 : index
      %33 = vector.load %arg5[%c0_32, %c0_33] : memref<152x128xf32, #tpu.memory_space<vmem>>, vector<152x128xf32>
      tpu.vector_store %arg5[%c0_32, %c0_33], %32 {strides = array<i32>} : memref<152x128xf32, #tpu.memory_space<vmem>>, vector<152x128xf32>,
    } else {
    }
    %c0 = arith.constant 0 : index
    %c0_1 = arith.constant 0 : index
    %c0_2 = arith.constant 0 : index
    %3 = vector.load %arg1[%c0, %c0_1, %c0_2] : memref<1x162x64xbf16, #tpu.memory_space<vmem>>, vector<1x152x64xbf16>
    %4 = vector.shape_cast %3 : vector<1x152x64xbf16> to vector<152x64xbf16>
    %c0_3 = arith.constant 0 : index
    %c0_4 = arith.constant 0 : index
    %c0_5 = arith.constant 0 : index
    %c0_6 = arith.constant 0 : index
    %5 = vector.load %arg2[%c0_3, %c0_4, %c0_5, %c0_6] : memref<1x4x64x128xbf16, #tpu.memory_space<vmem>>, vector<1x1x64x128xbf16>
    %6 = vector.shape_cast %5 : vector<1x1x64x128xbf16> to vector<64x128xbf16>
    %cst = arith.constant dense<0.000000e+00> : vector<152x128xf32>
    %7 = tpu.matmul %4, %6, %cst {dimension_numbers = #tpu.dot_dimension_numbers<[1], [0], [0], [1], [0, 0, 1, 1], [], []>} : vector<152x64xbf16>, vector<64x128xbf16>, vector<152x128xf32> -> vector<152x128xf32>
    %c0_7 = arith.constant 0 : index
    %c1 = arith.constant 1 : index
    %c0_8 = arith.constant 0 : index
    %8 = vector.load %arg1[%c0_7, %c1, %c0_8] : memref<1x162x64xbf16, #tpu.memory_space<vmem>>, vector<1x152x64xbf16>
    %9 = vector.shape_cast %8 : vector<1x152x64xbf16> to vector<152x64xbf16>
    %c0_9 = arith.constant 0 : index
    %c1_10 = arith.constant 1 : index
    %c0_11 = arith.constant 0 : index
    %c0_12 = arith.constant 0 : index
    %10 = vector.load %arg2[%c0_9, %c1_10, %c0_11, %c0_12] : memref<1x4x64x128xbf16, #tpu.memory_space<vmem>>, vector<1x1x64x128xbf16>
    %11 = vector.shape_cast %10 : vector<1x1x64x128xbf16> to vector<64x128xbf16>
    %cst_13 = arith.constant dense<0.000000e+00> : vector<152x128xf32>
    %12 = tpu.matmul %9, %11, %cst_13 {dimension_numbers = #tpu.dot_dimension_numbers<[1], [0], [0], [1], [0, 0, 1, 1], [], []>} : vector<152x64xbf16>, vector<64x128xbf16>, vector<152x128xf32> -> vector<152x128xf32>
    %13 = arith.addf %7, %12 : vector<152x128xf32>
    %c0_14 = arith.constant 0 : index
    %c9 = arith.constant 9 : index
    %c0_15 = arith.constant 0 : index
    %14 = vector.load %arg1[%c0_14, %c9, %c0_15] : memref<1x162x64xbf16, #tpu.memory_space<vmem>>, vector<1x152x64xbf16>
    %15 = vector.shape_cast %14 : vector<1x152x64xbf16> to vector<152x64xbf16>
    %c0_16 = arith.constant 0 : index
    %c2 = arith.constant 2 : index
    %c0_17 = arith.constant 0 : index
    %c0_18 = arith.constant 0 : index
    %16 = vector.load %arg2[%c0_16, %c2, %c0_17, %c0_18] : memref<1x4x64x128xbf16, #tpu.memory_space<vmem>>, vector<1x1x64x128xbf16>
    %17 = vector.shape_cast %16 : vector<1x1x64x128xbf16> to vector<64x128xbf16>
    %cst_19 = arith.constant dense<0.000000e+00> : vector<152x128xf32>
    %18 = tpu.matmul %15, %17, %cst_19 {dimension_numbers = #tpu.dot_dimension_numbers<[1], [0], [0], [1], [0, 0, 1, 1], [], []>} : vector<152x64xbf16>, vector<64x128xbf16>, vector<152x128xf32> -> vector<152x128xf32>
    %19 = arith.addf %13, %18 : vector<152x128xf32>
    %c0_20 = arith.constant 0 : index
    %c10 = arith.constant 10 : index
    %c0_21 = arith.constant 0 : index
    %20 = vector.load %arg1[%c0_20, %c10, %c0_21] : memref<1x162x64xbf16, #tpu.memory_space<vmem>>, vector<1x152x64xbf16>
    %21 = vector.shape_cast %20 : vector<1x152x64xbf16> to vector<152x64xbf16>
    %c0_22 = arith.constant 0 : index
    %c3 = arith.constant 3 : index
    %c0_23 = arith.constant 0 : index
    %c0_24 = arith.constant 0 : index
    %22 = vector.load %arg2[%c0_22, %c3, %c0_23, %c0_24] : memref<1x4x64x128xbf16, #tpu.memory_space<vmem>>, vector<1x1x64x128xbf16>
    %23 = vector.shape_cast %22 : vector<1x1x64x128xbf16> to vector<64x128xbf16>
    %cst_25 = arith.constant dense<0.000000e+00> : vector<152x128xf32>
    %24 = tpu.matmul %21, %23, %cst_25 {dimension_numbers = #tpu.dot_dimension_numbers<[1], [0], [0], [1], [0, 0, 1, 1], [], []>} : vector<152x64xbf16>, vector<64x128xbf16>, vector<152x128xf32> -> vector<152x128xf32>
    %25 = arith.addf %19, %24 : vector<152x128xf32>
    %c0_26 = arith.constant 0 : index
    %c0_27 = arith.constant 0 : index
    %26 = vector.load %arg5[%c0_26, %c0_27] : memref<152x128xf32, #tpu.memory_space<vmem>>, vector<152x128xf32>
    %27 = arith.addf %26, %25 : vector<152x128xf32>
    %c0_28 = arith.constant 0 : index
    %c0_29 = arith.constant 0 : index
    %28 = vector.load %arg5[%c0_28, %c0_29] : memref<152x128xf32, #tpu.memory_space<vmem>>, vector<152x128xf32>
    tpu.vector_store %arg5[%c0_28, %c0_29], %27 {strides = array<i32>} : memref<152x128xf32, #tpu.memory_space<vmem>>, vector<152x128xf32>,
    %c3_i32 = arith.constant 3 : i32
    %29 = arith.cmpi eq, %arg0, %c3_i32 : i32
    %30 = arith.extui %29 : i1 to i32
    %c0_i32_30 = arith.constant 0 : i32
    %31 = arith.cmpi ne, %30, %c0_i32_30 : i32
    scf.if %31 {
      %c0_31 = arith.constant 0 : index
      %c0_32 = arith.constant 0 : index
      %32 = vector.load %arg5[%c0_31, %c0_32] : memref<152x128xf32, #tpu.memory_space<vmem>>, vector<152x128xf32>
      %c0_33 = arith.constant 0 : index
      %c0_34 = arith.constant 0 : index
      %33 = vector.load %arg3[%c0_33, %c0_34] : memref<1x128xf32, #tpu.memory_space<vmem>>, vector<1x128xf32>
      %34 = vector.broadcast %33 : vector<1x128xf32> to vector<152x128xf32>
      %35 = arith.addf %32, %34 : vector<152x128xf32>
      %cst_35 = arith.constant 0.000000e+00 : f32
      %36 = vector.broadcast %cst_35 : f32 to vector<152x128xf32>
      %37 = arith.cmpf oge, %35, %36 : vector<152x128xf32>
      %cst_36 = arith.constant 2.000000e-01 : f32
      %38 = vector.broadcast %cst_36 : f32 to vector<152x128xf32>
      %39 = arith.mulf %38, %35 : vector<152x128xf32>
      %40 = arith.select %37, %35, %39 : vector<152x128xi1>, vector<152x128xf32>
      %41 = arith.truncf %40 : vector<152x128xf32> to vector<152x128xbf16>
      %c0_37 = arith.constant 0 : index
      %c0_38 = arith.constant 0 : index
      %42 = vector.load %arg4[%c0_37, %c0_38] : memref<152x128xbf16, #tpu.memory_space<vmem>>, vector<152x128xbf16>
      tpu.vector_store %arg4[%c0_37, %c0_38], %41 {strides = array<i32>} : memref<152x128xbf16, #tpu.memory_space<vmem>>, vector<152x128xbf16>,
    } else {
    }
    return
  }
  func.func @transform_0(%arg0: i32) -> (i32, i32, i32) {
    %c0_i32 = arith.constant 0 : i32
    %c0_i32_0 = arith.constant 0 : i32
    %c0_i32_1 = arith.constant 0 : i32
    return %arg0, %c0_i32, %c0_i32_0 : i32, i32, i32
  }
  func.func @transform_1(%arg0: i32) -> (i32, i32, i32, i32) {
    %c0_i32 = arith.constant 0 : i32
    %c0_i32_0 = arith.constant 0 : i32
    %c0_i32_1 = arith.constant 0 : i32
    %c0_i32_2 = arith.constant 0 : i32
    return %arg0, %c0_i32, %c0_i32_0, %c0_i32_1 : i32, i32, i32, i32
  }
  func.func @transform_2(%arg0: i32) -> (i32, i32) {
    %c0_i32 = arith.constant 0 : i32
    %c0_i32_0 = arith.constant 0 : i32
    %c0_i32_1 = arith.constant 0 : i32
    return %c0_i32, %c0_i32_0 : i32, i32
  }
  func.func @transform_3(%arg0: i32) -> (i32, i32) {
    %c0_i32 = arith.constant 0 : i32
    %c0_i32_0 = arith.constant 0 : i32
    %c0_i32_1 = arith.constant 0 : i32
    return %c0_i32, %c0_i32_0 : i32, i32
  }
}

module attributes {stable_mosaic.version = 11 : i64} {
  func.func @_conv3_conv4_kernel(%arg0: i32, %arg1: memref<1x50x128xbf16, #tpu.memory_space<vmem>>, %arg2: memref<1x4x128x256xbf16, #tpu.memory_space<vmem>>, %arg3: memref<1x256xf32, #tpu.memory_space<vmem>>, %arg4: memref<44x256xf32, #tpu.memory_space<vmem>>, %arg5: memref<2x44xf32, #tpu.memory_space<vmem>>, %arg6: memref<1x1xf32, #tpu.memory_space<vmem>>, %arg7: memref<2x1xf32, #tpu.memory_space<vmem>>, %arg8: memref<44x256xf32, #tpu.memory_space<vmem>>) attributes {dimension_semantics = [#tpu.dimension_semantics<arbitrary>], iteration_bounds = array<i64: 4>, scalar_prefetch = 0 : i64, scratch_operands = 1 : i64, tpu.core_type = #tpu.core_type<tc>, window_params = [{transform_indices = @transform_0, window_bounds = array<i64: 1, 50, 128>}, {transform_indices = @transform_1, window_bounds = array<i64: 1, 4, 128, 256>}, {pipeline_mode = #tpu.pipeline_mode<synchronous>, transform_indices = @transform_2, window_bounds = array<i64: 1, 256>}, {pipeline_mode = #tpu.pipeline_mode<synchronous>, transform_indices = @transform_3, window_bounds = array<i64: 44, 256>}, {pipeline_mode = #tpu.pipeline_mode<synchronous>, transform_indices = @transform_4, window_bounds = array<i64: 2, 44>}, {pipeline_mode = #tpu.pipeline_mode<synchronous>, transform_indices = @transform_5, window_bounds = array<i64: 1, 1>}, {pipeline_mode = #tpu.pipeline_mode<synchronous>, transform_indices = @transform_6, window_bounds = array<i64: 2, 1>}]} {
    %c0_i32 = arith.constant 0 : i32
    %0 = arith.cmpi eq, %arg0, %c0_i32 : i32
    %1 = arith.extui %0 : i1 to i32
    %c0_i32_0 = arith.constant 0 : i32
    %2 = arith.cmpi ne, %1, %c0_i32_0 : i32
    scf.if %2 {
      %cst_31 = arith.constant 0.000000e+00 : f32
      %32 = vector.broadcast %cst_31 : f32 to vector<44x256xf32>
      %c0_32 = arith.constant 0 : index
      %c0_33 = arith.constant 0 : index
      %33 = vector.load %arg8[%c0_32, %c0_33] : memref<44x256xf32, #tpu.memory_space<vmem>>, vector<44x256xf32>
      tpu.vector_store %arg8[%c0_32, %c0_33], %32 {strides = array<i32>} : memref<44x256xf32, #tpu.memory_space<vmem>>, vector<44x256xf32>,
    } else {
    }
    %c0 = arith.constant 0 : index
    %c0_1 = arith.constant 0 : index
    %c0_2 = arith.constant 0 : index
    %3 = vector.load %arg1[%c0, %c0_1, %c0_2] : memref<1x50x128xbf16, #tpu.memory_space<vmem>>, vector<1x44x128xbf16>
    %4 = vector.shape_cast %3 : vector<1x44x128xbf16> to vector<44x128xbf16>
    %c0_3 = arith.constant 0 : index
    %c0_4 = arith.constant 0 : index
    %c0_5 = arith.constant 0 : index
    %c0_6 = arith.constant 0 : index
    %5 = vector.load %arg2[%c0_3, %c0_4, %c0_5, %c0_6] : memref<1x4x128x256xbf16, #tpu.memory_space<vmem>>, vector<1x1x128x256xbf16>
    %6 = vector.shape_cast %5 : vector<1x1x128x256xbf16> to vector<128x256xbf16>
    %cst = arith.constant dense<0.000000e+00> : vector<44x256xf32>
    %7 = tpu.matmul %4, %6, %cst {dimension_numbers = #tpu.dot_dimension_numbers<[1], [0], [0], [1], [0, 0, 1, 1], [], []>} : vector<44x128xbf16>, vector<128x256xbf16>, vector<44x256xf32> -> vector<44x256xf32>
    %c0_7 = arith.constant 0 : index
    %c1 = arith.constant 1 : index
    %c0_8 = arith.constant 0 : index
    %8 = vector.load %arg1[%c0_7, %c1, %c0_8] : memref<1x50x128xbf16, #tpu.memory_space<vmem>>, vector<1x44x128xbf16>
    %9 = vector.shape_cast %8 : vector<1x44x128xbf16> to vector<44x128xbf16>
    %c0_9 = arith.constant 0 : index
    %c1_10 = arith.constant 1 : index
    %c0_11 = arith.constant 0 : index
    %c0_12 = arith.constant 0 : index
    %10 = vector.load %arg2[%c0_9, %c1_10, %c0_11, %c0_12] : memref<1x4x128x256xbf16, #tpu.memory_space<vmem>>, vector<1x1x128x256xbf16>
    %11 = vector.shape_cast %10 : vector<1x1x128x256xbf16> to vector<128x256xbf16>
    %cst_13 = arith.constant dense<0.000000e+00> : vector<44x256xf32>
    %12 = tpu.matmul %9, %11, %cst_13 {dimension_numbers = #tpu.dot_dimension_numbers<[1], [0], [0], [1], [0, 0, 1, 1], [], []>} : vector<44x128xbf16>, vector<128x256xbf16>, vector<44x256xf32> -> vector<44x256xf32>
    %13 = arith.addf %7, %12 : vector<44x256xf32>
    %c0_14 = arith.constant 0 : index
    %c5 = arith.constant 5 : index
    %c0_15 = arith.constant 0 : index
    %14 = vector.load %arg1[%c0_14, %c5, %c0_15] : memref<1x50x128xbf16, #tpu.memory_space<vmem>>, vector<1x44x128xbf16>
    %15 = vector.shape_cast %14 : vector<1x44x128xbf16> to vector<44x128xbf16>
    %c0_16 = arith.constant 0 : index
    %c2 = arith.constant 2 : index
    %c0_17 = arith.constant 0 : index
    %c0_18 = arith.constant 0 : index
    %16 = vector.load %arg2[%c0_16, %c2, %c0_17, %c0_18] : memref<1x4x128x256xbf16, #tpu.memory_space<vmem>>, vector<1x1x128x256xbf16>
    %17 = vector.shape_cast %16 : vector<1x1x128x256xbf16> to vector<128x256xbf16>
    %cst_19 = arith.constant dense<0.000000e+00> : vector<44x256xf32>
    %18 = tpu.matmul %15, %17, %cst_19 {dimension_numbers = #tpu.dot_dimension_numbers<[1], [0], [0], [1], [0, 0, 1, 1], [], []>} : vector<44x128xbf16>, vector<128x256xbf16>, vector<44x256xf32> -> vector<44x256xf32>
    %19 = arith.addf %13, %18 : vector<44x256xf32>
    %c0_20 = arith.constant 0 : index
    %c6 = arith.constant 6 : index
    %c0_21 = arith.constant 0 : index
    %20 = vector.load %arg1[%c0_20, %c6, %c0_21] : memref<1x50x128xbf16, #tpu.memory_space<vmem>>, vector<1x44x128xbf16>
    %21 = vector.shape_cast %20 : vector<1x44x128xbf16> to vector<44x128xbf16>
    %c0_22 = arith.constant 0 : index
    %c3 = arith.constant 3 : index
    %c0_23 = arith.constant 0 : index
    %c0_24 = arith.constant 0 : index
    %22 = vector.load %arg2[%c0_22, %c3, %c0_23, %c0_24] : memref<1x4x128x256xbf16, #tpu.memory_space<vmem>>, vector<1x1x128x256xbf16>
    %23 = vector.shape_cast %22 : vector<1x1x128x256xbf16> to vector<128x256xbf16>
    %cst_25 = arith.constant dense<0.000000e+00> : vector<44x256xf32>
    %24 = tpu.matmul %21, %23, %cst_25 {dimension_numbers = #tpu.dot_dimension_numbers<[1], [0], [0], [1], [0, 0, 1, 1], [], []>} : vector<44x128xbf16>, vector<128x256xbf16>, vector<44x256xf32> -> vector<44x256xf32>
    %25 = arith.addf %19, %24 : vector<44x256xf32>
    %c0_26 = arith.constant 0 : index
    %c0_27 = arith.constant 0 : index
    %26 = vector.load %arg8[%c0_26, %c0_27] : memref<44x256xf32, #tpu.memory_space<vmem>>, vector<44x256xf32>
    %27 = arith.addf %26, %25 : vector<44x256xf32>
    %c0_28 = arith.constant 0 : index
    %c0_29 = arith.constant 0 : index
    %28 = vector.load %arg8[%c0_28, %c0_29] : memref<44x256xf32, #tpu.memory_space<vmem>>, vector<44x256xf32>
    tpu.vector_store %arg8[%c0_28, %c0_29], %27 {strides = array<i32>} : memref<44x256xf32, #tpu.memory_space<vmem>>, vector<44x256xf32>,
    %c3_i32 = arith.constant 3 : i32
    %29 = arith.cmpi eq, %arg0, %c3_i32 : i32
    %30 = arith.extui %29 : i1 to i32
    %c0_i32_30 = arith.constant 0 : i32
    %31 = arith.cmpi ne, %30, %c0_i32_30 : i32
    scf.if %31 {
      %c0_31 = arith.constant 0 : index
      %c0_32 = arith.constant 0 : index
      %32 = vector.load %arg8[%c0_31, %c0_32] : memref<44x256xf32, #tpu.memory_space<vmem>>, vector<44x256xf32>
      %c0_33 = arith.constant 0 : index
      %c0_34 = arith.constant 0 : index
      %33 = vector.load %arg3[%c0_33, %c0_34] : memref<1x256xf32, #tpu.memory_space<vmem>>, vector<1x256xf32>
      %34 = vector.broadcast %33 : vector<1x256xf32> to vector<44x256xf32>
      %35 = arith.addf %32, %34 : vector<44x256xf32>
      %cst_35 = arith.constant 0.000000e+00 : f32
      %36 = vector.broadcast %cst_35 : f32 to vector<44x256xf32>
      %37 = arith.cmpf oge, %35, %36 : vector<44x256xf32>
      %cst_36 = arith.constant 2.000000e-01 : f32
      %38 = vector.broadcast %cst_36 : f32 to vector<44x256xf32>
      %39 = arith.mulf %38, %35 : vector<44x256xf32>
      %40 = arith.select %37, %35, %39 : vector<44x256xi1>, vector<44x256xf32>
      %c0_37 = arith.constant 0 : index
      %c0_38 = arith.constant 0 : index
      %41 = vector.load %arg4[%c0_37, %c0_38] : memref<44x256xf32, #tpu.memory_space<vmem>>, vector<44x256xf32>
      %42 = arith.mulf %40, %41 : vector<44x256xf32>
      %c0_39 = arith.constant 0 : index
      %c0_40 = arith.constant 0 : index
      %43 = vector.load %arg5[%c0_39, %c0_40] : memref<2x44xf32, #tpu.memory_space<vmem>>, vector<2x44xf32>
      %cst_41 = arith.constant dense<0.000000e+00> : vector<2x256xf32>
      %44 = tpu.matmul %43, %42, %cst_41 {dimension_numbers = #tpu.dot_dimension_numbers<[1], [0], [0], [1], [0, 0, 1, 1], [], []>} : vector<2x44xf32>, vector<44x256xf32>, vector<2x256xf32> -> vector<2x256xf32>
      %cst_42 = arith.constant dense<0.000000e+00> : vector<2xf32>
      %45 = vector.multi_reduction <add>, %44, %cst_42 [1] : vector<2x256xf32> to vector<2xf32>
      %46 = vector.shape_cast %45 : vector<2xf32> to vector<2x1xf32>
      %c0_43 = arith.constant 0 : index
      %c0_44 = arith.constant 0 : index
      %47 = vector.load %arg6[%c0_43, %c0_44] : memref<1x1xf32, #tpu.memory_space<vmem>>, vector<1x1xf32>
      %48 = vector.broadcast %47 : vector<1x1xf32> to vector<2x1xf32>
      %49 = arith.addf %46, %48 : vector<2x1xf32>
      %c0_45 = arith.constant 0 : index
      %c0_46 = arith.constant 0 : index
      %50 = vector.load %arg7[%c0_45, %c0_46] : memref<2x1xf32, #tpu.memory_space<vmem>>, vector<2x1xf32>
      tpu.vector_store %arg7[%c0_45, %c0_46], %49 {strides = array<i32>} : memref<2x1xf32, #tpu.memory_space<vmem>>, vector<2x1xf32>,
    } else {
    }
    return
  }
  func.func @transform_0(%arg0: i32) -> (i32, i32, i32) {
    %c0_i32 = arith.constant 0 : i32
    %c0_i32_0 = arith.constant 0 : i32
    %c0_i32_1 = arith.constant 0 : i32
    return %arg0, %c0_i32, %c0_i32_0 : i32, i32, i32
  }
  func.func @transform_1(%arg0: i32) -> (i32, i32, i32, i32) {
    %c0_i32 = arith.constant 0 : i32
    %c0_i32_0 = arith.constant 0 : i32
    %c0_i32_1 = arith.constant 0 : i32
    %c0_i32_2 = arith.constant 0 : i32
    return %arg0, %c0_i32, %c0_i32_0, %c0_i32_1 : i32, i32, i32, i32
  }
  func.func @transform_2(%arg0: i32) -> (i32, i32) {
    %c0_i32 = arith.constant 0 : i32
    %c0_i32_0 = arith.constant 0 : i32
    %c0_i32_1 = arith.constant 0 : i32
    return %c0_i32, %c0_i32_0 : i32, i32
  }
  func.func @transform_3(%arg0: i32) -> (i32, i32) {
    %c0_i32 = arith.constant 0 : i32
    %c0_i32_0 = arith.constant 0 : i32
    %c0_i32_1 = arith.constant 0 : i32
    return %c0_i32, %c0_i32_0 : i32, i32
  }
  func.func @transform_4(%arg0: i32) -> (i32, i32) {
    %c0_i32 = arith.constant 0 : i32
    %c0_i32_0 = arith.constant 0 : i32
    %c0_i32_1 = arith.constant 0 : i32
    return %c0_i32, %c0_i32_0 : i32, i32
  }
  func.func @transform_5(%arg0: i32) -> (i32, i32) {
    %c0_i32 = arith.constant 0 : i32
    %c0_i32_0 = arith.constant 0 : i32
    %c0_i32_1 = arith.constant 0 : i32
    return %c0_i32, %c0_i32_0 : i32, i32
  }
  func.func @transform_6(%arg0: i32) -> (i32, i32) {
    %c0_i32 = arith.constant 0 : i32
    %c0_i32_0 = arith.constant 0 : i32
    %c0_i32_1 = arith.constant 0 : i32
    return %c0_i32, %c0_i32_0 : i32, i32
  }
}

</mosaic_0001>

<bundles_post_ra>
// kernel: discriminator_forward.4
= control target key start
LH: loop header
LB: loop body
LE: loop exit
PB: predicated region body
PF: predicated region fallthrough
CT: control target
= control target key end

     0   :  { %s2051_s12 = smov 0   ;;  %s2355_s0 = inlined_call_operand.vmem [shape: bf16[4,162,64], index: 0, kind: input, shape index: {}]   ;;  %s2356_s1 = inlined_call_operand.vmem [shape: bf16[4,4,64,128], index: 1, kind: input, shape index: {}]   ;;  %s2357_s2 = inlined_call_operand.vmem [shape: f32[1,128], index: 2, kind: input, shape index: {}]   ;;  %s2358_s3 = inlined_call_operand.vmem [shape: bf16[152,128], index: 3, kind: output, shape index: {}]  }
   0x1 LB: > { %s2057_s13 = sadd.s32 4294967295, %s2028_s12   ;;  %p1555_p0 = scmp.ge.s32.totalorder %s2028_s12, 1  ;;  %s2028_s12 = sphi %s2051_s12, %s13_s12  }
   0x2   : > { %p142_p1 = scmp.lt.s32.totalorder %s2028_s12, 5 }
   0x4   : > { %p143_p2 = pnand %p1555_p0, %p142_p1 }
   0x5   : > { %p166_p3 = scmp.lt.s32.totalorder (!%p143_p2), %s2057_s13, 3  ;;  %p1559_p4 = scmp.ne.s32.totalorder (!%p143_p2), %s2057_s13, 0 }
   0x6   : > { %146 = sbr.rel (%p143_p2) target bundleno = 353 (0x161), region = 32 }
   0xd   : > { %s167_s14 = scalar_select %p166_p3, %s2057_s13, 3 }
   0xe   : > { %180 = sbr.rel (%p1559_p4) target bundleno = 25 (0x19), region = 36  ;;  %v2030_v0 = vmov (!%p1559_p4), 0.0  }
   0xf   : > { %s1974_s15 = smul.u32 84, %s167_s14  ;;  %s1685_s16 = sshll.u32 %s167_s14, 7  ;;  %181 = vst [vmem:[#allocation2] sm:$0xff] (!%p1559_p4), %v2030_v0  ;;  %182 = vst [vmem:[#allocation2 + $0x8] sm:$0xff] (!%p1559_p4), %v2030_v0 }
  0x10   : > { %s2066_s19 = scalar_lea.vmem %s2356_s1, %s1685_s16  ;;  %183 = vst [vmem:[#allocation2 + $0x10] sm:$0xff] (!%p1559_p4), %v2030_v0  ;;  %184 = vst [vmem:[#allocation2 + $0x18] sm:$0xff] (!%p1559_p4), %v2030_v0 }
  0x11   : > { %s2071_s22 = scalar_lea.vmem %s2355_s0, %s1974_s15  ;;  %185 = vst [vmem:[#allocation2 + $0x20] sm:$0xff] (!%p1559_p4), %v2030_v0  ;;  %186 = vst [vmem:[#allocation2 + $0x28] sm:$0xff] (!%p1559_p4), %v2030_v0 }
  0x12   : > { %187 = vst [vmem:[#allocation2 + $0x30] sm:$0xff] (!%p1559_p4), %v2030_v0  ;;  %188 = vst [vmem:[#allocation2 + $0x38] sm:$0xff] (!%p1559_p4), %v2030_v0 }
  0x13   : > { %189 = vst [vmem:[#allocation2 + $0x40] sm:$0xff] (!%p1559_p4), %v2030_v0  ;;  %190 = vst [vmem:[#allocation2 + $0x48] sm:$0xff] (!%p1559_p4), %v2030_v0 }
  0x14   : > { %191 = vst [vmem:[#allocation2 + $0x50] sm:$0xff] (!%p1559_p4), %v2030_v0  ;;  %192 = vst [vmem:[#allocation2 + $0x58] sm:$0xff] (!%p1559_p4), %v2030_v0 }
  0x15   : > { %193 = vst [vmem:[#allocation2 + $0x60] sm:$0xff] %v2030_v0  ;;  %194 = vst [vmem:[#allocation2 + $0x68] sm:$0xff] %v2030_v0 }
  0x16   : > { %195 = vst [vmem:[#allocation2 + $0x70] sm:$0xff] %v2030_v0  ;;  %196 = vst [vmem:[#allocation2 + $0x78] sm:$0xff] %v2030_v0 }
  0x17   : > { %197 = vst [vmem:[#allocation2 + $0x80] sm:$0xff] %v2030_v0  ;;  %198 = vst [vmem:[#allocation2 + $0x88] sm:$0xff] %v2030_v0 }
  0x18   : > { %199 = vst [vmem:[#allocation2 + $0x90] sm:$0xff] %v2030_v0 }
  0x19 PF: > { %v1984_v1 = vld [vmem:[%s2066_s19 + $0x20] sm:$0xff]   ;;  %v1986_v3 = vld [vmem:[%s2066_s19 + $0x28] sm:$0xff]   ;;  %v1988_v5 = vld [vmem:[%s2066_s19 + $0x30] sm:$0xff]   ;;  %vm287_vm0 = vsmask.f32 7424  ;;  %vm391_vm1 = vcmask 523264  }
  0x1a   : > { %v1985_v2 = vld [vmem:[%s2066_s19 + $0x40] sm:$0xff]   ;;  %1814 = vmatprep.subr.bf16.mxu1 %v1984_v1  ;;  %v1987_v4 = vld [vmem:[%s2066_s19 + $0x48] sm:$0xff]   ;;  %v1989_v6 = vld [vmem:[%s2066_s19 + $0x50] sm:$0xff]   ;;  %vm1048_vm2 = vcmask 1046528   ;;  %p1662_p5 = scmp.ne.s32.totalorder %s2057_s13, 3 }
  0x1b   : > { %1870 = vmatprep.subr.bf16.mxu0 %v1985_v2  ;;  %1815 = vmatpush3.bf16.msra.mxu1 %v1984_v1  ;;  %v1990_v7 = vld [vmem:[%s2066_s19 + $0x38] sm:$0xff]   ;;  %v2083_v9 = vld [vmem:[%s2071_s22] sm:$0xff]   ;;  %v2086_v10 = vld [vmem:[%s2071_s22 + $0x8] sm:$0xff]  }
  0x1c   : > { %1871 = vmatpush3.bf16.msra.mxu0 %v1985_v2  ;;  %1816 = vmatprep.subr.bf16.mxu1 %v1986_v3  ;;  %v1991_v8 = vld [vmem:[%s2066_s19 + $0x58] sm:$0xff]   ;;  %v692_v11 = vld [vmem:[%s2071_s22 + $0x4] sm:$0xf]  ;;  %v2090_v12 = vld [vmem:[%s2071_s22 + $0x8] sm:$0xf]  ;;  %v289_v13 = vshrl.u32 %v2083_v9, 16 }
  0x1d   : > { %1872 = vmatprep.subr.bf16.mxu0 %v1987_v4  ;;  %v291_v14 = vshll.u32 %v2083_v9, 16  ;;  %v296_v15 = vshll.u32 %v2086_v10, 16  ;;  %v300_v16 = vshrl.u32 %v2086_v10, 16  ;;  %v1615_v17 = vcombine.low %v692_v11, %v2090_v12  ;;  %v2098_v18 = vld [vmem:[%s2071_s22 + $0xc] sm:$0xff]   ;;  %v1997_v22 = vld [vmem:[%s2066_s19] sm:$0xff]   ;;  %v2108_v30 = vld [vmem:[%s2071_s22 + $0x14] sm:$0xff]  }
  0x1e   : > { %v2101_v21 = vld [vmem:[%s2071_s22 + $0x10] sm:$0xff]   ;;  %v779_v25 = vshll.u32 %v2098_v18, 16  ;;  %v783_v26 = vshrl.u32 %v2098_v18, 16  ;;  %v787_v35 = vshll.u32 %v2108_v30, 16  ;;  %v1999_v36 = vld [vmem:[%s2066_s19 + $0x60] sm:$0xff]   ;;  %v2114_v37 = vld [vmem:[%s2071_s22 + $0x18] sm:$0xff]  }
  0x1f   : > { %1817 = vmatpush3.bf16.msra.mxu1 %v1986_v3  ;;  %v293_v19 = vrot.slane %v291_v14, 1  ;;  %v298_v20 = vrot.slane %v296_v15, 1  ;;  %v772_v23 = vshrl.u32 %v1615_v17, 16  ;;  %v774_v24 = vshll.u32 %v1615_v17, 16  ;;  %v2119_v41 = vld [vmem:[%s2071_s22 + $0x1c] sm:$0xff]   ;;  %v2136_v56 = vld [vmem:[%s2071_s22 + $0x24] sm:$0xff]  }
  0x20   : > { %1873 = vmatpush3.bf16.msra.mxu0 %v1987_v4  ;;  %1818 = vmatprep.subr.bf16.mxu1 %v1988_v5  ;;  %v304_v29 = vshll.u32 %v2101_v21, 16  ;;  %v781_v32 = vrot.slane %v779_v25, 1  ;;  %v308_v40 = vshrl.u32 %v2101_v21, 16  ;;  %v789_v43 = vrot.slane %v787_v35, 1  ;;  %v2125_v46 = vld [vmem:[%s2071_s22 + $0x20] sm:$0xff]   ;;  %v2004_v58 = vld [vmem:[%s2066_s19 + $0x8] sm:$0xff]  }
  0x21   : > { %1874 = vmatprep.subr.bf16.mxu0 %v1989_v6  ;;  %v294_v27 = vor.u32 %v293_v19, %v289_v13  ;;  %v302_v28 = vor.u32 %v300_v16, %v298_v20  ;;  %v776_v31 = vrot.slane %v774_v24, 1  ;;  %v312_v44 = vshll.u32 %v2114_v37, 16  ;;  %v2005_v62 = vld [vmem:[%s2066_s19 + $0x68] sm:$0xff]   ;;  %v2157_v11 = vld [vmem:[%s2071_s22 + $0x30] sm:$0xff]  }
  0x22   : > { %v306_v34 = vrot.slane %v304_v29, 1  ;;  %v785_v39 = vor.u32 %v783_v26, %v781_v32  ;;  %v791_v45 = vshrl.u32 %v2108_v30, 16  ;;  %v795_v49 = vshll.u32 %v2119_v41, 16  ;;  %v2146_v2 = vld [vmem:[%s2071_s22 + $0x28] sm:$0xff]   ;;  %v2010_v25 = vld [vmem:[%s2066_s19 + $0x10] sm:$0xff]   ;;  %v2172_v29 = vld [vmem:[%s2071_s22 + $0x38] sm:$0xff]  }
  0x23   : > { %1819 = vmatpush3.bf16.msra.mxu1 %v1988_v5  ;;  %v299_v33 = vsel %vm287_vm0, %v294_v27, %v298_v20  ;;  %v777_v38 = vor.u32 %v776_v31, %v772_v23  ;;  %v316_v50 = vshrl.u32 %v2114_v37, 16  ;;  %v314_v52 = vrot.slane %v312_v44, 1  ;;  %v2152_v5 = vld [vmem:[%s2071_s22 + $0x2c] sm:$0xff]   ;;  %v2165_v23 = vld [vmem:[%s2071_s22 + $0x34] sm:$0xff]  }
  0x24   : > { %1875 = vmatpush3.bf16.msra.mxu0 %v1989_v6  ;;  %1820 = vmatprep.subr.bf16.mxu1 %v1990_v7  ;;  %v307_v42 = vsel %vm287_vm0, %v302_v28, %v306_v34  ;;  %v310_v48 = vor.u32 %v308_v40, %v306_v34  ;;  %v790_v51 = vsel %vm287_vm0, %v785_v39, %v789_v43  ;;  %v320_v54 = vshll.u32 %v2125_v46, 16  ;;  %v2185_v39 = vld [vmem:[%s2071_s22 + $0x40] sm:$0xff]  }
  0x25   : > { %1876 = vmatprep.subr.bf16.mxu0 %v1991_v8  ;;  %1822 = vmatprep.mubr.msk.bf16.mxu1 %vm391_vm1, %v299_v33  ;;  %v782_v47 = vsel %vm287_vm0, %v777_v38, %v781_v32  ;;  %v793_v53 = vor.u32 %v791_v45, %v789_v43  ;;  %v797_v55 = vrot.slane %v795_v49, 1  ;;  %v799_v57 = vshrl.u32 %v2119_v41, 16  ;;  %v2192_v49 = vld [vmem:[%s2071_s22 + $0x44] sm:$0xff]  }
  0x26   : > { %1878 = vmatprep.mubr.msk.bf16.mxu0 %vm391_vm1, %v782_v47  ;;  %v315_v59 = vsel %vm287_vm0, %v310_v48, %v314_v52  ;;  %v318_v60 = vor.u32 %v316_v50, %v314_v52  ;;  %v322_v61 = vrot.slane %v320_v54, 1  ;;  %v803_v1 = vshll.u32 %v2136_v56, 16 }
  0x27   : > { %1821 = vmatpush3.bf16.msra.mxu1 %v1990_v7  ;;  %v798_v63 = vsel %vm287_vm0, %v793_v53, %v797_v55  ;;  %v801_v0 = vor.u32 %v799_v57, %v797_v55  ;;  %v324_v4 = vshrl.u32 %v2125_v46, 16  ;;  %v328_v7 = vshll.u32 %v2146_v2, 16  ;;  %v2015_v53 = vld [vmem:[%s2066_s19 + $0x70] sm:$0xff]  }
  0x28   : > { %1877 = vmatpush3.bf16.msra.mxu0 %v1991_v8  ;;  %1842 = vmatprep.subr.bf16.mxu1 %v1997_v22  ;;  %v323_v3 = vsel %vm287_vm0, %v318_v60, %v322_v61  ;;  %v805_v6 = vrot.slane %v803_v1, 1  ;;  %v807_v8 = vshrl.u32 %v2136_v56, 16  ;;  %v811_v14 = vshll.u32 %v2152_v5, 16  ;;  %v2016_v60 = vld [vmem:[%s2066_s19 + $0x18] sm:$0xff]  }
  0x29   : > { %1898 = vmatprep.subr.bf16.mxu0 %v1999_v36  ;;  %v326_v13 = vor.u32 %v324_v4, %v322_v61  ;;  %v332_v15 = vshrl.u32 %v2146_v2, 16  ;;  %v330_v17 = vrot.slane %v328_v7, 1  ;;  %v336_v20 = vshll.u32 %v2157_v11, 16  ;;  %v2203_v61 = vld [vmem:[%s2071_s22 + $0x48] sm:$0xf]  ;;  %v2019_v1 = vld [vmem:[%s2066_s19 + $0x78] sm:$0xff]  }
  0x2a   : > { %1823 = vmatmul.mubr.msk.bf16.vlgmr.msra.gmra.mrb[0].mxu1 %vm391_vm1, %v307_v42  ;;  %v806_v16 = vsel %vm287_vm0, %v801_v0, %v805_v6  ;;  %v809_v19 = vor.u32 %v807_v8, %v805_v6  ;;  %v815_v24 = vshrl.u32 %v2152_v5, 16  ;;  %v819_v33 = vshll.u32 %v2165_v23, 16  ;;  %v2213_v7 = vld [vmem:[%s2071_s22 + $0x4c] sm:$0x1f]  }
  0x2b   : > { %1843 = vmatpush3.bf16.msra.mxu1 %v1997_v22  ;;  %1879 = vmatmul.mubr.msk.bf16.vlgmr.msra.gmra.mrb[0].mxu0 %vm391_vm1, %v790_v51  ;;  %v813_v22 = vrot.slane %v811_v14, 1  ;;  %v331_v26 = vsel %vm287_vm0, %v326_v13, %v330_v17  ;;  %v334_v27 = vor.u32 %v332_v15, %v330_v17  ;;  %v338_v28 = vrot.slane %v336_v20, 1 }
  0x2c   : > { %1899 = vmatpush3.bf16.msra.mxu0 %v1999_v36  ;;  %1826 = vmatprep.mubr.msk.bf16.mxu1 %vm391_vm1, %v315_v59  ;;  %v340_v34 = vshrl.u32 %v2157_v11, 16  ;;  %v344_v35 = vshll.u32 %v2172_v29, 16  ;;  %v2181_v36 = vld [vmem:[%s2071_s22 + $0x3c] sm:$0xff]   ;;  %v823_v38 = vshrl.u32 %v2165_v23, 16  ;;  %v821_v42 = vrot.slane %v819_v33, 1 }
  0x2d   : > { %1844 = vmatprep.subr.bf16.mxu1 %v2004_v58  ;;  %1882 = vmatprep.mubr.msk.bf16.mxu0 %vm391_vm1, %v798_v63  ;;  %v814_v31 = vsel %vm287_vm0, %v809_v19, %v813_v22  ;;  %v817_v32 = vor.u32 %v815_v24, %v813_v22  ;;  %v339_v40 = vsel %vm287_vm0, %v334_v27, %v338_v28  ;;  %v348_v44 = vshrl.u32 %v2172_v29, 16  ;;  %v227_v63 = vld [vmem:[%s2071_s22 + $0x4c] sm:$0x1]  ;;  %v1035_v19 = vld [vmem:[%s2071_s22 + $0x4] sm:$0xe] }
  0x2e   : > { %1900 = vmatprep.subr.bf16.mxu0 %v2005_v62  ;;  %v342_v43 = vor.u32 %v340_v34, %v338_v28  ;;  %v346_v45 = vrot.slane %v344_v35, 1  ;;  %v827_v47 = vshll.u32 %v2181_v36, 16  ;;  %v352_v48 = vshll.u32 %v2185_v39, 16 }
  0x2f   : > { %1845 = vmatpush3.bf16.msra.mxu1 %v2004_v58  ;;  %v822_v50 = vsel %vm287_vm0, %v817_v32, %v821_v42  ;;  %v825_v51 = vor.u32 %v823_v38, %v821_v42  ;;  %v831_v52 = vshrl.u32 %v2181_v36, 16  ;;  %v835_v59 = vshll.u32 %v2192_v49, 16 }
  0x30   : > { %1901 = vmatpush3.bf16.msra.mxu0 %v2005_v62  ;;  %1846 = vmatprep.subr.bf16.mxu1 %v2010_v25  ;;  %v347_v54 = vsel %vm287_vm0, %v342_v43, %v346_v45  ;;  %v829_v55 = vrot.slane %v827_v47, 1  ;;  %v350_v57 = vor.u32 %v348_v44, %v346_v45  ;;  %v354_v58 = vrot.slane %v352_v48, 1 }
  0x31   : > { %1902 = vmatprep.subr.bf16.mxu0 %v2015_v53  ;;  %v356_v0 = vshrl.u32 %v2185_v39, 16  ;;  %v837_v4 = vrot.slane %v835_v59, 1  ;;  %v1577_v6 = vcombine.low %v2203_v61, %v227_v63  ;;  %v839_v8 = vshrl.u32 %v2192_v49, 16 }
  0x32   : > { %1827 = vmatmul.mubr.msk.bf16.gmra.mrb[4].mxu1 %vm391_vm1, %v323_v3  ;;  %v830_v62 = vsel %vm287_vm0, %v825_v51, %v829_v55  ;;  %v833_v3 = vor.u32 %v831_v52, %v829_v55  ;;  %v355_v13 = vsel %vm287_vm0, %v350_v57, %v354_v58  ;;  %v843_v17 = vshll.u32 %v2213_v7, 16 }
  0x33   : > { %1883 = vmatmul.mubr.msk.bf16.gmra.mrb[4].mxu0 %vm391_vm1, %v806_v16  ;;  %1830 = vmatprep.mubr.msk.bf16.mxu1 %vm391_vm1, %v331_v26  ;;  %v358_v14 = vor.u32 %v356_v0, %v354_v58  ;;  %v360_v15 = vshll.u32 %v1577_v6, 16  ;;  %v841_v16 = vor.u32 %v839_v8, %v837_v4  ;;  %v1647_v26 = vcombine.low %v1035_v19, %v2090_v12  ;;  %v1253_v58 = vld [vmem:[#allocation2] sm:$0xff] }
  0x34   : > { %1886 = vmatprep.mubr.msk.bf16.mxu0 %vm391_vm1, %v814_v31  ;;  %1847 = vmatpush3.bf16.msra.mxu1 %v2010_v25  ;;  %v838_v20 = vsel %vm287_vm0, %v833_v3, %v837_v4  ;;  %v845_v24 = vrot.slane %v843_v17, 1  ;;  %v364_v25 = vshrl.u32 %v1577_v6, 16  ;;  %v847_v31 = vshrl.u32 %v2213_v7, 16  ;;  %v1254_v3 = vld [vmem:[#allocation2 + $0x8] sm:$0xff] }
  0x35   : > { %1903 = vmatpush3.bf16.msra.mxu0 %v2015_v53  ;;  %1848 = vmatprep.subr.bf16.mxu1 %v2016_v60  ;;  %v362_v22 = vrot.slane %v360_v15, 1  ;;  %v1049_v33 = vrot.slane %v1647_v26, 1  ;;  %v1050_v34 = vrot.slane %v2098_v18, 1  ;;  %v1052_v38 = vrot.slane %v2108_v30, 1  ;;  %v1255_v53 = vld [vmem:[#allocation2 + $0x10] sm:$0xff] }
  0x36   : > { %1904 = vmatprep.subr.bf16.mxu0 %v2019_v1  ;;  %v846_v28 = vsel %vm287_vm0, %v841_v16, %v845_v24  ;;  %v849_v35 = vor.u32 %v847_v31, %v845_v24  ;;  %v1058_v30 = vrot.slane %v2152_v5, 1  ;;  %v1259_v16 = vld [vmem:[#allocation2 + $0x30] sm:$0xff] }
  0x37   : > { %v363_v27 = vsel %vm287_vm0, %v358_v14, %v362_v22  ;;  %v366_v32 = vor.u32 %v364_v25, %v362_v22  ;;  %v1051_v12 = vsel %vm1048_vm2, %v1049_v33, %v1050_v34  ;;  %v1053_v42 = vsel %vm1048_vm2, %v1050_v34, %v1052_v38  ;;  %v1257_v22 = vld [vmem:[#allocation2 + $0x20] sm:$0xff]  ;;  %v1258_v33 = vld [vmem:[#allocation2 + $0x28] sm:$0xff] }
  0x38   : > { %1849 = vmatpush3.bf16.msra.mxu1 %v2016_v60 }
  0x39   : > { %1905 = vmatpush3.bf16.msra.mxu0 %v2019_v1 }
  0x3a   : > { %1831 = vmatmul.mubr.msk.bf16.gmra.mrb[8].mxu1 %vm391_vm1, %v339_v40  ;;  %v1054_v40 = vrot.slane %v2119_v41, 1 }
  0x3b   : > { %1834 = vmatprep.mubr.msk.bf16.mxu1 %vm391_vm1, %v347_v54  ;;  %1887 = vmatmul.mubr.msk.bf16.gmra.mrb[8].mxu0 %vm391_vm1, %v822_v50 }
  0x3c   : > { %1890 = vmatprep.mubr.msk.bf16.mxu0 %vm391_vm1, %v830_v62  ;;  %v1055_v18 = vsel %vm1048_vm2, %v1052_v38, %v1054_v40  ;;  %v1256_v62 = vld [vmem:[#allocation2 + $0x18] sm:$0xff] }
  0x42   : > { %1835 = vmatmul.mubr.msk.bf16.gmra.mrb[12].mxu1 %vm391_vm1, %v355_v13 }
  0x43   : > { %1891 = vmatmul.mubr.msk.bf16.gmra.mrb[12].mxu0 %vm391_vm1, %v838_v20  ;;  %1838 = vmatprep.mubr.msk.bf16.mxu1 %vm391_vm1, %v363_v27  ;;  %v1260_v27 = vld [vmem:[#allocation2 + $0x38] sm:$0xff] }
  0x44   : > { %1894 = vmatprep.mubr.msk.bf16.mxu0 %vm391_vm1, %v846_v28 }
  0x4a   : > { %1839 = vmatmul.mubr.msk.bf16.gmra.mrb[16].mxu1 %vm391_vm1, %v366_v32 }
  0x4b   : > { %1850 = vmatprep.mubr.msk.bf16.mxu1 %vm391_vm1, %v2083_v9  ;;  %1895 = vmatmul.mubr.msk.bf16.gmra.mrb[16].mxu0 %vm391_vm1, %v849_v35  ;;  %v1056_v9 = vrot.slane %v2136_v56, 1  ;;  %v1062_v56 = vrot.slane %v2181_v36, 1 }
  0x4c   : > { %1906 = vmatprep.mubr.msk.bf16.mxu0 %vm391_vm1, %v1051_v12 }
  0x4d   : > { %v1057_v41 = vsel %vm1048_vm2, %v1054_v40, %v1056_v9 }
  0x52   : > { %1851 = vmatmul.mubr.msk.bf16.vlgmr.msra.gmra.mrb[0].mxu1 %vm391_vm1, %v2086_v10  ;;  %v1059_v10 = vsel %vm1048_vm2, %v1056_v9, %v1058_v30  ;;  %v1263_v9 = vld [vmem:[#allocation2 + $0x50] sm:$0xff] }
  0x53   : > { %1854 = vmatprep.mubr.msk.bf16.mxu1 %vm391_vm1, %v2101_v21  ;;  %1907 = vmatmul.mubr.msk.bf16.vlgmr.msra.gmra.mrb[0].mxu0 %vm391_vm1, %v1053_v42  ;;  %v1060_v21 = vrot.slane %v2165_v23, 1  ;;  %v1066_v23 = vrot.slane %v2213_v7, 1 }
  0x54   : > { %1910 = vmatprep.mubr.msk.bf16.mxu0 %vm391_vm1, %v1055_v18 }
  0x55   : > { %v1061_v5 = vsel %vm1048_vm2, %v1058_v30, %v1060_v21 }
  0x5a   : > { %1855 = vmatmul.mubr.msk.bf16.gmra.mrb[4].mxu1 %vm391_vm1, %v2114_v37  ;;  %v1063_v37 = vsel %vm1048_vm2, %v1060_v21, %v1062_v56  ;;  %v1261_v21 = vld [vmem:[#allocation2 + $0x40] sm:$0xff] }
  0x5b   : > { %1858 = vmatprep.mubr.msk.bf16.mxu1 %vm391_vm1, %v2125_v46  ;;  %1911 = vmatmul.mubr.msk.bf16.gmra.mrb[4].mxu0 %vm391_vm1, %v1057_v41  ;;  %v1064_v46 = vrot.slane %v2192_v49, 1 }
  0x5c   : > { %1914 = vmatprep.mubr.msk.bf16.mxu0 %vm391_vm1, %v1059_v10 }
  0x5d   : > { %v1065_v36 = vsel %vm1048_vm2, %v1062_v56, %v1064_v46 }
  0x62   : > { %1859 = vmatmul.mubr.msk.bf16.gmra.mrb[8].mxu1 %vm391_vm1, %v2146_v2  ;;  %v1067_v2 = vsel %vm1048_vm2, %v1064_v46, %v1066_v23  ;;  %v1264_v46 = vld [vmem:[#allocation2 + $0x58] sm:$0xff] }
  0x63   : > { %1862 = vmatprep.mubr.msk.bf16.mxu1 %vm391_vm1, %v2157_v11  ;;  %1915 = vmatmul.mubr.msk.bf16.gmra.mrb[8].mxu0 %vm391_vm1, %v1061_v5  ;;  %v1592_v11 = vcombine.low %v2203_v61, %v2203_v61 }
  0x64   : > { %1918 = vmatprep.mubr.msk.bf16.mxu0 %vm391_vm1, %v1063_v37 }
  0x6a   : > { %1863 = vmatmul.mubr.msk.bf16.gmra.mrb[12].mxu1 %vm391_vm1, %v2172_v29 }
  0x6b   : > { %1866 = vmatprep.mubr.msk.bf16.mxu1 %vm391_vm1, %v2185_v39  ;;  %1919 = vmatmul.mubr.msk.bf16.gmra.mrb[12].mxu0 %vm391_vm1, %v1065_v36 }
  0x6c   : > { %1922 = vmatprep.mubr.msk.bf16.mxu0 %vm391_vm1, %v1067_v2 }
  0x72   : > { %1867 = vmatmul.mubr.msk.bf16.gmra.mrb[20].mxu1 %vm391_vm1, %v1592_v11  ;;  %v1262_v11 = vld [vmem:[#allocation2 + $0x48] sm:$0xff] }
  0x73   : > { %1923 = vmatmul.mubr.msk.bf16.gmra.mrb[20].mxu0 %vm391_vm1, %v1066_v23 }
 0x11d   : > { %v2279_v43 = vpop.f32.mrb[16].mxu1 }
 0x11e   : > { %v2281_v44 = vpop.f32.mrb[17].mxu1  ;;  %v2283_v45 = vpop.f32.mrb[16].mxu0 }
 0x11f   : > { %v1841_v29 = vpop.f32.mrb[18].mxu1  ;;  %v2287_v39 = vpop.f32.mrb[17].mxu0 }
 0x120   : > { %v2285_v47 = vpop.f32.mrb[19].mxu1  ;;  %v1897_v48 = vpop.f32.mrb[18].mxu0 }
 0x121   : > { %v2289_v49 = vpop.f32.mrb[19].mxu0 }
 0x125   : > { %v1852_v50 = vpop.f32.mrb[0].mxu1 }
 0x126   : > { %v614_v51 = vpop.f32.mrb[1].mxu1  ;;  %v1908_v52 = vpop.f32.mrb[0].mxu0 }
 0x127   : > { %v1853_v54 = vpop.f32.mrb[2].mxu1  ;;  %v1926_v55 = vadd.f32 %v1908_v52, %v1852_v50  ;;  %v1156_v57 = vpop.f32.mrb[1].mxu0 }
 0x128   : > { %v617_v59 = vpop.f32.mrb[3].mxu1  ;;  %v1927_v60 = vadd.f32 %v1156_v57, %v614_v51  ;;  %v1909_v61 = vpop.f32.mrb[2].mxu0 }
 0x129   : > { %v1274_v63 = vadd.f32 %v1926_v55, %v1255_v53  ;;  %v1928_v0 = vadd.f32 %v1909_v61, %v1853_v54  ;;  %v1159_v1 = vpop.f32.mrb[3].mxu0  ;;  %v1267_v55 = vld [vmem:[#allocation2 + $0x70] sm:$0xff] }
 0x12a   : > { %v1272_v4 = vadd.f32 %v1927_v60, %v1253_v58  ;;  %v1929_v6 = vadd.f32 %v1159_v1, %v617_v59  ;;  %v1265_v60 = vld [vmem:[#allocation2 + $0x60] sm:$0xff] }
 0x12b   : > { %1293 = vst [vmem:[#allocation2 + $0x10] sm:$0xff] %v1274_v63  ;;  %v1275_v7 = vadd.f32 %v1928_v0, %v1256_v62  ;;  %v1268_v0 = vld [vmem:[#allocation2 + $0x78] sm:$0xff] }
 0x12c   : > { %1291 = vst [vmem:[#allocation2] sm:$0xff] %v1272_v4  ;;  %v1273_v8 = vadd.f32 %v1929_v6, %v1254_v3  ;;  %v1266_v6 = vld [vmem:[#allocation2 + $0x68] sm:$0xff] }
 0x12d   : > { %v1856_v13 = vpop.f32.mrb[4].mxu1  ;;  %1294 = vst [vmem:[#allocation2 + $0x18] sm:$0xff] %v1275_v7 }
 0x12e   : > { %v630_v14 = vpop.f32.mrb[5].mxu1  ;;  %1292 = vst [vmem:[#allocation2 + $0x8] sm:$0xff] %v1273_v8  ;;  %v1912_v15 = vpop.f32.mrb[4].mxu0 }
 0x12f   : > { %v1857_v17 = vpop.f32.mrb[6].mxu1  ;;  %v1930_v19 = vadd.f32 %v1912_v15, %v1856_v13  ;;  %v1172_v20 = vpop.f32.mrb[5].mxu0 }
 0x130   : > { %v633_v24 = vpop.f32.mrb[7].mxu1  ;;  %v1931_v25 = vadd.f32 %v1172_v20, %v630_v14  ;;  %v1913_v26 = vpop.f32.mrb[6].mxu0 }
 0x131   : > { %v1278_v28 = vadd.f32 %v1930_v19, %v1259_v16  ;;  %v1932_v31 = vadd.f32 %v1913_v26, %v1857_v17  ;;  %v1175_v32 = vpop.f32.mrb[7].mxu0 }
 0x132   : > { %v1276_v34 = vadd.f32 %v1931_v25, %v1257_v22  ;;  %v1933_v35 = vadd.f32 %v1175_v32, %v633_v24 }
 0x133   : > { %1297 = vst [vmem:[#allocation2 + $0x30] sm:$0xff] %v1278_v28  ;;  %v1279_v12 = vadd.f32 %v1932_v31, %v1260_v27  ;;  %v1271_v27 = vld [vmem:[#allocation2 + $0x90] sm:$0xff] }
 0x134   : > { %1295 = vst [vmem:[#allocation2 + $0x20] sm:$0xff] %v1276_v34  ;;  %v1277_v38 = vadd.f32 %v1933_v35, %v1258_v33  ;;  %v1269_v34 = vld [vmem:[#allocation2 + $0x80] sm:$0xff] }
 0x135   : > { %v1860_v40 = vpop.f32.mrb[8].mxu1  ;;  %1298 = vst [vmem:[#allocation2 + $0x38] sm:$0xff] %v1279_v12 }
 0x136   : > { %v646_v42 = vpop.f32.mrb[9].mxu1  ;;  %1296 = vst [vmem:[#allocation2 + $0x28] sm:$0xff] %v1277_v38  ;;  %v1916_v18 = vpop.f32.mrb[8].mxu0 }
 0x137   : > { %v1861_v30 = vpop.f32.mrb[10].mxu1  ;;  %v1934_v41 = vadd.f32 %v1916_v18, %v1860_v40  ;;  %v1188_v10 = vpop.f32.mrb[9].mxu0  ;;  %v2301_v18 = vld [vmem:[%s2357_s2] ss:$0 sm:$0xff] (!%p1662_p5) }
 0x138   : > { %v649_v56 = vpop.f32.mrb[11].mxu1  ;;  %v1935_v5 = vadd.f32 %v1188_v10, %v646_v42  ;;  %v1917_v37 = vpop.f32.mrb[10].mxu0 }
 0x139   : > { %v1282_v23 = vadd.f32 %v1934_v41, %v1263_v9  ;;  %v1936_v36 = vadd.f32 %v1917_v37, %v1861_v30  ;;  %v1191_v2 = vpop.f32.mrb[11].mxu0  ;;  %v1316_v30 = vld [vmem:[#allocation2 + $0x10] sm:$0xff] (!%p1662_p5)  ;;  %v1317_v41 = vld [vmem:[#allocation2 + $0x18] sm:$0xff] (!%p1662_p5) }
 0x13a   : > { %v1280_v29 = vadd.f32 %v1935_v5, %v1261_v21  ;;  %v1937_v48 = vadd.f32 %v1191_v2, %v649_v56  ;;  %v1342_v21 = vadd.f32 (!%p1662_p5), %v2301_v18, %v1316_v30  ;;  %v1343_v56 = vadd.f32 (!%p1662_p5), %v2301_v18, %v1317_v41 }
 0x13b   : > { %1301 = vst [vmem:[#allocation2 + $0x50] sm:$0xff] %v1282_v23  ;;  %v1283_v50 = vadd.f32 %v1936_v36, %v1264_v46  ;;  %v1318_v10 = vld [vmem:[#allocation2 + $0x20] sm:$0xff] (!%p1662_p5)  ;;  %v1320_v46 = vld [vmem:[#allocation2 + $0x30] sm:$0xff] (!%p1662_p5) }
 0x13c   : > { %1299 = vst [vmem:[#allocation2 + $0x40] sm:$0xff] %v1280_v29  ;;  %v1281_v51 = vadd.f32 %v1937_v48, %v1262_v11  ;;  %v1344_v37 = vadd.f32 (!%p1662_p5), %v2301_v18, %v1318_v10  ;;  %vm1361_vm5 = vcmp.ge.f32.partialorder (!%p1662_p5), %v1342_v21, 0.0  ;;  %vm1362_vm6 = vcmp.ge.f32.partialorder (!%p1662_p5), %v1343_v56, 0.0 }
 0x13d   : > { %v1864_v52 = vpop.f32.mrb[12].mxu1  ;;  %1302 = vst [vmem:[#allocation2 + $0x58] sm:$0xff] %v1283_v50  ;;  %v1319_v5 = vld [vmem:[#allocation2 + $0x28] sm:$0xff] (!%p1662_p5)  ;;  %v1380_v2 = vmul.f32 (!%p1662_p5), 0.2, %v1342_v21 }
 0x13e   : > { %v662_v53 = vpop.f32.mrb[13].mxu1  ;;  %1300 = vst [vmem:[#allocation2 + $0x48] sm:$0xff] %v1281_v51  ;;  %v1920_v54 = vpop.f32.mrb[12].mxu0  ;;  %v1381_v11 = vmul.f32 (!%p1662_p5), 0.2, %v1343_v56  ;;  %v1345_v50 = vadd.f32 (!%p1662_p5), %v2301_v18, %v1319_v5  ;;  %vm1363_vm7 = vcmp.ge.f32.partialorder (!%p1662_p5), %v1344_v37, 0.0 }
 0x13f   : > { %v1865_v57 = vpop.f32.mrb[14].mxu1  ;;  %v1938_v58 = vadd.f32 %v1920_v54, %v1864_v52  ;;  %v1204_v59 = vpop.f32.mrb[13].mxu0  ;;  %v1321_v51 = vld [vmem:[#allocation2 + $0x38] sm:$0xff] (!%p1662_p5) }
 0x140   : > { %v665_v61 = vpop.f32.mrb[15].mxu1  ;;  %v1939_v62 = vadd.f32 %v1204_v59, %v662_v53  ;;  %v1921_v63 = vpop.f32.mrb[14].mxu0  ;;  %vm1364_vm8 = vcmp.ge.f32.partialorder (!%p1662_p5), %v1345_v50, 0.0 }
 0x141   : > { %v1286_v1 = vadd.f32 %v1938_v58, %v1267_v55  ;;  %v1940_v3 = vadd.f32 %v1921_v63, %v1865_v57  ;;  %v1207_v4 = vpop.f32.mrb[15].mxu0  ;;  %v1399_v55 = vsel (!%p1662_p5), %vm1361_vm5, %v1342_v21, %v1380_v2  ;;  %v1400_v57 = vsel (!%p1662_p5), %vm1362_vm6, %v1343_v56, %v1381_v11 }
 0x142   : > { %v1284_v7 = vadd.f32 %v1939_v62, %v1265_v60  ;;  %v1941_v8 = vadd.f32 %v1207_v4, %v665_v61  ;;  %v1382_v58 = vmul.f32 (!%p1662_p5), 0.2, %v1344_v37  ;;  %v1324_v59 = vld [vmem:[#allocation2 + $0x50] sm:$0xff] (!%p1662_p5)  ;;  %v1713_v60 = vpack.c.bf16 (!%p1662_p5), %v1400_v57, %v1399_v55 }
 0x143   : > { %1305 = vst [vmem:[#allocation2 + $0x70] sm:$0xff] %v1286_v1  ;;  %v1287_v13 = vadd.f32 %v1940_v3, %v1268_v0  ;;  %v1322_v52 = vld [vmem:[#allocation2 + $0x40] sm:$0xff] (!%p1662_p5)  ;;  %v1383_v61 = vmul.f32 (!%p1662_p5), 0.2, %v1345_v50  ;;  %v1346_v62 = vadd.f32 (!%p1662_p5), %v2301_v18, %v1320_v46  ;;  %v1347_v0 = vadd.f32 (!%p1662_p5), %v2301_v18, %v1321_v51 }
 0x144   : > { %1303 = vst [vmem:[#allocation2 + $0x60] sm:$0xff] %v1284_v7  ;;  %v1285_v14 = vadd.f32 %v1941_v8, %v1266_v6  ;;  %v1401_v63 = vsel (!%p1662_p5), %vm1363_vm7, %v1344_v37, %v1382_v58  ;;  %v1348_v1 = vadd.f32 (!%p1662_p5), %v2301_v18, %v1322_v52  ;;  %1750 = vst [vmem:[%s2358_s3 + $0x8] sm:$0xff] (!%p1662_p5), %v1713_v60   ;;  %v1325_v7 = vld [vmem:[#allocation2 + $0x58] sm:$0xff] (!%p1662_p5) }
 0x145   : > { %v1868_v15 = vpop.f32.mrb[20].mxu1  ;;  %1306 = vst [vmem:[#allocation2 + $0x78] sm:$0xff] %v1287_v13  ;;  %v1323_v53 = vld [vmem:[#allocation2 + $0x48] sm:$0xff] (!%p1662_p5)  ;;  %v1402_v4 = vsel (!%p1662_p5), %vm1364_vm8, %v1345_v50, %v1383_v61  ;;  %vm1365_vm9 = vcmp.ge.f32.partialorder (!%p1662_p5), %v1346_v62, 0.0  ;;  %v1384_v6 = vmul.f32 (!%p1662_p5), 0.2, %v1346_v62  ;;  %v1350_v8 = vadd.f32 (!%p1662_p5), %v2301_v18, %v1324_v59 }
 0x146   : > { %v687_v16 = vadd.f32 %v1868_v15, %v2279_v43  ;;  %v678_v17 = vpop.f32.mrb[21].mxu1  ;;  %1304 = vst [vmem:[#allocation2 + $0x68] sm:$0xff] %v1285_v14  ;;  %v1924_v22 = vpop.f32.mrb[20].mxu0  ;;  %v1349_v3 = vadd.f32 (!%p1662_p5), %v2301_v18, %v1323_v53  ;;  %v1718_v13 = vpack.c.bf16 (!%p1662_p5), %v1402_v4, %v1401_v63  ;;  %vm1366_vm10 = vcmp.ge.f32.partialorder (!%p1662_p5), %v1347_v0, 0.0 }
 0x147   : > { %v679_v19 = vadd.f32 %v678_v17, %v2281_v44  ;;  %v1869_v20 = vpop.f32.mrb[22].mxu1  ;;  %v1220_v26 = vpop.f32.mrb[21].mxu0  ;;  %v1270_v44 = vld [vmem:[#allocation2 + $0x88] sm:$0xff]  ;;  %v1385_v14 = vmul.f32 (!%p1662_p5), 0.2, %v1347_v0  ;;  %vm1367_vm11 = vcmp.ge.f32.partialorder (!%p1662_p5), %v1348_v1, 0.0 }
 0x148   : > { %v1034_v24 = vadd.f32 %v2283_v45, %v687_v16  ;;  %v681_v25 = vpop.f32.mrb[23].mxu1  ;;  %v1925_v32 = vpop.f32.mrb[22].mxu0  ;;  %v1403_v16 = vsel (!%p1662_p5), %vm1365_vm9, %v1346_v62, %v1384_v6  ;;  %vm1368_vm12 = vcmp.ge.f32.partialorder (!%p1662_p5), %v1349_v3, 0.0  ;;  %v1386_v17 = vmul.f32 (!%p1662_p5), 0.2, %v1348_v1  ;;  %1751 = vst [vmem:[%s2358_s3 + $0x10] sm:$0xff] (!%p1662_p5), %v1718_v13  }
 0x149   : > { %v682_v28 = vadd.f32 %v681_v25, %v2285_v47  ;;  %v1032_v31 = vadd.f32 %v2287_v39, %v679_v19  ;;  %v1223_v35 = vpop.f32.mrb[23].mxu0  ;;  %v1314_v47 = vld [vmem:[#allocation2] sm:$0xff] (!%p1662_p5)  ;;  %v1315_v39 = vld [vmem:[#allocation2 + $0x8] sm:$0xff] (!%p1662_p5)  ;;  %v1387_v19 = vmul.f32 (!%p1662_p5), 0.2, %v1349_v3  ;;  %v1404_v20 = vsel (!%p1662_p5), %vm1366_vm10, %v1347_v0, %v1385_v14 }
 0x14a   : > { %v1252_v33 = vadd.f32 %v1924_v22, %v1034_v24  ;;  %v1341_v9 = vadd.f32 (!%p1662_p5), %v2301_v18, %v1315_v39  ;;  %v1351_v22 = vadd.f32 (!%p1662_p5), %v2301_v18, %v1325_v7  ;;  %vm1369_vm13 = vcmp.ge.f32.partialorder (!%p1662_p5), %v1350_v8, 0.0 }
 0x14b   : > { %v1250_v43 = vadd.f32 %v1220_v26, %v1032_v31  ;;  %v1033_v12 = vadd.f32 %v2289_v49, %v682_v28  ;;  %1313 = sbr.rel (%p1662_p5) target bundleno = 353 (0x161), region = 40  ;;  %v1340_v49 = vadd.f32 (!%p1662_p5), %v2301_v18, %v1314_v47  ;;  %v1326_v15 = vld [vmem:[#allocation2 + $0x60] sm:$0xff] (!%p1662_p5)  ;;  %v1388_v24 = vmul.f32 (!%p1662_p5), 0.2, %v1350_v8  ;;  %v1328_v26 = vld [vmem:[#allocation2 + $0x70] sm:$0xff] (!%p1662_p5) }
 0x14c   : > { %v1290_v38 = vadd.f32 %v1271_v27, %v1252_v33  ;;  %vm1360_vm4 = vcmp.ge.f32.partialorder (!%p1662_p5), %v1341_v9, 0.0  ;;  %v1379_v36 = vmul.f32 (!%p1662_p5), 0.2, %v1341_v9  ;;  %v1723_v27 = vpack.c.bf16 (!%p1662_p5), %v1404_v20, %v1403_v16  ;;  %v1329_v33 = vld [vmem:[#allocation2 + $0x78] sm:$0xff] (!%p1662_p5) }
 0x14d   : > { %v1288_v40 = vadd.f32 %v1269_v34, %v1250_v43  ;;  %v1251_v42 = vadd.f32 %v1223_v35, %v1033_v12  ;;  %vm1359_vm3 = vcmp.ge.f32.partialorder (!%p1662_p5), %v1340_v49, 0.0  ;;  %v1378_v23 = vmul.f32 (!%p1662_p5), 0.2, %v1340_v49  ;;  %v1327_v25 = vld [vmem:[#allocation2 + $0x68] sm:$0xff] (!%p1662_p5) }
 0x14e   : > { %1309 = vst [vmem:[#allocation2 + $0x90] sm:$0xff] %v1290_v38  ;;  %v1398_v48 = vsel (!%p1662_p5), %vm1360_vm4, %v1341_v9, %v1379_v36  ;;  %v1405_v28 = vsel (!%p1662_p5), %vm1367_vm11, %v1348_v1, %v1386_v17  ;;  %v1406_v31 = vsel (!%p1662_p5), %vm1368_vm12, %v1349_v3, %v1387_v19  ;;  %v1352_v32 = vadd.f32 (!%p1662_p5), %v2301_v18, %v1326_v15 }
 0x14f   : > { %1307 = vst [vmem:[#allocation2 + $0x80] sm:$0xff] %v1288_v40  ;;  %v1289_v45 = vadd.f32 %v1270_v44, %v1251_v42  ;;  %v1397_v29 = vsel (!%p1662_p5), %vm1359_vm3, %v1340_v49, %v1378_v23  ;;  %v1728_v43 = vpack.c.bf16 (!%p1662_p5), %v1406_v31, %v1405_v28  ;;  %vm1370_vm14 = vcmp.ge.f32.partialorder (!%p1662_p5), %v1351_v22, 0.0  ;;  %1752 = vst [vmem:[%s2358_s3 + $0x18] sm:$0xff] (!%p1662_p5), %v1723_v27  }
 0x150   : > { %v1708_v54 = vpack.c.bf16 (!%p1662_p5), %v1398_v48, %v1397_v29  ;;  %v1389_v12 = vmul.f32 (!%p1662_p5), 0.2, %v1351_v22  ;;  %v1407_v38 = vsel (!%p1662_p5), %vm1369_vm13, %v1350_v8, %v1388_v24  ;;  %v1353_v44 = vadd.f32 (!%p1662_p5), %v2301_v18, %v1327_v25 }
 0x151   : > { %1308 = vst [vmem:[#allocation2 + $0x88] sm:$0xff] %v1289_v45  ;;  %vm1371_vm15 = vcmp.ge.f32.partialorder (!%p1662_p5), %v1352_v32, 0.0  ;;  %v1390_v40 = vmul.f32 (!%p1662_p5), 0.2, %v1352_v32  ;;  %v1354_v42 = vadd.f32 (!%p1662_p5), %v2301_v18, %v1328_v26  ;;  %1753 = vst [vmem:[%s2358_s3 + $0x20] sm:$0xff] (!%p1662_p5), %v1728_v43   ;;  %v1355_v47 = vadd.f32 (!%p1662_p5), %v2301_v18, %v1329_v33 }
 0x152   : > { %1709 = vst [vmem:[%s2358_s3] sm:$0xff] %v1708_v54   ;;  %v1408_v45 = vsel %vm1370_vm14, %v1351_v22, %v1389_v12  ;;  %vm1372_vm0 = vcmp.ge.f32.partialorder %v1353_v44, 0.0  ;;  %v1391_v30 = vmul.f32 0.2, %v1353_v44 }
 0x153   : > { %v1733_v9 = vpack.c.bf16 %v1408_v45, %v1407_v38  ;;  %v1409_v41 = vsel %vm1371_vm15, %v1352_v32, %v1390_v40  ;;  %vm1373_vm1 = vcmp.ge.f32.partialorder %v1354_v42, 0.0  ;;  %vm1374_vm2 = vcmp.ge.f32.partialorder %v1355_v47, 0.0 }
 0x154   : > { %v1392_v21 = vmul.f32 0.2, %v1354_v42  ;;  %v1393_v56 = vmul.f32 0.2, %v1355_v47  ;;  %v1410_v5 = vsel %vm1372_vm0, %v1353_v44, %v1391_v30 }
 0x155   : > { %v1332_v10 = vld [vmem:[#allocation2 + $0x90] sm:$0xff]  ;;  %1754 = vst [vmem:[%s2358_s3 + $0x28] sm:$0xff] %v1733_v9   ;;  %v1738_v46 = vpack.c.bf16 %v1410_v5, %v1409_v41 }
 0x156   : > { %v1330_v34 = vld [vmem:[#allocation2 + $0x80] sm:$0xff]  ;;  %v1411_v23 = vsel %vm1373_vm1, %v1354_v42, %v1392_v21  ;;  %v1412_v36 = vsel %vm1374_vm2, %v1355_v47, %v1393_v56  ;;  %v1358_v48 = vadd.f32 %v2301_v18, %v1332_v10 }
 0x157   : > { %v1356_v39 = vadd.f32 %v2301_v18, %v1330_v34  ;;  %v1743_v11 = vpack.c.bf16 %v1412_v36, %v1411_v23  ;;  %1755 = vst [vmem:[%s2358_s3 + $0x30] sm:$0xff] %v1738_v46  }
 0x158   : > { %v1331_v35 = vld [vmem:[#allocation2 + $0x88] sm:$0xff]  ;;  %vm1377_vm5 = vcmp.ge.f32.partialorder %v1358_v48, 0.0  ;;  %v1396_v52 = vmul.f32 0.2, %v1358_v48 }
 0x159   : > { %v1357_v49 = vadd.f32 %v2301_v18, %v1331_v35  ;;  %vm1375_vm3 = vcmp.ge.f32.partialorder %v1356_v39, 0.0  ;;  %v1394_v37 = vmul.f32 0.2, %v1356_v39  ;;  %1756 = vst [vmem:[%s2358_s3 + $0x38] sm:$0xff] %v1743_v11  }
 0x15a   : > { %v1415_v53 = vsel %vm1377_vm5, %v1358_v48, %v1396_v52 }
 0x15b   : > { %vm1376_vm4 = vcmp.ge.f32.partialorder %v1357_v49, 0.0  ;;  %v1395_v2 = vmul.f32 0.2, %v1357_v49  ;;  %v1413_v29 = vsel %vm1375_vm3, %v1356_v39, %v1394_v37  ;;  %v1704_v54 = vpack.c.bf16 %v1415_v53, %v1415_v53 }
 0x15d   : > { %v1414_v50 = vsel %vm1376_vm4, %v1357_v49, %v1395_v2  ;;  %1511 = vst [vmem:[%s2358_s3 + $0x48] sm:$0xf] %v1704_v54 }
 0x15e   : > { %v1748_v51 = vpack.c.bf16 %v1414_v50, %v1413_v29 }
 0x160   : > { %1757 = vst [vmem:[%s2358_s3 + $0x40] sm:$0xff] %v1748_v51  }
 0x161 PF: > { %s13_s12 = sadd.s32 1, %s2028_s12  }
 0x162   : > { %p10_p6 = scmp.ge.s32.totalorder %s13_s12, 6  }
 0x164   :  { %12 = sbr.rel (!%p10_p6) target bundleno = 1 (0x1), region = 72 }

// kernel: tile.7
= control target key start
LH: loop header
LB: loop body
LE: loop exit
PB: predicated region body
PF: predicated region fallthrough
CT: control target
= control target key end

     0   :  { %s308_s0 = inlined_call_operand.vmem [shape: f32[2,1,1,5,1,5,256], index: 0, kind: input, shape index: {}]   ;;  %s309_s1 = inlined_call_operand.vmem [shape: f32[50,256], index: 1, kind: output, shape index: {}]  }
   0x1   :  { %v2_v0 = vld [vmem:[%s308_s0] sm:$0x1f]   ;;  %v100_v1 = vld [vmem:[%s308_s0 + $0x8] sm:$0x1f]   ;;  %v102_v2 = vld [vmem:[%s308_s0 + $0x10] sm:$0x1f]  }
   0x2   :  { %3 = vst [vmem:[%s309_s1] sm:$0x1f] %v2_v0   ;;  %101 = vst [vmem:[%s309_s1 + $0x8] sm:$0x1f] %v100_v1   ;;  %v105_v3 = vld [vmem:[%s308_s0 + $0x18] sm:$0x1f]  }
   0x3   :  { %103 = vst [vmem:[%s309_s1 + $0x5] sm:$0x7] %v102_v2   ;;  %104 = vst [vmem:[%s309_s1 + $0xd] sm:$0x18] %v102_v2   ;;  %v108_v4 = vld [vmem:[%s308_s0 + $0x20] sm:$0x1f]  }
   0x4   :  { %v110_v5 = vld [vmem:[%s308_s0 + $0x28] sm:$0x1f]   ;;  %106 = vst [vmem:[%s309_s1 + $0xd] sm:$0x7] %v105_v3   ;;  %107 = vst [vmem:[%s309_s1 + $0x15] sm:$0x18] %v105_v3  }
   0x5   :  { %109 = vst [vmem:[%s309_s1 + $0x12] sm:$0x1f] %v108_v4   ;;  %111 = vst [vmem:[%s309_s1 + $0x1a] sm:$0x1f] %v110_v5   ;;  %v112_v6 = vld [vmem:[%s308_s0 + $0x30] sm:$0x1f]  }
   0x6   :  { %v115_v7 = vld [vmem:[%s308_s0 + $0x38] sm:$0x1f]   ;;  %v118_v8 = vld [vmem:[%s308_s0 + $0x40] sm:$0x1f]   ;;  %114 = vst [vmem:[%s309_s1 + $0x1f] sm:$0x1c] %v112_v6  }
   0x7   :  { %113 = vst [vmem:[%s309_s1 + $0x17] ss:$9 sm:$0x3] %v112_v6   ;;  %116 = vst [vmem:[%s309_s1 + $0x1f] ss:$9 sm:$0x3] %v115_v7  }
   0x8   :  { %117 = vst [vmem:[%s309_s1 + $0x27] sm:$0x1c] %v115_v7   ;;  %119 = vst [vmem:[%s309_s1 + $0x24] sm:$0xf] %v118_v8   ;;  %v121_v9 = vld [vmem:[%s308_s0 + $0x48] sm:$0x1f]  }
   0x9   :  { %120 = vst [vmem:[%s309_s1 + $0x2c] sm:$0x10] %v118_v8   ;;  %v124_v10 = vld [vmem:[%s308_s0 + $0x50] sm:$0x1f]   ;;  %v126_v11 = vld [vmem:[%s308_s0 + $0x58] sm:$0x1f]  }
   0xa   :  { %122 = vst [vmem:[%s309_s1 + $0x2c] sm:$0xf] %v121_v9   ;;  %123 = vst [vmem:[%s309_s1 + $0x34] sm:$0x10] %v121_v9   ;;  %v128_v12 = vld [vmem:[%s308_s0 + $0x60] sm:$0x1f]  }
   0xb   :  { %125 = vst [vmem:[%s309_s1 + $0x31] sm:$0x1f] %v124_v10   ;;  %127 = vst [vmem:[%s309_s1 + $0x39] sm:$0x1f] %v126_v11   ;;  %v131_v13 = vld [vmem:[%s308_s0 + $0x68] sm:$0x1f]  }
   0xc   :  { %v134_v14 = vld [vmem:[%s308_s0 + $0x70] sm:$0x1f]   ;;  %129 = vst [vmem:[%s309_s1 + $0x36] sm:$0x3] %v128_v12   ;;  %130 = vst [vmem:[%s309_s1 + $0x3e] sm:$0x1c] %v128_v12  }
   0xd   :  { %132 = vst [vmem:[%s309_s1 + $0x3e] sm:$0x3] %v131_v13   ;;  %133 = vst [vmem:[%s309_s1 + $0x46] sm:$0x1c] %v131_v13   ;;  %v136_v15 = vld [vmem:[%s308_s0 + $0x78] sm:$0x1f]  }
   0xe   :  { %135 = vst [vmem:[%s309_s1 + $0x43] sm:$0x1f] %v134_v14   ;;  %v138_v16 = vld [vmem:[%s308_s0 + $0x80] sm:$0x1f]   ;;  %v140_v17 = vld [vmem:[%s308_s0 + $0x88] sm:$0x1f]  }
   0xf   :  { %137 = vst [vmem:[%s309_s1 + $0x4b] sm:$0x1f] %v136_v15   ;;  %139 = vst [vmem:[%s309_s1 + $0x50] sm:$0x1f] %v138_v16   ;;  %v142_v18 = vld [vmem:[%s308_s0 + $0x90] sm:$0x1f]  }
  0x10   :  { %141 = vst [vmem:[%s309_s1 + $0x58] sm:$0x1f] %v140_v17   ;;  %v145_v19 = vld [vmem:[%s308_s0 + $0x98] sm:$0x1f]   ;;  %143 = vst [vmem:[%s309_s1 + $0x55] sm:$0x7] %v142_v18  }
  0x11   :  { %144 = vst [vmem:[%s309_s1 + $0x5d] sm:$0x18] %v142_v18   ;;  %146 = vst [vmem:[%s309_s1 + $0x5d] sm:$0x7] %v145_v19  }
  0x12   :  { %147 = vst [vmem:[%s309_s1 + $0x65] sm:$0x18] %v145_v19  }

// kernel: discriminator_forward.3
= control target key start
LH: loop header
LB: loop body
LE: loop exit
PB: predicated region body
PF: predicated region fallthrough
CT: control target
= control target key end

     0   :  { %s5358_s12 = smov 0   ;;  %s6798_s0 = inlined_call_operand.vmem [shape: bf16[4,578,3], index: 0, kind: input, shape index: {}]   ;;  %s6799_s1 = inlined_call_operand.vmem [shape: bf16[4,4,3,64], index: 1, kind: input, shape index: {}]   ;;  %s6800_s2 = inlined_call_operand.vmem [shape: f32[1,64], index: 2, kind: input, shape index: {}]   ;;  %s6801_s3 = inlined_call_operand.vmem [shape: bf16[560,64], index: 3, kind: output, shape index: {}]  }
   0x1 LB: > { %s5364_s13 = sadd.s32 4294967295, %s5332_s12   ;;  %p4162_p0 = scmp.ge.s32.totalorder %s5332_s12, 1  ;;  %s5332_s12 = sphi %s5358_s12, %s13_s12  }
   0x2   : > { %p142_p1 = scmp.lt.s32.totalorder %s5332_s12, 5 }
   0x4   : > { %p143_p2 = pnand %p4162_p0, %p142_p1 }
   0x6   : > { %146 = sbr.rel (%p143_p2) target bundleno = 907 (0x38b), region = 32 }
   0xd   : > { %p166_p3 = scmp.lt.s32.totalorder %s5364_s13, 3  ;;  %p4166_p4 = scmp.ne.s32.totalorder %s5364_s13, 0 }
   0xe   : > { %vm181_vm0 = vcmask (!%p4166_p4), 523264   ;;  %v5334_v0 = vmov (!%p4166_p4), 0.0  }
   0xf   : > { %s167_s14 = scalar_select %p166_p3, %s5364_s13, 3 }
  0x10   : > { %180 = sbr.rel (%p4166_p4) target bundleno = 51 (0x33), region = 36  ;;  %182 = vst.msk [vmem:[#allocation2] sm:$0xff] (!%p4166_p4), %vm181_vm0, %v5334_v0  ;;  %183 = vst.msk [vmem:[#allocation2 + $0x8] sm:$0xff] (!%p4166_p4), %vm181_vm0, %v5334_v0 }
  0x11   : > { %s5240_s15 = smul.u32 292, %s167_s14  ;;  %s4457_s16 = sshll.u32 %s167_s14, 3  ;;  %184 = vst.msk [vmem:[#allocation2 + $0x10] sm:$0xff] (!%p4166_p4), %vm181_vm0, %v5334_v0  ;;  %185 = vst.msk [vmem:[#allocation2 + $0x18] sm:$0xff] (!%p4166_p4), %vm181_vm0, %v5334_v0 }
  0x12   : > { %s5373_s19 = scalar_lea.vmem %s6799_s1, %s4457_s16  ;;  %186 = vst.msk [vmem:[#allocation2 + $0x20] sm:$0xff] (!%p4166_p4), %vm181_vm0, %v5334_v0  ;;  %187 = vst.msk [vmem:[#allocation2 + $0x28] sm:$0xff] (!%p4166_p4), %vm181_vm0, %v5334_v0 }
  0x13   : > { %s5378_s22 = scalar_lea.vmem %s6798_s0, %s5240_s15  ;;  %188 = vst.msk [vmem:[#allocation2 + $0x30] sm:$0xff] (!%p4166_p4), %vm181_vm0, %v5334_v0  ;;  %189 = vst.msk [vmem:[#allocation2 + $0x38] sm:$0xff] (!%p4166_p4), %vm181_vm0, %v5334_v0 }
  0x14   : > { %190 = vst.msk [vmem:[#allocation2 + $0x40] sm:$0xff] (!%p4166_p4), %vm181_vm0, %v5334_v0  ;;  %191 = vst.msk [vmem:[#allocation2 + $0x48] sm:$0xff] (!%p4166_p4), %vm181_vm0, %v5334_v0 }
  0x15   : > { %192 = vst.msk [vmem:[#allocation2 + $0x50] sm:$0xff] (!%p4166_p4), %vm181_vm0, %v5334_v0  ;;  %193 = vst.msk [vmem:[#allocation2 + $0x58] sm:$0xff] (!%p4166_p4), %vm181_vm0, %v5334_v0 }
  0x16   : > { %194 = vst.msk [vmem:[#allocation2 + $0x60] sm:$0xff] (!%p4166_p4), %vm181_vm0, %v5334_v0  ;;  %195 = vst.msk [vmem:[#allocation2 + $0x68] sm:$0xff] (!%p4166_p4), %vm181_vm0, %v5334_v0 }
  0x17   : > { %196 = vst.msk [vmem:[#allocation2 + $0x70] sm:$0xff] %vm181_vm0, %v5334_v0  ;;  %197 = vst.msk [vmem:[#allocation2 + $0x78] sm:$0xff] %vm181_vm0, %v5334_v0 }
  0x18   : > { %198 = vst.msk [vmem:[#allocation2 + $0x80] sm:$0xff] %vm181_vm0, %v5334_v0  ;;  %199 = vst.msk [vmem:[#allocation2 + $0x88] sm:$0xff] %vm181_vm0, %v5334_v0 }
  0x19   : > { %200 = vst.msk [vmem:[#allocation2 + $0x90] sm:$0xff] %vm181_vm0, %v5334_v0  ;;  %201 = vst.msk [vmem:[#allocation2 + $0x98] sm:$0xff] %vm181_vm0, %v5334_v0 }
  0x1a   : > { %202 = vst.msk [vmem:[#allocation2 + $0xa0] sm:$0xff] %vm181_vm0, %v5334_v0  ;;  %203 = vst.msk [vmem:[#allocation2 + $0xa8] sm:$0xff] %vm181_vm0, %v5334_v0 }
  0x1b   : > { %204 = vst.msk [vmem:[#allocation2 + $0xb0] sm:$0xff] %vm181_vm0, %v5334_v0  ;;  %205 = vst.msk [vmem:[#allocation2 + $0xb8] sm:$0xff] %vm181_vm0, %v5334_v0 }
  0x1c   : > { %206 = vst.msk [vmem:[#allocation2 + $0xc0] sm:$0xff] %vm181_vm0, %v5334_v0  ;;  %207 = vst.msk [vmem:[#allocation2 + $0xc8] sm:$0xff] %vm181_vm0, %v5334_v0 }
  0x1d   : > { %208 = vst.msk [vmem:[#allocation2 + $0xd0] sm:$0xff] %vm181_vm0, %v5334_v0  ;;  %209 = vst.msk [vmem:[#allocation2 + $0xd8] sm:$0xff] %vm181_vm0, %v5334_v0 }
  0x1e   : > { %210 = vst.msk [vmem:[#allocation2 + $0xe0] sm:$0xff] %vm181_vm0, %v5334_v0  ;;  %211 = vst.msk [vmem:[#allocation2 + $0xe8] sm:$0xff] %vm181_vm0, %v5334_v0 }
  0x1f   : > { %212 = vst.msk [vmem:[#allocation2 + $0xf0] sm:$0xff] %vm181_vm0, %v5334_v0  ;;  %213 = vst.msk [vmem:[#allocation2 + $0xf8] sm:$0xff] %vm181_vm0, %v5334_v0 }
  0x20   : > { %214 = vst.msk [vmem:[#allocation2 + $0x100] sm:$0xff] %vm181_vm0, %v5334_v0  ;;  %215 = vst.msk [vmem:[#allocation2 + $0x108] sm:$0xff] %vm181_vm0, %v5334_v0 }
  0x21   : > { %216 = vst.msk [vmem:[#allocation2 + $0x110] sm:$0xff] %vm181_vm0, %v5334_v0  ;;  %217 = vst.msk [vmem:[#allocation2 + $0x118] sm:$0xff] %vm181_vm0, %v5334_v0 }
  0x22   : > { %218 = vst.msk [vmem:[#allocation2 + $0x120] sm:$0xff] %vm181_vm0, %v5334_v0  ;;  %219 = vst.msk [vmem:[#allocation2 + $0x128] sm:$0xff] %vm181_vm0, %v5334_v0 }
  0x23   : > { %220 = vst.msk [vmem:[#allocation2 + $0x130] sm:$0xff] %vm181_vm0, %v5334_v0  ;;  %221 = vst.msk [vmem:[#allocation2 + $0x138] sm:$0xff] %vm181_vm0, %v5334_v0 }
  0x24   : > { %222 = vst.msk [vmem:[#allocation2 + $0x140] sm:$0xff] %vm181_vm0, %v5334_v0  ;;  %223 = vst.msk [vmem:[#allocation2 + $0x148] sm:$0xff] %vm181_vm0, %v5334_v0 }
  0x25   : > { %224 = vst.msk [vmem:[#allocation2 + $0x150] sm:$0xff] %vm181_vm0, %v5334_v0  ;;  %225 = vst.msk [vmem:[#allocation2 + $0x158] sm:$0xff] %vm181_vm0, %v5334_v0 }
  0x26   : > { %226 = vst.msk [vmem:[#allocation2 + $0x160] sm:$0xff] %vm181_vm0, %v5334_v0  ;;  %227 = vst.msk [vmem:[#allocation2 + $0x168] sm:$0xff] %vm181_vm0, %v5334_v0 }
  0x27   : > { %228 = vst.msk [vmem:[#allocation2 + $0x170] sm:$0xff] %vm181_vm0, %v5334_v0  ;;  %229 = vst.msk [vmem:[#allocation2 + $0x178] sm:$0xff] %vm181_vm0, %v5334_v0 }
  0x28   : > { %230 = vst.msk [vmem:[#allocation2 + $0x180] sm:$0xff] %vm181_vm0, %v5334_v0  ;;  %231 = vst.msk [vmem:[#allocation2 + $0x188] sm:$0xff] %vm181_vm0, %v5334_v0 }
  0x29   : > { %232 = vst.msk [vmem:[#allocation2 + $0x190] sm:$0xff] %vm181_vm0, %v5334_v0  ;;  %233 = vst.msk [vmem:[#allocation2 + $0x198] sm:$0xff] %vm181_vm0, %v5334_v0 }
  0x2a   : > { %234 = vst.msk [vmem:[#allocation2 + $0x1a0] sm:$0xff] %vm181_vm0, %v5334_v0  ;;  %235 = vst.msk [vmem:[#allocation2 + $0x1a8] sm:$0xff] %vm181_vm0, %v5334_v0 }
  0x2b   : > { %236 = vst.msk [vmem:[#allocation2 + $0x1b0] sm:$0xff] %vm181_vm0, %v5334_v0  ;;  %237 = vst.msk [vmem:[#allocation2 + $0x1b8] sm:$0xff] %vm181_vm0, %v5334_v0 }
  0x2c   : > { %238 = vst.msk [vmem:[#allocation2 + $0x1c0] sm:$0xff] %vm181_vm0, %v5334_v0  ;;  %239 = vst.msk [vmem:[#allocation2 + $0x1c8] sm:$0xff] %vm181_vm0, %v5334_v0 }
  0x2d   : > { %240 = vst.msk [vmem:[#allocation2 + $0x1d0] sm:$0xff] %vm181_vm0, %v5334_v0  ;;  %241 = vst.msk [vmem:[#allocation2 + $0x1d8] sm:$0xff] %vm181_vm0, %v5334_v0 }
  0x2e   : > { %242 = vst.msk [vmem:[#allocation2 + $0x1e0] sm:$0xff] %vm181_vm0, %v5334_v0  ;;  %243 = vst.msk [vmem:[#allocation2 + $0x1e8] sm:$0xff] %vm181_vm0, %v5334_v0 }
  0x2f   : > { %244 = vst.msk [vmem:[#allocation2 + $0x1f0] sm:$0xff] %vm181_vm0, %v5334_v0  ;;  %245 = vst.msk [vmem:[#allocation2 + $0x1f8] sm:$0xff] %vm181_vm0, %v5334_v0 }
  0x30   : > { %246 = vst.msk [vmem:[#allocation2 + $0x200] sm:$0xff] %vm181_vm0, %v5334_v0  ;;  %247 = vst.msk [vmem:[#allocation2 + $0x208] sm:$0xff] %vm181_vm0, %v5334_v0 }
  0x31   : > { %248 = vst.msk [vmem:[#allocation2 + $0x210] sm:$0xff] %vm181_vm0, %v5334_v0  ;;  %249 = vst.msk [vmem:[#allocation2 + $0x218] sm:$0xff] %vm181_vm0, %v5334_v0 }
  0x32   : > { %250 = vst.msk [vmem:[#allocation2 + $0x220] sm:$0xff] %vm181_vm0, %v5334_v0  ;;  %251 = vst.msk [vmem:[#allocation2 + $0x228] sm:$0xff] %vm181_vm0, %v5334_v0 }
  0x33 PF: > { %v4167_v1 = vld [vmem:[%s5373_s19 + $0x2] sm:$0x3]  ;;  %vm895_vm1 = vcmask 1040384   ;;  %vm896_vm2 = vcmask 1041408   ;;  %v6802_v2 = vmov 0.0   ;;  %v5336_v3 = vmov 65535  }
  0x34   : > { %4672 = vmatprep.subr.bf16.mxu0 %v6802_v2  ;;  %4814 = vmatprep.subr.bf16.mxu1 %v6802_v2  ;;  %v897_v4 = vsel %vm895_vm1, 4294967295, %v5336_v3  ;;  %v322_v5 = vld [vmem:[%s5373_s19] sm:$0x3]  ;;  %vm5337_vm3 = vmmov 0   ;;  %v5254_v8 = vld [vmem:[%s5378_s22 + $0x8] sm:$0xff]   ;;  %vm789_vm4 = vcmask 23552  }
  0x35   : > { %v898_v6 = vsel %vm896_vm2, %v897_v4, 0  ;;  %4816 = vmatprep.mubr.msk.bf16.mxu1 %vm5337_vm3, %v6802_v2  ;;  %4674 = vmatprep.mubr.msk.bf16.mxu0 %vm5337_vm3, %v6802_v2  ;;  %v5253_v7 = vld [vmem:[%s5378_s22] sm:$0xff]   ;;  %v513_v13 = vshll.u32 %v5254_v8, 16  ;;  %v5255_v15 = vld [vmem:[%s5378_s22 + $0x10] sm:$0xff]   ;;  %vm504_vm5 = vsmask.f32 7424 }
  0x36   : > { %v900_v9 = vand.u32 %v4167_v1, %v898_v6  ;;  %v1286_v10 = vand.u32 %v898_v6, %v322_v5  ;;  %v506_v11 = vshrl.u32 %v5253_v7, 16  ;;  %v508_v12 = vshll.u32 %v5253_v7, 16  ;;  %v4274_v14 = vld [vmem:[%s5373_s19 + $0x4] sm:$0x3]  ;;  %v4346_v16 = vld [vmem:[%s5373_s19 + $0x6] sm:$0x3] }
  0x37   : > { %v515_v18 = vrot.slane %v513_v13, 1  ;;  %v2811_v19 = vand.u32 %v4346_v16, %v898_v6  ;;  %v2242_v21 = vand.u32 %v4274_v14, %v898_v6  ;;  %v517_v22 = vshrl.u32 %v5254_v8, 16  ;;  %v5256_v27 = vld [vmem:[%s5378_s22 + $0x18] sm:$0xff]   ;;  %v5257_v33 = vld [vmem:[%s5378_s22 + $0x20] sm:$0xff]   ;;  %v5258_v39 = vld [vmem:[%s5378_s22 + $0x28] sm:$0xff]   ;;  %p4383_p5 = scmp.ne.s32.totalorder %s5364_s13, 3 }
  0x38   : > { %4673 = vmatpush3.bf16.msra.mxu0 %v900_v9  ;;  %4815 = vmatpush3.bf16.msra.mxu1 %v1286_v10  ;;  %v510_v17 = vrot.slane %v508_v12, 1  ;;  %v521_v23 = vshll.u32 %v5255_v15, 16  ;;  %v525_v29 = vshrl.u32 %v5255_v15, 16  ;;  %v529_v30 = vshll.u32 %v5256_v27, 16  ;;  %v5259_v45 = vld [vmem:[%s5378_s22 + $0x30] sm:$0xff]   ;;  %v5260_v51 = vld [vmem:[%s5378_s22 + $0x38] sm:$0xff]  }
  0x39   : > { %4956 = vmatprep.subr.bf16.mxu0 %v6802_v2  ;;  %5098 = vmatprep.subr.bf16.mxu1 %v6802_v2  ;;  %v519_v25 = vor.u32 %v517_v22, %v515_v18  ;;  %v533_v35 = vshrl.u32 %v5256_v27, 16  ;;  %v537_v36 = vshll.u32 %v5257_v33, 16  ;;  %v541_v41 = vshrl.u32 %v5257_v33, 16  ;;  %v5261_v57 = vld [vmem:[%s5378_s22 + $0x40] sm:$0xff]   ;;  %v5262_v63 = vld [vmem:[%s5378_s22 + $0x48] sm:$0xff]   ;;  %v5263_v6 = vld [vmem:[%s5378_s22 + $0x50] sm:$0xff]  }
  0x3a   : > { %v511_v20 = vor.u32 %v510_v17, %v506_v11  ;;  %v523_v26 = vrot.slane %v521_v23, 1  ;;  %v531_v32 = vrot.slane %v529_v30, 1  ;;  %v545_v42 = vshll.u32 %v5258_v39, 16  ;;  %v5264_v12 = vld [vmem:[%s5378_s22 + $0x58] sm:$0xff]   ;;  %v5267_v30 = vld [vmem:[%s5378_s22 + $0x70] sm:$0xff]  }
  0x3b   : > { %4817 = vmatmul.mubr.msk.bf16.vlgmr.msra.gmra.mrb[0].mxu1 %vm789_vm4, %v5253_v7  ;;  %v539_v38 = vrot.slane %v537_v36, 1  ;;  %v549_v47 = vshrl.u32 %v5258_v39, 16  ;;  %v553_v48 = vshll.u32 %v5259_v45, 16  ;;  %v557_v53 = vshrl.u32 %v5259_v45, 16  ;;  %v5268_v36 = vld [vmem:[%s5378_s22 + $0x78] sm:$0xff]  }
  0x3c   : > { %5099 = vmatpush3.bf16.msra.mxu1 %v2811_v19  ;;  %4820 = vmatprep.mubr.msk.bf16.mxu1 %vm5337_vm3, %v6802_v2  ;;  %v516_v24 = vsel %vm504_vm5, %v511_v20, %v515_v18  ;;  %v524_v28 = vsel %vm504_vm5, %v519_v25, %v523_v26  ;;  %v527_v31 = vor.u32 %v525_v29, %v523_v26  ;;  %v547_v44 = vrot.slane %v545_v42, 1  ;;  %v5265_v18 = vld [vmem:[%s5378_s22 + $0x60] sm:$0xff]  }
  0x3d   : > { %4675 = vmatmul.mubr.msk.bf16.vlgmr.msra.gmra.mrb[0].mxu0 %vm789_vm4, %v516_v24  ;;  %v535_v37 = vor.u32 %v533_v35, %v531_v32  ;;  %v543_v43 = vor.u32 %v541_v41, %v539_v38  ;;  %v555_v50 = vrot.slane %v553_v48, 1  ;;  %v561_v54 = vshll.u32 %v5260_v51, 16  ;;  %v5266_v24 = vld [vmem:[%s5378_s22 + $0x68] sm:$0xff]   ;;  %v5269_v42 = vld [vmem:[%s5378_s22 + $0x80] sm:$0xff]  }
  0x3e   : > { %4957 = vmatpush3.bf16.msra.mxu0 %v2242_v21  ;;  %4678 = vmatprep.mubr.msk.bf16.mxu0 %vm5337_vm3, %v6802_v2  ;;  %v532_v34 = vsel %vm504_vm5, %v527_v31, %v531_v32  ;;  %v551_v49 = vor.u32 %v549_v47, %v547_v44  ;;  %v565_v59 = vshrl.u32 %v5260_v51, 16  ;;  %v569_v60 = vshll.u32 %v5261_v57, 16  ;;  %v5270_v48 = vld [vmem:[%s5378_s22 + $0x88] sm:$0xff]  }
  0x3f   : > { %v540_v40 = vsel %vm504_vm5, %v535_v37, %v539_v38  ;;  %v548_v46 = vsel %vm504_vm5, %v543_v43, %v547_v44  ;;  %v559_v55 = vor.u32 %v557_v53, %v555_v50  ;;  %v563_v56 = vrot.slane %v561_v54, 1  ;;  %v5271_v54 = vld [vmem:[%s5378_s22 + $0x90] sm:$0xff]  }
  0x40   : > { %v556_v52 = vsel %vm504_vm5, %v551_v49, %v555_v50  ;;  %v571_v62 = vrot.slane %v569_v60, 1  ;;  %v573_v1 = vshrl.u32 %v5261_v57, 16  ;;  %v577_v3 = vshll.u32 %v5262_v63, 16  ;;  %v5272_v60 = vld [vmem:[%s5378_s22 + $0x98] sm:$0xff]  }
  0x41   : > { %v564_v58 = vsel %vm504_vm5, %v559_v55, %v563_v56  ;;  %v567_v61 = vor.u32 %v565_v59, %v563_v56  ;;  %v585_v9 = vshll.u32 %v5263_v6, 16  ;;  %v589_v14 = vshrl.u32 %v5263_v6, 16 }
  0x42   : > { %v575_v4 = vor.u32 %v573_v1, %v571_v62  ;;  %v579_v5 = vrot.slane %v577_v3, 1  ;;  %v597_v20 = vshrl.u32 %v5264_v12, 16  ;;  %v601_v21 = vshll.u32 %v5265_v18, 16  ;;  %v5273_v3 = vld [vmem:[%s5378_s22 + $0xa0] sm:$0xff]  }
  0x43   : > { %4821 = vmatmul.mubr.msk.bf16.gmra.mrb[4].mxu1 %vm789_vm4, %v5254_v8  ;;  %v572_v0 = vsel %vm504_vm5, %v567_v61, %v571_v62  ;;  %v581_v8 = vshrl.u32 %v5262_v63, 16  ;;  %v587_v11 = vrot.slane %v585_v9, 1  ;;  %v605_v26 = vshrl.u32 %v5265_v18, 16  ;;  %v5274_v9 = vld [vmem:[%s5378_s22 + $0xa8] sm:$0xff]  }
  0x44   : > { %4824 = vmatprep.mubr.msk.bf16.mxu1 %vm5337_vm3, %v6802_v2  ;;  %v580_v7 = vsel %vm504_vm5, %v575_v4, %v579_v5  ;;  %v603_v23 = vrot.slane %v601_v21, 1  ;;  %v613_v32 = vshrl.u32 %v5266_v24, 16  ;;  %v621_v38 = vshrl.u32 %v5267_v30, 16  ;;  %v5276_v21 = vld [vmem:[%s5378_s22 + $0xb8] sm:$0xff]  }
  0x45   : > { %4679 = vmatmul.mubr.msk.bf16.gmra.mrb[4].mxu0 %vm789_vm4, %v524_v28  ;;  %v583_v10 = vor.u32 %v581_v8, %v579_v5  ;;  %v591_v16 = vor.u32 %v589_v14, %v587_v11  ;;  %v629_v44 = vshrl.u32 %v5268_v36, 16  ;;  %v637_v50 = vshrl.u32 %v5269_v42, 16 }
  0x46   : > { %4682 = vmatprep.mubr.msk.bf16.mxu0 %vm5337_vm3, %v6802_v2  ;;  %v607_v28 = vor.u32 %v605_v26, %v603_v23  ;;  %v645_v56 = vshrl.u32 %v5270_v48, 16  ;;  %v653_v62 = vshrl.u32 %v5271_v54, 16  ;;  %v661_v5 = vshrl.u32 %v5272_v60, 16 }
  0x47   : > { %v588_v13 = vsel %vm504_vm5, %v583_v10, %v587_v11  ;;  %v669_v11 = vshrl.u32 %v5273_v3, 16  ;;  %vm2633_vm6 = vcmask 1046528   ;;  %vm3336_vm7 = vcmask 523264  }
  0x48   : > { %vm4048_vm8 = vcmask (!%p4383_p5), 519168  }
  0x4b   : > { %4825 = vmatmul.mubr.msk.bf16.gmra.mrb[8].mxu1 %vm789_vm4, %v5255_v15  ;;  %v593_v15 = vshll.u32 %v5264_v12, 16 }
  0x4c   : > { %4828 = vmatprep.mubr.msk.bf16.mxu1 %vm5337_vm3, %v6802_v2 }
  0x4d   : > { %4683 = vmatmul.mubr.msk.bf16.gmra.mrb[8].mxu0 %vm789_vm4, %v532_v34  ;;  %v595_v17 = vrot.slane %v593_v15, 1  ;;  %v5275_v15 = vld [vmem:[%s5378_s22 + $0xb0] sm:$0xff]  }
  0x4e   : > { %4686 = vmatprep.mubr.msk.bf16.mxu0 %vm5337_vm3, %v6802_v2 }
  0x4f   : > { %v596_v19 = vsel %vm504_vm5, %v591_v16, %v595_v17  ;;  %v599_v22 = vor.u32 %v597_v20, %v595_v17  ;;  %v677_v17 = vshrl.u32 %v5274_v9, 16 }
  0x51   : > { %v604_v25 = vsel %vm504_vm5, %v599_v22, %v603_v23  ;;  %v685_v23 = vshrl.u32 %v5275_v15, 16 }
  0x53   : > { %4829 = vmatmul.mubr.msk.bf16.gmra.mrb[12].mxu1 %vm789_vm4, %v5256_v27  ;;  %v609_v27 = vshll.u32 %v5266_v24, 16 }
  0x54   : > { %4832 = vmatprep.mubr.msk.bf16.mxu1 %vm5337_vm3, %v6802_v2 }
  0x55   : > { %4687 = vmatmul.mubr.msk.bf16.gmra.mrb[12].mxu0 %vm789_vm4, %v540_v40  ;;  %v611_v29 = vrot.slane %v609_v27, 1  ;;  %v5277_v27 = vld [vmem:[%s5378_s22 + $0xc0] sm:$0xff]  }
  0x56   : > { %4690 = vmatprep.mubr.msk.bf16.mxu0 %vm5337_vm3, %v6802_v2 }
  0x57   : > { %v612_v31 = vsel %vm504_vm5, %v607_v28, %v611_v29  ;;  %v615_v34 = vor.u32 %v613_v32, %v611_v29  ;;  %v693_v29 = vshrl.u32 %v5276_v21, 16 }
  0x5b   : > { %4833 = vmatmul.mubr.msk.bf16.gmra.mrb[16].mxu1 %vm789_vm4, %v5257_v33  ;;  %v617_v33 = vshll.u32 %v5267_v30, 16 }
  0x5c   : > { %4836 = vmatprep.mubr.msk.bf16.mxu1 %vm5337_vm3, %v6802_v2 }
  0x5d   : > { %4691 = vmatmul.mubr.msk.bf16.gmra.mrb[16].mxu0 %vm789_vm4, %v548_v46  ;;  %v619_v35 = vrot.slane %v617_v33, 1  ;;  %v5278_v33 = vld [vmem:[%s5378_s22 + $0xc8] sm:$0xff]  }
  0x5e   : > { %4694 = vmatprep.mubr.msk.bf16.mxu0 %vm5337_vm3, %v6802_v2 }
  0x5f   : > { %v620_v37 = vsel %vm504_vm5, %v615_v34, %v619_v35  ;;  %v623_v40 = vor.u32 %v621_v38, %v619_v35  ;;  %v701_v35 = vshrl.u32 %v5277_v27, 16 }
  0x63   : > { %4837 = vmatmul.mubr.msk.bf16.gmra.mrb[20].mxu1 %vm789_vm4, %v5258_v39  ;;  %v625_v39 = vshll.u32 %v5268_v36, 16 }
  0x64   : > { %4840 = vmatprep.mubr.msk.bf16.mxu1 %vm5337_vm3, %v6802_v2 }
  0x65   : > { %4695 = vmatmul.mubr.msk.bf16.gmra.mrb[20].mxu0 %vm789_vm4, %v556_v52  ;;  %v627_v41 = vrot.slane %v625_v39, 1  ;;  %v5279_v39 = vld [vmem:[%s5378_s22 + $0xd0] sm:$0xff]  }
  0x66   : > { %4698 = vmatprep.mubr.msk.bf16.mxu0 %vm5337_vm3, %v6802_v2 }
  0x67   : > { %v628_v43 = vsel %vm504_vm5, %v623_v40, %v627_v41  ;;  %v631_v46 = vor.u32 %v629_v44, %v627_v41  ;;  %v709_v41 = vshrl.u32 %v5278_v33, 16 }
  0x6b   : > { %4841 = vmatmul.mubr.msk.bf16.gmra.mrb[24].mxu1 %vm789_vm4, %v5259_v45  ;;  %v633_v45 = vshll.u32 %v5269_v42, 16 }
  0x6c   : > { %4844 = vmatprep.mubr.msk.bf16.mxu1 %vm5337_vm3, %v6802_v2 }
  0x6d   : > { %4699 = vmatmul.mubr.msk.bf16.gmra.mrb[24].mxu0 %vm789_vm4, %v564_v58  ;;  %v635_v47 = vrot.slane %v633_v45, 1  ;;  %v5280_v45 = vld [vmem:[%s5378_s22 + $0xd8] sm:$0xff]  }
  0x6e   : > { %4702 = vmatprep.mubr.msk.bf16.mxu0 %vm5337_vm3, %v6802_v2 }
  0x6f   : > { %v636_v49 = vsel %vm504_vm5, %v631_v46, %v635_v47  ;;  %v639_v52 = vor.u32 %v637_v50, %v635_v47  ;;  %v717_v47 = vshrl.u32 %v5279_v39, 16 }
  0x73   : > { %4845 = vmatmul.mubr.msk.bf16.gmra.mrb[28].mxu1 %vm789_vm4, %v5260_v51  ;;  %v641_v51 = vshll.u32 %v5270_v48, 16 }
  0x74   : > { %4848 = vmatprep.mubr.msk.bf16.mxu1 %vm5337_vm3, %v6802_v2 }
  0x75   : > { %4703 = vmatmul.mubr.msk.bf16.gmra.mrb[28].mxu0 %vm789_vm4, %v572_v0  ;;  %v643_v53 = vrot.slane %v641_v51, 1  ;;  %v5281_v51 = vld [vmem:[%s5378_s22 + $0xe0] sm:$0xff]  }
  0x76   : > { %4706 = vmatprep.mubr.msk.bf16.mxu0 %vm5337_vm3, %v6802_v2 }
  0x77   : > { %v644_v55 = vsel %vm504_vm5, %v639_v52, %v643_v53  ;;  %v647_v58 = vor.u32 %v645_v56, %v643_v53  ;;  %v725_v53 = vshrl.u32 %v5280_v45, 16 }
  0x7b   : > { %4849 = vmatmul.mubr.msk.bf16.gmra.mrb[32].mxu1 %vm789_vm4, %v5261_v57  ;;  %v649_v57 = vshll.u32 %v5271_v54, 16 }
  0x7c   : > { %4852 = vmatprep.mubr.msk.bf16.mxu1 %vm5337_vm3, %v6802_v2 }
  0x7d   : > { %4707 = vmatmul.mubr.msk.bf16.gmra.mrb[32].mxu0 %vm789_vm4, %v580_v7  ;;  %v651_v59 = vrot.slane %v649_v57, 1 }
  0x7e   : > { %4710 = vmatprep.mubr.msk.bf16.mxu0 %vm5337_vm3, %v6802_v2 }
  0x7f   : > { %v652_v61 = vsel %vm504_vm5, %v647_v58, %v651_v59  ;;  %v655_v0 = vor.u32 %v653_v62, %v651_v59  ;;  %v5282_v59 = vld [vmem:[%s5378_s22 + $0xe8] sm:$0xff]  }
  0x83   : > { %4853 = vmatmul.mubr.msk.bf16.gmra.mrb[36].mxu1 %vm789_vm4, %v5262_v63  ;;  %v657_v63 = vshll.u32 %v5272_v60, 16 }
  0x84   : > { %4856 = vmatprep.mubr.msk.bf16.mxu1 %vm5337_vm3, %v6802_v2 }
  0x85   : > { %4711 = vmatmul.mubr.msk.bf16.gmra.mrb[36].mxu0 %vm789_vm4, %v588_v13  ;;  %v659_v1 = vrot.slane %v657_v63, 1 }
  0x86   : > { %4714 = vmatprep.mubr.msk.bf16.mxu0 %vm5337_vm3, %v6802_v2 }
  0x87   : > { %v660_v4 = vsel %vm504_vm5, %v655_v0, %v659_v1  ;;  %v663_v7 = vor.u32 %v661_v5, %v659_v1  ;;  %v737_v5 = vshll.u32 %v5282_v59, 16 }
  0x8b   : > { %4857 = vmatmul.mubr.msk.bf16.gmra.mrb[40].mxu1 %vm789_vm4, %v5263_v6  ;;  %v665_v6 = vshll.u32 %v5273_v3, 16 }
  0x8c   : > { %4860 = vmatprep.mubr.msk.bf16.mxu1 %vm5337_vm3, %v6802_v2 }
  0x8d   : > { %4715 = vmatmul.mubr.msk.bf16.gmra.mrb[40].mxu0 %vm789_vm4, %v596_v19  ;;  %v667_v8 = vrot.slane %v665_v6, 1 }
  0x8e   : > { %4718 = vmatprep.mubr.msk.bf16.mxu0 %vm5337_vm3, %v6802_v2 }
  0x8f   : > { %v668_v10 = vsel %vm504_vm5, %v663_v7, %v667_v8  ;;  %v671_v13 = vor.u32 %v669_v11, %v667_v8  ;;  %v739_v11 = vrot.slane %v737_v5, 1 }
  0x93   : > { %4861 = vmatmul.mubr.msk.bf16.gmra.mrb[44].mxu1 %vm789_vm4, %v5264_v12  ;;  %v673_v12 = vshll.u32 %v5274_v9, 16 }
  0x94   : > { %4864 = vmatprep.mubr.msk.bf16.mxu1 %vm5337_vm3, %v6802_v2 }
  0x95   : > { %4719 = vmatmul.mubr.msk.bf16.gmra.mrb[44].mxu0 %vm789_vm4, %v604_v25  ;;  %v675_v14 = vrot.slane %v673_v12, 1  ;;  %v5283_v12 = vld [vmem:[%s5378_s22 + $0xf0] sm:$0xff]  }
  0x96   : > { %4722 = vmatprep.mubr.msk.bf16.mxu0 %vm5337_vm3, %v6802_v2 }
  0x97   : > { %v676_v16 = vsel %vm504_vm5, %v671_v13, %v675_v14  ;;  %v679_v19 = vor.u32 %v677_v17, %v675_v14 }
  0x9b   : > { %4865 = vmatmul.mubr.msk.bf16.gmra.mrb[48].mxu1 %vm789_vm4, %v5265_v18  ;;  %v681_v18 = vshll.u32 %v5275_v15, 16 }
  0x9c   : > { %4868 = vmatprep.mubr.msk.bf16.mxu1 %vm5337_vm3, %v6802_v2 }
  0x9d   : > { %4723 = vmatmul.mubr.msk.bf16.gmra.mrb[48].mxu0 %vm789_vm4, %v612_v31  ;;  %v683_v20 = vrot.slane %v681_v18, 1 }
  0x9e   : > { %4726 = vmatprep.mubr.msk.bf16.mxu0 %vm5337_vm3, %v6802_v2 }
  0x9f   : > { %v684_v22 = vsel %vm504_vm5, %v679_v19, %v683_v20  ;;  %v687_v25 = vor.u32 %v685_v23, %v683_v20  ;;  %v741_v20 = vshrl.u32 %v5282_v59, 16 }
  0xa3   : > { %4869 = vmatmul.mubr.msk.bf16.gmra.mrb[52].mxu1 %vm789_vm4, %v5266_v24  ;;  %v689_v24 = vshll.u32 %v5276_v21, 16 }
  0xa4   : > { %4872 = vmatprep.mubr.msk.bf16.mxu1 %vm5337_vm3, %v6802_v2 }
  0xa5   : > { %4727 = vmatmul.mubr.msk.bf16.gmra.mrb[52].mxu0 %vm789_vm4, %v620_v37  ;;  %v691_v26 = vrot.slane %v689_v24, 1 }
  0xa6   : > { %4730 = vmatprep.mubr.msk.bf16.mxu0 %vm5337_vm3, %v6802_v2 }
  0xa7   : > { %v692_v28 = vsel %vm504_vm5, %v687_v25, %v691_v26  ;;  %v695_v31 = vor.u32 %v693_v29, %v691_v26  ;;  %v743_v26 = vor.u32 %v741_v20, %v739_v11 }
  0xab   : > { %4873 = vmatmul.mubr.msk.bf16.gmra.mrb[56].mxu1 %vm789_vm4, %v5267_v30  ;;  %v697_v30 = vshll.u32 %v5277_v27, 16 }
  0xac   : > { %4876 = vmatprep.mubr.msk.bf16.mxu1 %vm5337_vm3, %v6802_v2 }
  0xad   : > { %4731 = vmatmul.mubr.msk.bf16.gmra.mrb[56].mxu0 %vm789_vm4, %v628_v43  ;;  %v699_v32 = vrot.slane %v697_v30, 1 }
  0xae   : > { %4734 = vmatprep.mubr.msk.bf16.mxu0 %vm5337_vm3, %v6802_v2 }
  0xaf   : > { %v700_v34 = vsel %vm504_vm5, %v695_v31, %v699_v32  ;;  %v703_v37 = vor.u32 %v701_v35, %v699_v32 }
  0xb3   : > { %4877 = vmatmul.mubr.msk.bf16.gmra.mrb[60].mxu1 %vm789_vm4, %v5268_v36  ;;  %v705_v36 = vshll.u32 %v5278_v33, 16 }
  0xb4   : > { %4880 = vmatprep.mubr.msk.bf16.mxu1 %vm5337_vm3, %v6802_v2 }
  0xb5   : > { %4735 = vmatmul.mubr.msk.bf16.gmra.mrb[60].mxu0 %vm789_vm4, %v636_v49  ;;  %v707_v38 = vrot.slane %v705_v36, 1  ;;  %v749_v36 = vshrl.u32 %v5283_v12, 16 }
  0xb6   : > { %4738 = vmatprep.mubr.msk.bf16.mxu0 %vm5337_vm3, %v6802_v2 }
  0xb7   : > { %v708_v40 = vsel %vm504_vm5, %v703_v37, %v707_v38  ;;  %v711_v43 = vor.u32 %v709_v41, %v707_v38 }
  0xbb   : > { %4881 = vmatmul.mubr.msk.bf16.gmra.mrb[64].mxu1 %vm789_vm4, %v5269_v42  ;;  %v713_v42 = vshll.u32 %v5279_v39, 16 }
  0xbc   : > { %4884 = vmatprep.mubr.msk.bf16.mxu1 %vm5337_vm3, %v6802_v2 }
  0xbd   : > { %4739 = vmatmul.mubr.msk.bf16.gmra.mrb[64].mxu0 %vm789_vm4, %v644_v55  ;;  %v715_v44 = vrot.slane %v713_v42, 1 }
  0xbe   : > { %4742 = vmatprep.mubr.msk.bf16.mxu0 %vm5337_vm3, %v6802_v2 }
  0xbf   : > { %v716_v46 = vsel %vm504_vm5, %v711_v43, %v715_v44  ;;  %v719_v49 = vor.u32 %v717_v47, %v715_v44  ;;  %v5285_v44 = vld [vmem:[%s5378_s22 + $0x100] sm:$0xff]  }
  0xc3   : > { %4885 = vmatmul.mubr.msk.bf16.gmra.mrb[68].mxu1 %vm789_vm4, %v5270_v48  ;;  %v721_v48 = vshll.u32 %v5280_v45, 16 }
  0xc4   : > { %4888 = vmatprep.mubr.msk.bf16.mxu1 %vm5337_vm3, %v6802_v2 }
  0xc5   : > { %4743 = vmatmul.mubr.msk.bf16.gmra.mrb[68].mxu0 %vm789_vm4, %v652_v61  ;;  %v723_v50 = vrot.slane %v721_v48, 1 }
  0xc6   : > { %4746 = vmatprep.mubr.msk.bf16.mxu0 %vm5337_vm3, %v6802_v2 }
  0xc7   : > { %v724_v52 = vsel %vm504_vm5, %v719_v49, %v723_v50  ;;  %v727_v57 = vor.u32 %v725_v53, %v723_v50  ;;  %v761_v53 = vshll.u32 %v5285_v44, 16 }
  0xcb   : > { %4889 = vmatmul.mubr.msk.bf16.gmra.mrb[72].mxu1 %vm789_vm4, %v5271_v54  ;;  %v729_v54 = vshll.u32 %v5281_v51, 16 }
  0xcc   : > { %4892 = vmatprep.mubr.msk.bf16.mxu1 %vm5337_vm3, %v6802_v2 }
  0xcd   : > { %4747 = vmatmul.mubr.msk.bf16.gmra.mrb[72].mxu0 %vm789_vm4, %v660_v4  ;;  %v731_v58 = vrot.slane %v729_v54, 1  ;;  %v733_v4 = vshrl.u32 %v5281_v51, 16 }
  0xce   : > { %4750 = vmatprep.mubr.msk.bf16.mxu0 %vm5337_vm3, %v6802_v2 }
  0xd3   : > { %4893 = vmatmul.mubr.msk.bf16.gmra.mrb[76].mxu1 %vm789_vm4, %v5272_v60 }
  0xd4   : > { %4896 = vmatprep.mubr.msk.bf16.mxu1 %vm5337_vm3, %v6802_v2 }
  0xd5   : > { %4751 = vmatmul.mubr.msk.bf16.gmra.mrb[76].mxu0 %vm789_vm4, %v668_v10  ;;  %v735_v10 = vor.u32 %v733_v4, %v731_v58 }
  0xd6   : > { %4754 = vmatprep.mubr.msk.bf16.mxu0 %vm5337_vm3, %v6802_v2 }
  0xd7   : > { %v740_v19 = vsel %vm504_vm5, %v735_v10, %v739_v11 }
  0xdb   : > { %4897 = vmatmul.mubr.msk.bf16.gmra.mrb[80].mxu1 %vm789_vm4, %v5273_v3  ;;  %v732_v3 = vsel %vm504_vm5, %v727_v57, %v731_v58 }
  0xdc   : > { %4900 = vmatprep.mubr.msk.bf16.mxu1 %vm5337_vm3, %v6802_v2 }
  0xdd   : > { %4755 = vmatmul.mubr.msk.bf16.gmra.mrb[80].mxu0 %vm789_vm4, %v676_v16 }
  0xde   : > { %4758 = vmatprep.mubr.msk.bf16.mxu0 %vm5337_vm3, %v6802_v2 }
  0xe3   : > { %4901 = vmatmul.mubr.msk.bf16.gmra.mrb[84].mxu1 %vm789_vm4, %v5274_v9 }
  0xe4   : > { %4904 = vmatprep.mubr.msk.bf16.mxu1 %vm5337_vm3, %v6802_v2 }
  0xe5   : > { %4759 = vmatmul.mubr.msk.bf16.gmra.mrb[84].mxu0 %vm789_vm4, %v684_v22 }
  0xe6   : > { %4762 = vmatprep.mubr.msk.bf16.mxu0 %vm5337_vm3, %v6802_v2 }
  0xeb   : > { %4905 = vmatmul.mubr.msk.bf16.gmra.mrb[88].mxu1 %vm789_vm4, %v5275_v15 }
  0xec   : > { %4908 = vmatprep.mubr.msk.bf16.mxu1 %vm5337_vm3, %v6802_v2 }
  0xed   : > { %4763 = vmatmul.mubr.msk.bf16.gmra.mrb[88].mxu0 %vm789_vm4, %v692_v28  ;;  %v5284_v28 = vld [vmem:[%s5378_s22 + $0xf8] sm:$0xff]  }
  0xee   : > { %4766 = vmatprep.mubr.msk.bf16.mxu0 %vm5337_vm3, %v6802_v2  ;;  %v753_v37 = vshll.u32 %v5284_v28, 16 }
  0xf0   : > { %v755_v43 = vrot.slane %v753_v37, 1  ;;  %v1602_v37 = vld [vmem:[%s5378_s22 + $0xc] sm:$0xf] }
  0xf3   : > { %4909 = vmatmul.mubr.msk.bf16.gmra.mrb[92].mxu1 %vm789_vm4, %v5276_v21  ;;  %v745_v21 = vshll.u32 %v5283_v12, 16 }
  0xf4   : > { %4912 = vmatprep.mubr.msk.bf16.mxu1 %vm5337_vm3, %v6802_v2 }
  0xf5   : > { %4767 = vmatmul.mubr.msk.bf16.gmra.mrb[92].mxu0 %vm789_vm4, %v700_v34 }
  0xf6   : > { %4770 = vmatprep.mubr.msk.bf16.mxu0 %vm5337_vm3, %v6802_v2 }
  0xfb   : > { %4913 = vmatmul.mubr.msk.bf16.gmra.mrb[96].mxu1 %vm789_vm4, %v5277_v27  ;;  %v747_v27 = vrot.slane %v745_v21, 1 }
  0xfc   : > { %4916 = vmatprep.mubr.msk.bf16.mxu1 %vm5337_vm3, %v6802_v2 }
  0xfd   : > { %4771 = vmatmul.mubr.msk.bf16.gmra.mrb[96].mxu0 %vm789_vm4, %v708_v40  ;;  %v748_v35 = vsel %vm504_vm5, %v743_v26, %v747_v27  ;;  %v751_v42 = vor.u32 %v749_v36, %v747_v27  ;;  %v1601_v36 = vld [vmem:[%s5378_s22 + $0x8] sm:$0xf] }
  0xfe   : > { %4774 = vmatprep.mubr.msk.bf16.mxu0 %vm5337_vm3, %v6802_v2 }
 0x103   : > { %4917 = vmatmul.mubr.msk.bf16.gmra.mrb[100].mxu1 %vm789_vm4, %v5278_v33 }
 0x104   : > { %4920 = vmatprep.mubr.msk.bf16.mxu1 %vm5337_vm3, %v6802_v2 }
 0x105   : > { %4775 = vmatmul.mubr.msk.bf16.gmra.mrb[100].mxu0 %vm789_vm4, %v716_v46 }
 0x106   : > { %4778 = vmatprep.mubr.msk.bf16.mxu0 %vm5337_vm3, %v6802_v2 }
 0x10b   : > { %4921 = vmatmul.mubr.msk.bf16.gmra.mrb[104].mxu1 %vm789_vm4, %v5279_v39 }
 0x10c   : > { %4924 = vmatprep.mubr.msk.bf16.mxu1 %vm5337_vm3, %v6802_v2 }
 0x10d   : > { %4779 = vmatmul.mubr.msk.bf16.gmra.mrb[104].mxu0 %vm789_vm4, %v724_v52  ;;  %v757_v52 = vshrl.u32 %v5284_v28, 16 }
 0x10e   : > { %v1322_v55 = vpop.f32.mrb[0].mxu1  ;;  %4782 = vmatprep.mubr.msk.bf16.mxu0 %vm5337_vm3, %v6802_v2 }
 0x10f   : > { %v4818_v56 = vpop.f32.mrb[1].mxu1  ;;  %v759_v58 = vor.u32 %v757_v52, %v755_v43 }
 0x110   : > { %v1325_v60 = vpop.f32.mrb[2].mxu1  ;;  %v936_v61 = vpop.f32.mrb[0].mxu0 }
 0x111   : > { %v4819_v62 = vpop.f32.mrb[3].mxu1  ;;  %v4676_v63 = vpop.f32.mrb[1].mxu0  ;;  %v5752_v0 = vadd.f32 %v1322_v55, %v936_v61 }
 0x112   : > { %v939_v1 = vpop.f32.mrb[2].mxu0 }
 0x113   : > { %4925 = vmatmul.mubr.msk.bf16.gmra.mrb[108].mxu1 %vm789_vm4, %v5280_v45  ;;  %v4677_v6 = vpop.f32.mrb[3].mxu0  ;;  %v5758_v7 = vadd.f32 %v1325_v60, %v939_v1  ;;  %v5286_v60 = vld [vmem:[%s5378_s22 + $0x108] sm:$0xff]  }
 0x114   : > { %4928 = vmatprep.mubr.msk.bf16.mxu1 %vm5337_vm3, %v6802_v2  ;;  %v765_v6 = vshrl.u32 %v5285_v44, 16 }
 0x115   : > { %4783 = vmatmul.mubr.msk.bf16.gmra.mrb[108].mxu0 %vm789_vm4, %v732_v3 }
 0x116   : > { %v1330_v8 = vpop.f32.mrb[4].mxu1  ;;  %4786 = vmatprep.mubr.msk.bf16.mxu0 %vm5337_vm3, %v6802_v2 }
 0x117   : > { %v4822_v9 = vpop.f32.mrb[5].mxu1 }
 0x118   : > { %v1333_v13 = vpop.f32.mrb[6].mxu1  ;;  %v944_v14 = vpop.f32.mrb[4].mxu0 }
 0x119   : > { %v4823_v15 = vpop.f32.mrb[7].mxu1  ;;  %v4680_v16 = vpop.f32.mrb[5].mxu0  ;;  %v5764_v17 = vadd.f32 %v1330_v8, %v944_v14  ;;  %v769_v8 = vshll.u32 %v5286_v60, 16 }
 0x11a   : > { %v947_v18 = vpop.f32.mrb[6].mxu0  ;;  %v5287_v15 = vld [vmem:[%s5378_s22 + $0x110] sm:$0xff]  }
 0x11b   : > { %4929 = vmatmul.mubr.msk.bf16.gmra.mrb[112].mxu1 %vm789_vm4, %v5281_v51  ;;  %v4681_v22 = vpop.f32.mrb[7].mxu0  ;;  %v5770_v23 = vadd.f32 %v1333_v13, %v947_v18  ;;  %v756_v51 = vsel %vm504_vm5, %v751_v42, %v755_v43  ;;  %v771_v14 = vrot.slane %v769_v8, 1  ;;  %v777_v26 = vshll.u32 %v5287_v15, 16 }
 0x11c   : > { %4932 = vmatprep.mubr.msk.bf16.mxu1 %vm5337_vm3, %v6802_v2 }
 0x11d   : > { %4787 = vmatmul.mubr.msk.bf16.gmra.mrb[112].mxu0 %vm789_vm4, %v740_v19 }
 0x11e   : > { %v1338_v24 = vpop.f32.mrb[8].mxu1  ;;  %4790 = vmatprep.mubr.msk.bf16.mxu0 %vm5337_vm3, %v6802_v2 }
 0x11f   : > { %v4826_v25 = vpop.f32.mrb[9].mxu1 }
 0x120   : > { %v1341_v29 = vpop.f32.mrb[10].mxu1  ;;  %v952_v30 = vpop.f32.mrb[8].mxu0  ;;  %v773_v25 = vshrl.u32 %v5286_v60, 16 }
 0x121   : > { %v4827_v31 = vpop.f32.mrb[11].mxu1  ;;  %v4684_v32 = vpop.f32.mrb[9].mxu0  ;;  %v5776_v33 = vadd.f32 %v1338_v24, %v952_v30 }
 0x122   : > { %v955_v34 = vpop.f32.mrb[10].mxu0  ;;  %v775_v31 = vor.u32 %v773_v25, %v771_v14  ;;  %v779_v32 = vrot.slane %v777_v26, 1 }
 0x123   : > { %4933 = vmatmul.mubr.msk.bf16.gmra.mrb[116].mxu1 %vm789_vm4, %v5282_v59  ;;  %v4685_v38 = vpop.f32.mrb[11].mxu0  ;;  %v5782_v39 = vadd.f32 %v1341_v29, %v955_v34  ;;  %v763_v59 = vrot.slane %v761_v53, 1  ;;  %v5288_v34 = vld [vmem:[%s5378_s22 + $0x118] ss:$0 sps:$4 sm:$0x11]  }
 0x124   : > { %4936 = vmatprep.mubr.msk.bf16.mxu1 %vm5337_vm3, %v6802_v2 }
 0x125   : > { %4791 = vmatmul.mubr.msk.bf16.gmra.mrb[116].mxu0 %vm789_vm4, %v748_v35  ;;  %v764_v5 = vsel %vm504_vm5, %v759_v58, %v763_v59  ;;  %v767_v13 = vor.u32 %v765_v6, %v763_v59 }
 0x126   : > { %v1346_v40 = vpop.f32.mrb[12].mxu1  ;;  %4794 = vmatprep.mubr.msk.bf16.mxu0 %vm5337_vm3, %v6802_v2 }
 0x127   : > { %v4830_v41 = vpop.f32.mrb[13].mxu1  ;;  %v772_v24 = vsel %vm504_vm5, %v767_v13, %v771_v14 }
 0x128   : > { %v1349_v45 = vpop.f32.mrb[14].mxu1  ;;  %v960_v46 = vpop.f32.mrb[12].mxu0 }
 0x129   : > { %v4831_v47 = vpop.f32.mrb[15].mxu1  ;;  %v4688_v48 = vpop.f32.mrb[13].mxu0  ;;  %v5788_v49 = vadd.f32 %v1346_v40, %v960_v46  ;;  %v785_v46 = vshll.u32 %v5288_v34, 16 }
 0x12a   : > { %v963_v50 = vpop.f32.mrb[14].mxu0  ;;  %v4275_v47 = vcombine.low %v1601_v36, %v1602_v37 }
 0x12b   : > { %4937 = vmatmul.mubr.msk.bf16.gmra.mrb[120].mxu1 %vm789_vm4, %v5283_v12  ;;  %v4689_v54 = vpop.f32.mrb[15].mxu0  ;;  %v5794_v55 = vadd.f32 %v1349_v45, %v963_v50  ;;  %v781_v45 = vshrl.u32 %v5287_v15, 16 }
 0x12c   : > { %4940 = vmatprep.mubr.msk.bf16.mxu1 %vm5337_vm3, %v6802_v2  ;;  %v1855_v58 = vshll.u32 %v4275_v47, 16  ;;  %v1853_v6 = vshrl.u32 %v4275_v47, 16 }
 0x12d   : > { %4795 = vmatmul.mubr.msk.bf16.gmra.mrb[120].mxu0 %vm789_vm4, %v756_v51  ;;  %v2627_v51 = vld [vmem:[%s5378_s22 + $0x8] sm:$0xe]  ;;  %v783_v54 = vor.u32 %v781_v45, %v779_v32 }
 0x12e   : > { %v1354_v56 = vpop.f32.mrb[16].mxu1  ;;  %4798 = vmatprep.mubr.msk.bf16.mxu0 %vm5337_vm3, %v6802_v2  ;;  %v1857_v8 = vrot.slane %v1855_v58, 1 }
 0x12f   : > { %v4834_v57 = vpop.f32.mrb[17].mxu1 }
 0x130   : > { %v1357_v61 = vpop.f32.mrb[18].mxu1  ;;  %v968_v62 = vpop.f32.mrb[16].mxu0  ;;  %v5290_v57 = vld [vmem:[%s5378_s22 + $0x10] sm:$0xff]  }
 0x131   : > { %v4835_v63 = vpop.f32.mrb[19].mxu1  ;;  %v4692_v1 = vpop.f32.mrb[17].mxu0  ;;  %v5800_v3 = vadd.f32 %v1354_v56, %v968_v62  ;;  %v787_v56 = vrot.slane %v785_v46, 1  ;;  %v2635_v14 = vrot.slane %v5290_v57, 1 }
 0x132   : > { %v971_v4 = vpop.f32.mrb[18].mxu0 }
 0x133   : > { %4941 = vmatmul.mubr.msk.bf16.gmra.mrb[124].mxu1 %vm789_vm4, %v5284_v28  ;;  %v4693_v9 = vpop.f32.mrb[19].mxu0  ;;  %v5806_v10 = vadd.f32 %v1357_v61, %v971_v4 }
 0x134   : > { %4944 = vmatprep.mubr.msk.bf16.mxu1 %vm5337_vm3, %v6802_v2  ;;  %v1860_v9 = vshll.u32 %v5290_v57, 16 }
 0x135   : > { %4799 = vmatmul.mubr.msk.bf16.gmra.mrb[124].mxu0 %vm789_vm4, %v764_v5  ;;  %v788_v5 = vsel %vm504_vm5, %v783_v54, %v787_v56 }
 0x136   : > { %v1362_v11 = vpop.f32.mrb[20].mxu1  ;;  %4802 = vmatprep.mubr.msk.bf16.mxu0 %vm5337_vm3, %v6802_v2 }
 0x137   : > { %v4838_v12 = vpop.f32.mrb[21].mxu1 }
 0x138   : > { %v1365_v16 = vpop.f32.mrb[22].mxu1  ;;  %v976_v18 = vpop.f32.mrb[20].mxu0 }
 0x139   : > { %v4839_v19 = vpop.f32.mrb[23].mxu1  ;;  %v4696_v20 = vpop.f32.mrb[21].mxu0  ;;  %v5812_v21 = vadd.f32 %v1362_v11, %v976_v18 }
 0x13a   : > { %v979_v22 = vpop.f32.mrb[22].mxu0  ;;  %v1862_v19 = vrot.slane %v1860_v9, 1  ;;  %v5292_v20 = vld [vmem:[%s5378_s22 + $0x18] sm:$0xff]  }
 0x13b   : > { %4945 = vmatmul.mubr.msk.bf16.gmra.mrb[128].mxu1 %vm789_vm4, %v5285_v44  ;;  %v4697_v27 = vpop.f32.mrb[23].mxu0  ;;  %v5818_v28 = vadd.f32 %v1365_v16, %v979_v22  ;;  %v780_v44 = vsel %vm504_vm5, %v775_v31, %v779_v32  ;;  %v1864_v32 = vshrl.u32 %v5290_v57, 16  ;;  %v1868_v34 = vshll.u32 %v5292_v20, 16 }
 0x13c   : > { %4948 = vmatprep.mubr.msk.bf16.mxu1 %vm5337_vm3, %v6802_v2  ;;  %v1872_v56 = vshrl.u32 %v5292_v20, 16 }
 0x13d   : > { %4803 = vmatmul.mubr.msk.bf16.gmra.mrb[128].mxu0 %vm789_vm4, %v772_v24 }
 0x13e   : > { %v1370_v29 = vpop.f32.mrb[24].mxu1  ;;  %4806 = vmatprep.mubr.msk.bf16.mxu0 %vm5337_vm3, %v6802_v2 }
 0x13f   : > { %v4842_v30 = vpop.f32.mrb[25].mxu1 }
 0x140   : > { %v1373_v35 = vpop.f32.mrb[26].mxu1  ;;  %v984_v38 = vpop.f32.mrb[24].mxu0 }
 0x141   : > { %v4843_v40 = vpop.f32.mrb[27].mxu1  ;;  %v5826_v41 = vadd.f32 %v1370_v29, %v984_v38  ;;  %v4700_v42 = vpop.f32.mrb[25].mxu0 }
 0x142   : > { %v987_v43 = vpop.f32.mrb[26].mxu0  ;;  %v1866_v42 = vor.u32 %v1864_v32, %v1862_v19 }
 0x143   : > { %4949 = vmatmul.mubr.msk.bf16.gmra.mrb[132].mxu1 %vm789_vm4, %v5286_v60  ;;  %v5830_v48 = vadd.f32 %v1373_v35, %v987_v43  ;;  %v4701_v50 = vpop.f32.mrb[27].mxu0  ;;  %v4347_v60 = vcombine.low %v2627_v51, %v1602_v37  ;;  %v2637_v37 = vrot.slane %v5292_v20, 1  ;;  %v1870_v43 = vrot.slane %v1868_v34, 1 }
 0x144   : > { %4952 = vmatprep.mubr.msk.bf16.mxu1 %vm5337_vm3, %v6802_v2 }
 0x145   : > { %4807 = vmatmul.mubr.msk.bf16.gmra.mrb[132].mxu0 %vm789_vm4, %v780_v44  ;;  %v2634_v13 = vrot.slane %v4347_v60, 1  ;;  %v5293_v44 = vld [vmem:[%s5378_s22 + $0x20] sm:$0xff]   ;;  %v2638_v46 = vsel %vm2633_vm6, %v2635_v14, %v2637_v37  ;;  %v1871_v54 = vsel %vm504_vm5, %v1866_v42, %v1870_v43 }
 0x146   : > { %v1378_v52 = vpop.f32.mrb[28].mxu1  ;;  %4810 = vmatprep.mubr.msk.bf16.mxu0 %vm5337_vm3, %v6802_v2  ;;  %v1876_v57 = vshll.u32 %v5293_v44, 16  ;;  %v2639_v60 = vrot.slane %v5293_v44, 1 }
 0x147   : > { %v4846_v53 = vpop.f32.mrb[29].mxu1  ;;  %v2636_v24 = vsel %vm2633_vm6, %v2634_v13, %v2635_v14 }
 0x148   : > { %v1381_v59 = vpop.f32.mrb[30].mxu1  ;;  %v992_v61 = vpop.f32.mrb[28].mxu0 }
 0x149   : > { %v4847_v62 = vpop.f32.mrb[31].mxu1  ;;  %v5839_v63 = vadd.f32 %v1378_v52, %v992_v61  ;;  %v4704_v1 = vpop.f32.mrb[29].mxu0 }
 0x14a   : > { %v995_v4 = vpop.f32.mrb[30].mxu0  ;;  %v1874_v1 = vor.u32 %v1872_v56, %v1870_v43 }
 0x14b   : > { %4953 = vmatmul.mubr.msk.bf16.gmra.mrb[136].mxu1 %vm789_vm4, %v5287_v15  ;;  %v5843_v11 = vadd.f32 %v1381_v59, %v995_v4  ;;  %v4705_v12 = vpop.f32.mrb[31].mxu0  ;;  %v1858_v15 = vor.u32 %v1857_v8, %v1853_v6  ;;  %v1878_v4 = vrot.slane %v1876_v57, 1  ;;  %v2640_v8 = vsel %vm2633_vm6, %v2637_v37, %v2639_v60  ;;  %v5296_v57 = vld [vmem:[%s5378_s22 + $0x38] sm:$0xff]  }
 0x14c   : > { %5100 = vmatprep.mubr.msk.bf16.mxu1 %vm5337_vm3, %v6802_v2 }
 0x14d   : > { %4811 = vmatmul.mubr.msk.bf16.gmra.mrb[136].mxu0 %vm789_vm4, %v788_v5  ;;  %v1863_v31 = vsel %vm504_vm5, %v1858_v15, %v1862_v19  ;;  %v5294_v5 = vld [vmem:[%s5378_s22 + $0x28] sm:$0xff]   ;;  %v1880_v15 = vshrl.u32 %v5293_v44, 16 }
 0x14e   : > { %v1386_v16 = vpop.f32.mrb[32].mxu1  ;;  %4958 = vmatprep.mubr.msk.bf16.mxu0 %vm5337_vm3, %v6802_v2  ;;  %v1884_v19 = vshll.u32 %v5294_v5, 16  ;;  %v1888_v44 = vshrl.u32 %v5294_v5, 16 }
 0x14f   : > { %v4850_v18 = vpop.f32.mrb[33].mxu1 }
 0x150   : > { %v1389_v22 = vpop.f32.mrb[34].mxu1  ;;  %v1000_v25 = vpop.f32.mrb[32].mxu0  ;;  %v1879_v18 = vsel %vm504_vm5, %v1874_v1, %v1878_v4 }
 0x151   : > { %v4851_v26 = vpop.f32.mrb[35].mxu1  ;;  %v5852_v27 = vadd.f32 %v1386_v16, %v1000_v25  ;;  %v4708_v29 = vpop.f32.mrb[33].mxu0 }
 0x152   : > { %v1003_v30 = vpop.f32.mrb[34].mxu0  ;;  %v1882_v29 = vor.u32 %v1880_v15, %v1878_v4 }
 0x153   : > { %5101 = vmatmul.mubr.msk.bf16.vlgmr.msra.gmra.mrb[140].mxu1 %vm789_vm4, %v2636_v24  ;;  %v5856_v35 = vadd.f32 %v1389_v22, %v1003_v30  ;;  %v4709_v36 = vpop.f32.mrb[35].mxu0  ;;  %v2641_v24 = vrot.slane %v5294_v5, 1  ;;  %v1886_v30 = vrot.slane %v1884_v19, 1 }
 0x154   : > { %5104 = vmatprep.mubr.msk.bf16.mxu1 %vm5337_vm3, %v6802_v2 }
 0x155   : > { %4959 = vmatmul.mubr.msk.bf16.vlgmr.msra.gmra.mrb[140].mxu0 %vm789_vm4, %v1863_v31  ;;  %v5295_v31 = vld [vmem:[%s5378_s22 + $0x30] sm:$0xff]   ;;  %v2642_v34 = vsel %vm2633_vm6, %v2639_v60, %v2641_v24  ;;  %v1887_v43 = vsel %vm504_vm5, %v1882_v29, %v1886_v30 }
 0x156   : > { %v1394_v38 = vpop.f32.mrb[36].mxu1  ;;  %4962 = vmatprep.mubr.msk.bf16.mxu0 %vm5337_vm3, %v6802_v2 }
 0x157   : > { %v4854_v40 = vpop.f32.mrb[37].mxu1 }
 0x158   : > { %v1397_v45 = vpop.f32.mrb[38].mxu1  ;;  %v1008_v47 = vpop.f32.mrb[36].mxu0 }
 0x159   : > { %v4855_v50 = vpop.f32.mrb[39].mxu1  ;;  %v5865_v51 = vadd.f32 %v1394_v38, %v1008_v47  ;;  %v4712_v52 = vpop.f32.mrb[37].mxu0 }
 0x15a   : > { %v1011_v53 = vpop.f32.mrb[38].mxu0  ;;  %v2643_v50 = vrot.slane %v5295_v31, 1 }
 0x15b   : > { %5105 = vmatmul.mubr.msk.bf16.gmra.mrb[144].mxu1 %vm789_vm4, %v2638_v46  ;;  %v5869_v58 = vadd.f32 %v1397_v45, %v1011_v53  ;;  %v4713_v59 = vpop.f32.mrb[39].mxu0  ;;  %v1892_v45 = vshll.u32 %v5295_v31, 16 }
 0x15c   : > { %5108 = vmatprep.mubr.msk.bf16.mxu1 %vm5337_vm3, %v6802_v2  ;;  %v2644_v60 = vsel %vm2633_vm6, %v2641_v24, %v2643_v50  ;;  %v5297_v24 = vld [vmem:[%s5378_s22 + $0x40] sm:$0xff]  }
 0x15d   : > { %4963 = vmatmul.mubr.msk.bf16.gmra.mrb[144].mxu0 %vm789_vm4, %v1871_v54  ;;  %v1890_v54 = vor.u32 %v1888_v44, %v1886_v30  ;;  %v1894_v56 = vrot.slane %v1892_v45, 1  ;;  %v2647_v44 = vrot.slane %v5297_v24, 1 }
 0x15e   : > { %v1402_v61 = vpop.f32.mrb[40].mxu1  ;;  %4966 = vmatprep.mubr.msk.bf16.mxu0 %vm5337_vm3, %v6802_v2 }
 0x15f   : > { %v4858_v62 = vpop.f32.mrb[41].mxu1 }
 0x160   : > { %v1405_v6 = vpop.f32.mrb[42].mxu1  ;;  %v1016_v9 = vpop.f32.mrb[40].mxu0 }
 0x161   : > { %v4859_v12 = vpop.f32.mrb[43].mxu1  ;;  %v5878_v13 = vadd.f32 %v1402_v61, %v1016_v9  ;;  %v4716_v14 = vpop.f32.mrb[41].mxu0  ;;  %v1900_v9 = vshll.u32 %v5296_v57, 16 }
 0x162   : > { %v1019_v16 = vpop.f32.mrb[42].mxu0 }
 0x163   : > { %5109 = vmatmul.mubr.msk.bf16.gmra.mrb[148].mxu1 %vm789_vm4, %v2640_v8  ;;  %v5882_v20 = vadd.f32 %v1405_v6, %v1019_v16  ;;  %v4717_v22 = vpop.f32.mrb[43].mxu0  ;;  %v1895_v6 = vsel %vm504_vm5, %v1890_v54, %v1894_v56  ;;  %v1896_v8 = vshrl.u32 %v5295_v31, 16  ;;  %v2645_v16 = vrot.slane %v5296_v57, 1 }
 0x164   : > { %5112 = vmatprep.mubr.msk.bf16.mxu1 %vm5337_vm3, %v6802_v2  ;;  %v1902_v22 = vrot.slane %v1900_v9, 1 }
 0x165   : > { %4967 = vmatmul.mubr.msk.bf16.gmra.mrb[148].mxu0 %vm789_vm4, %v1879_v18  ;;  %v1898_v19 = vor.u32 %v1896_v8, %v1894_v56  ;;  %v2648_v56 = vsel %vm2633_vm6, %v2645_v16, %v2647_v44 }
 0x166   : > { %v1410_v25 = vpop.f32.mrb[44].mxu1  ;;  %4970 = vmatprep.mubr.msk.bf16.mxu0 %vm5337_vm3, %v6802_v2 }
 0x167   : > { %v4862_v26 = vpop.f32.mrb[45].mxu1 }
 0x168   : > { %v1413_v32 = vpop.f32.mrb[46].mxu1  ;;  %v1024_v36 = vpop.f32.mrb[44].mxu0  ;;  %v2646_v26 = vsel %vm2633_vm6, %v2643_v50, %v2645_v16 }
 0x169   : > { %v4863_v37 = vpop.f32.mrb[47].mxu1  ;;  %v5891_v38 = vadd.f32 %v1410_v25, %v1024_v36  ;;  %v4720_v40 = vpop.f32.mrb[45].mxu0  ;;  %v1903_v36 = vsel %vm504_vm5, %v1898_v19, %v1902_v22 }
 0x16a   : > { %v1027_v42 = vpop.f32.mrb[46].mxu0  ;;  %v1904_v37 = vshrl.u32 %v5296_v57, 16  ;;  %v1908_v40 = vshll.u32 %v5297_v24, 16 }
 0x16b   : > { %5113 = vmatmul.mubr.msk.bf16.gmra.mrb[152].mxu1 %vm789_vm4, %v2642_v34  ;;  %v5895_v46 = vadd.f32 %v1413_v32, %v1027_v42  ;;  %v4721_v47 = vpop.f32.mrb[47].mxu0 }
 0x16c   : > { %5116 = vmatprep.mubr.msk.bf16.mxu1 %vm5337_vm3, %v6802_v2  ;;  %v1906_v50 = vor.u32 %v1904_v37, %v1902_v22  ;;  %v5299_v22 = vld [vmem:[%s5378_s22 + $0x50] sm:$0xff]  }
 0x16d   : > { %4971 = vmatmul.mubr.msk.bf16.gmra.mrb[152].mxu0 %vm789_vm4, %v1887_v43 }
 0x16e   : > { %v1418_v52 = vpop.f32.mrb[48].mxu1  ;;  %4974 = vmatprep.mubr.msk.bf16.mxu0 %vm5337_vm3, %v6802_v2 }
 0x16f   : > { %v4866_v53 = vpop.f32.mrb[49].mxu1 }
 0x170   : > { %v1421_v59 = vpop.f32.mrb[50].mxu1  ;;  %v1032_v61 = vpop.f32.mrb[48].mxu0  ;;  %v5298_v53 = vld [vmem:[%s5378_s22 + $0x48] sm:$0xff]  }
 0x171   : > { %v4867_v62 = vpop.f32.mrb[51].mxu1  ;;  %v5904_v1 = vadd.f32 %v1418_v52, %v1032_v61  ;;  %v4724_v4 = vpop.f32.mrb[49].mxu0  ;;  %v1910_v52 = vrot.slane %v1908_v40, 1  ;;  %v1920_v37 = vshrl.u32 %v5298_v53, 16  ;;  %v1924_v40 = vshll.u32 %v5299_v22, 16 }
 0x172   : > { %v1035_v5 = vpop.f32.mrb[50].mxu0 }
 0x173   : > { %5117 = vmatmul.mubr.msk.bf16.gmra.mrb[156].mxu1 %vm789_vm4, %v2644_v60  ;;  %v5908_v12 = vadd.f32 %v1421_v59, %v1035_v5  ;;  %v4725_v14 = vpop.f32.mrb[51].mxu0  ;;  %v1911_v4 = vsel %vm504_vm5, %v1906_v50, %v1910_v52  ;;  %v1912_v5 = vshrl.u32 %v5297_v24, 16 }
 0x174   : > { %5120 = vmatprep.mubr.msk.bf16.mxu1 %vm5337_vm3, %v6802_v2  ;;  %v2649_v14 = vrot.slane %v5298_v53, 1 }
 0x175   : > { %4975 = vmatmul.mubr.msk.bf16.gmra.mrb[156].mxu0 %vm789_vm4, %v1895_v6  ;;  %v1916_v6 = vshll.u32 %v5298_v53, 16 }
 0x176   : > { %v1426_v18 = vpop.f32.mrb[52].mxu1  ;;  %4978 = vmatprep.mubr.msk.bf16.mxu0 %vm5337_vm3, %v6802_v2  ;;  %v2650_v24 = vsel %vm2633_vm6, %v2647_v44, %v2649_v14  ;;  %v2651_v44 = vrot.slane %v5299_v22, 1 }
 0x177   : > { %v4870_v15 = vpop.f32.mrb[53].mxu1  ;;  %v1918_v19 = vrot.slane %v1916_v6, 1 }
 0x178   : > { %v1429_v25 = vpop.f32.mrb[54].mxu1  ;;  %v1040_v29 = vpop.f32.mrb[52].mxu0  ;;  %v1914_v15 = vor.u32 %v1912_v5, %v1910_v52  ;;  %v2652_v53 = vsel %vm2633_vm6, %v2649_v14, %v2651_v44 }
 0x179   : > { %v4871_v30 = vpop.f32.mrb[55].mxu1  ;;  %v5917_v31 = vadd.f32 %v1426_v18, %v1040_v29  ;;  %v4728_v32 = vpop.f32.mrb[53].mxu0  ;;  %v1922_v52 = vor.u32 %v1920_v37, %v1918_v19 }
 0x17a   : > { %v1043_v34 = vpop.f32.mrb[54].mxu0 }
 0x17b   : > { %5121 = vmatmul.mubr.msk.bf16.gmra.mrb[160].mxu1 %vm789_vm4, %v2646_v26  ;;  %v5921_v42 = vadd.f32 %v1429_v25, %v1043_v34  ;;  %v4729_v43 = vpop.f32.mrb[55].mxu0 }
 0x17c   : > { %5124 = vmatprep.mubr.msk.bf16.mxu1 %vm5337_vm3, %v6802_v2 }
 0x17d   : > { %4979 = vmatmul.mubr.msk.bf16.gmra.mrb[160].mxu0 %vm789_vm4, %v1903_v36  ;;  %v1919_v36 = vsel %vm504_vm5, %v1914_v15, %v1918_v19 }
 0x17e   : > { %v1434_v45 = vpop.f32.mrb[56].mxu1  ;;  %4982 = vmatprep.mubr.msk.bf16.mxu0 %vm5337_vm3, %v6802_v2 }
 0x17f   : > { %v4874_v47 = vpop.f32.mrb[57].mxu1 }
 0x180   : > { %v1437_v54 = vpop.f32.mrb[58].mxu1  ;;  %v1048_v57 = vpop.f32.mrb[56].mxu0 }
 0x181   : > { %v4875_v59 = vpop.f32.mrb[59].mxu1  ;;  %v5930_v60 = vadd.f32 %v1434_v45, %v1048_v57  ;;  %v4732_v61 = vpop.f32.mrb[57].mxu0 }
 0x182   : > { %v1051_v62 = vpop.f32.mrb[58].mxu0 }
 0x183   : > { %5125 = vmatmul.mubr.msk.bf16.gmra.mrb[164].mxu1 %vm789_vm4, %v2648_v56  ;;  %v5934_v8 = vadd.f32 %v1437_v54, %v1051_v62  ;;  %v4733_v9 = vpop.f32.mrb[59].mxu0  ;;  %v1926_v54 = vrot.slane %v1924_v40, 1  ;;  %v5300_v56 = vld [vmem:[%s5378_s22 + $0x58] sm:$0xff]  }
 0x184   : > { %5128 = vmatprep.mubr.msk.bf16.mxu1 %vm5337_vm3, %v6802_v2  ;;  %v1928_v9 = vshrl.u32 %v5299_v22, 16  ;;  %v2653_v14 = vrot.slane %v5300_v56, 1 }
 0x185   : > { %4983 = vmatmul.mubr.msk.bf16.gmra.mrb[164].mxu0 %vm789_vm4, %v1911_v4  ;;  %v1927_v6 = vsel %vm504_vm5, %v1922_v52, %v1926_v54 }
 0x186   : > { %v1442_v16 = vpop.f32.mrb[60].mxu1  ;;  %4986 = vmatprep.mubr.msk.bf16.mxu0 %vm5337_vm3, %v6802_v2  ;;  %v2654_v22 = vsel %vm2633_vm6, %v2651_v44, %v2653_v14 }
 0x187   : > { %v4878_v18 = vpop.f32.mrb[61].mxu1 }
 0x188   : > { %v1445_v25 = vpop.f32.mrb[62].mxu1  ;;  %v1056_v26 = vpop.f32.mrb[60].mxu0 }
 0x189   : > { %v4879_v29 = vpop.f32.mrb[63].mxu1  ;;  %v5943_v30 = vadd.f32 %v1442_v16, %v1056_v26  ;;  %v4736_v32 = vpop.f32.mrb[61].mxu0  ;;  %v1932_v16 = vshll.u32 %v5300_v56, 16 }
 0x18a   : > { %v1059_v34 = vpop.f32.mrb[62].mxu0  ;;  %v5301_v29 = vld [vmem:[%s5378_s22 + $0x60] sm:$0xff]  }
 0x18b   : > { %5129 = vmatmul.mubr.msk.bf16.gmra.mrb[168].mxu1 %vm789_vm4, %v2650_v24  ;;  %v5947_v43 = vadd.f32 %v1445_v25, %v1059_v34  ;;  %v4737_v45 = vpop.f32.mrb[63].mxu0  ;;  %v1930_v24 = vor.u32 %v1928_v9, %v1926_v54  ;;  %v1934_v26 = vrot.slane %v1932_v16, 1  ;;  %v1940_v52 = vshll.u32 %v5301_v29, 16 }
 0x18c   : > { %5132 = vmatprep.mubr.msk.bf16.mxu1 %vm5337_vm3, %v6802_v2  ;;  %v2655_v44 = vrot.slane %v5301_v29, 1 }
 0x18d   : > { %4987 = vmatmul.mubr.msk.bf16.gmra.mrb[168].mxu0 %vm789_vm4, %v1919_v36 }
 0x18e   : > { %v1450_v47 = vpop.f32.mrb[64].mxu1  ;;  %4990 = vmatprep.mubr.msk.bf16.mxu0 %vm5337_vm3, %v6802_v2 }
 0x18f   : > { %v4882_v50 = vpop.f32.mrb[65].mxu1 }
 0x190   : > { %v1453_v57 = vpop.f32.mrb[66].mxu1  ;;  %v1064_v59 = vpop.f32.mrb[64].mxu0  ;;  %v1936_v50 = vshrl.u32 %v5300_v56, 16  ;;  %v2656_v56 = vsel %vm2633_vm6, %v2653_v14, %v2655_v44 }
 0x191   : > { %v4883_v61 = vpop.f32.mrb[67].mxu1  ;;  %v5956_v62 = vadd.f32 %v1450_v47, %v1064_v59  ;;  %v4740_v4 = vpop.f32.mrb[65].mxu0  ;;  %v1935_v47 = vsel %vm504_vm5, %v1930_v24, %v1934_v26 }
 0x192   : > { %v1067_v5 = vpop.f32.mrb[66].mxu0  ;;  %v1938_v61 = vor.u32 %v1936_v50, %v1934_v26  ;;  %v1942_v4 = vrot.slane %v1940_v52, 1  ;;  %v5303_v50 = vld [vmem:[%s5378_s22 + $0x70] sm:$0xff]  }
 0x193   : > { %5133 = vmatmul.mubr.msk.bf16.gmra.mrb[172].mxu1 %vm789_vm4, %v2652_v53  ;;  %v5960_v18 = vadd.f32 %v1453_v57, %v1067_v5  ;;  %v4741_v15 = vpop.f32.mrb[67].mxu0  ;;  %v5302_v5 = vld [vmem:[%s5378_s22 + $0x68] sm:$0xff]  }
 0x194   : > { %5136 = vmatprep.mubr.msk.bf16.mxu1 %vm5337_vm3, %v6802_v2  ;;  %v1943_v24 = vsel %vm504_vm5, %v1938_v61, %v1942_v4  ;;  %v2657_v14 = vrot.slane %v5302_v5, 1 }
 0x195   : > { %4991 = vmatmul.mubr.msk.bf16.gmra.mrb[172].mxu0 %vm789_vm4, %v1927_v6 }
 0x196   : > { %v1458_v19 = vpop.f32.mrb[68].mxu1  ;;  %4994 = vmatprep.mubr.msk.bf16.mxu0 %vm5337_vm3, %v6802_v2 }
 0x197   : > { %v4886_v25 = vpop.f32.mrb[69].mxu1 }
 0x198   : > { %v1461_v32 = vpop.f32.mrb[70].mxu1  ;;  %v1072_v34 = vpop.f32.mrb[68].mxu0 }
 0x199   : > { %v4887_v36 = vpop.f32.mrb[71].mxu1  ;;  %v5969_v37 = vadd.f32 %v1458_v19, %v1072_v34  ;;  %v4744_v40 = vpop.f32.mrb[69].mxu0 }
 0x19a   : > { %v1075_v45 = vpop.f32.mrb[70].mxu0 }
 0x19b   : > { %5137 = vmatmul.mubr.msk.bf16.gmra.mrb[176].mxu1 %vm789_vm4, %v2654_v22  ;;  %v5973_v57 = vadd.f32 %v1461_v32, %v1075_v45  ;;  %v4745_v54 = vpop.f32.mrb[71].mxu0  ;;  %v1944_v32 = vshrl.u32 %v5301_v29, 16  ;;  %v1948_v22 = vshll.u32 %v5302_v5, 16  ;;  %v2658_v29 = vsel %vm2633_vm6, %v2655_v44, %v2657_v14 }
 0x19c   : > { %5140 = vmatprep.mubr.msk.bf16.mxu1 %vm5337_vm3, %v6802_v2  ;;  %v2659_v44 = vrot.slane %v5303_v50, 1 }
 0x19d   : > { %4995 = vmatmul.mubr.msk.bf16.gmra.mrb[176].mxu0 %vm789_vm4, %v1935_v47  ;;  %v1946_v45 = vor.u32 %v1944_v32, %v1942_v4  ;;  %v1950_v47 = vrot.slane %v1948_v22, 1 }
 0x19e   : > { %v1466_v53 = vpop.f32.mrb[72].mxu1  ;;  %4998 = vmatprep.mubr.msk.bf16.mxu0 %vm5337_vm3, %v6802_v2 }
 0x19f   : > { %v4890_v59 = vpop.f32.mrb[73].mxu1 }
 0x1a0   : > { %v1469_v6 = vpop.f32.mrb[74].mxu1  ;;  %v1080_v9 = vpop.f32.mrb[72].mxu0 }
 0x1a1   : > { %v4891_v16 = vpop.f32.mrb[75].mxu1  ;;  %v5982_v15 = vadd.f32 %v1466_v53, %v1080_v9  ;;  %v4748_v19 = vpop.f32.mrb[73].mxu0  ;;  %v1952_v9 = vshrl.u32 %v5302_v5, 16  ;;  %v2660_v5 = vsel %vm2633_vm6, %v2657_v14, %v2659_v44 }
 0x1a2   : > { %v1083_v25 = vpop.f32.mrb[74].mxu0  ;;  %v1956_v16 = vshll.u32 %v5303_v50, 16 }
 0x1a3   : > { %5141 = vmatmul.mubr.msk.bf16.gmra.mrb[180].mxu1 %vm789_vm4, %v2656_v56  ;;  %v5986_v34 = vadd.f32 %v1469_v6, %v1083_v25  ;;  %v4749_v26 = vpop.f32.mrb[75].mxu0  ;;  %v1951_v56 = vsel %vm504_vm5, %v1946_v45, %v1950_v47  ;;  %v1954_v32 = vor.u32 %v1952_v9, %v1950_v47 }
 0x1a4   : > { %5144 = vmatprep.mubr.msk.bf16.mxu1 %vm5337_vm3, %v6802_v2  ;;  %v1958_v22 = vrot.slane %v1956_v16, 1  ;;  %v5304_v26 = vld [vmem:[%s5378_s22 + $0x78] sm:$0xff]  }
 0x1a5   : > { %4999 = vmatmul.mubr.msk.bf16.gmra.mrb[180].mxu0 %vm789_vm4, %v1943_v24  ;;  %v2661_v14 = vrot.slane %v5304_v26, 1 }
 0x1a6   : > { %v1474_v36 = vpop.f32.mrb[76].mxu1  ;;  %5002 = vmatprep.mubr.msk.bf16.mxu0 %vm5337_vm3, %v6802_v2 }
 0x1a7   : > { %v4894_v40 = vpop.f32.mrb[77].mxu1 }
 0x1a8   : > { %v1477_v52 = vpop.f32.mrb[78].mxu1  ;;  %v1088_v54 = vpop.f32.mrb[76].mxu0 }
 0x1a9   : > { %v4895_v53 = vpop.f32.mrb[79].mxu1  ;;  %v5995_v59 = vadd.f32 %v1474_v36, %v1088_v54  ;;  %v4752_v61 = vpop.f32.mrb[77].mxu0 }
 0x1aa   : > { %v1091_v6 = vpop.f32.mrb[78].mxu0  ;;  %v1959_v53 = vsel %vm504_vm5, %v1954_v32, %v1958_v22  ;;  %v1960_v61 = vshrl.u32 %v5303_v50, 16  ;;  %v2662_v50 = vsel %vm2633_vm6, %v2659_v44, %v2661_v14 }
 0x1ab   : > { %5145 = vmatmul.mubr.msk.bf16.gmra.mrb[184].mxu1 %vm789_vm4, %v2658_v29  ;;  %v5999_v19 = vadd.f32 %v1477_v52, %v1091_v6  ;;  %v4753_v4 = vpop.f32.mrb[79].mxu0  ;;  %v1964_v6 = vshll.u32 %v5304_v26, 16 }
 0x1ac   : > { %5148 = vmatprep.mubr.msk.bf16.mxu1 %vm5337_vm3, %v6802_v2  ;;  %v1962_v4 = vor.u32 %v1960_v61, %v1958_v22 }
 0x1ad   : > { %5003 = vmatmul.mubr.msk.bf16.gmra.mrb[184].mxu0 %vm789_vm4, %v1951_v56 }
 0x1ae   : > { %v1482_v25 = vpop.f32.mrb[80].mxu1  ;;  %5006 = vmatprep.mubr.msk.bf16.mxu0 %vm5337_vm3, %v6802_v2 }
 0x1af   : > { %v4898_v24 = vpop.f32.mrb[81].mxu1 }
 0x1b0   : > { %v1485_v36 = vpop.f32.mrb[82].mxu1  ;;  %v1096_v40 = vpop.f32.mrb[80].mxu0  ;;  %v5305_v24 = vld [vmem:[%s5378_s22 + $0x80] sm:$0xff]  }
 0x1b1   : > { %v4899_v45 = vpop.f32.mrb[83].mxu1  ;;  %v6008_v52 = vadd.f32 %v1482_v25, %v1096_v40  ;;  %v4756_v29 = vpop.f32.mrb[81].mxu0  ;;  %v1966_v25 = vrot.slane %v1964_v6, 1  ;;  %v2663_v44 = vrot.slane %v5305_v24, 1 }
 0x1b2   : > { %v1099_v54 = vpop.f32.mrb[82].mxu0 }
 0x1b3   : > { %5149 = vmatmul.mubr.msk.bf16.gmra.mrb[188].mxu1 %vm789_vm4, %v2660_v5  ;;  %v6012_v56 = vadd.f32 %v1485_v36, %v1099_v54  ;;  %v4757_v47 = vpop.f32.mrb[83].mxu0  ;;  %v1967_v54 = vsel %vm504_vm5, %v1962_v4, %v1966_v25 }
 0x1b4   : > { %5152 = vmatprep.mubr.msk.bf16.mxu1 %vm5337_vm3, %v6802_v2  ;;  %v1972_v47 = vshll.u32 %v5305_v24, 16 }
 0x1b5   : > { %5007 = vmatmul.mubr.msk.bf16.gmra.mrb[188].mxu0 %vm789_vm4, %v1959_v53  ;;  %v1968_v53 = vshrl.u32 %v5304_v26, 16  ;;  %v2664_v26 = vsel %vm2633_vm6, %v2661_v14, %v2663_v44 }
 0x1b6   : > { %v1490_v9 = vpop.f32.mrb[84].mxu1  ;;  %5010 = vmatprep.mubr.msk.bf16.mxu0 %vm5337_vm3, %v6802_v2 }
 0x1b7   : > { %v4902_v16 = vpop.f32.mrb[85].mxu1 }
 0x1b8   : > { %v1493_v32 = vpop.f32.mrb[86].mxu1  ;;  %v1104_v36 = vpop.f32.mrb[84].mxu0 }
 0x1b9   : > { %v4903_v5 = vpop.f32.mrb[87].mxu1  ;;  %v6021_v40 = vadd.f32 %v1490_v9, %v1104_v36  ;;  %v4760_v45 = vpop.f32.mrb[85].mxu0  ;;  %v1970_v9 = vor.u32 %v1968_v53, %v1966_v25  ;;  %v5306_v36 = vld [vmem:[%s5378_s22 + $0x88] sm:$0xff]   ;;  %v6808_v53 = vmov 0.0  }
 0x1ba   : > { %v1107_v29 = vpop.f32.mrb[86].mxu0  ;;  %v2665_v14 = vrot.slane %v5306_v36, 1 }
 0x1bb   : > { %6804 = vst [vmem:[#allocation3_spill] sm:$0xff] %v6021_v40  ;;  %5153 = vmatmul.mubr.msk.bf16.gmra.mrb[192].mxu1 %vm789_vm4, %v2662_v50  ;;  %v6025_v16 = vadd.f32 %v1493_v32, %v1107_v29  ;;  %v4761_v22 = vpop.f32.mrb[87].mxu0  ;;  %v1974_v50 = vrot.slane %v1972_v47, 1 }
 0x1bc   : > { %5156 = vmatprep.mubr.msk.bf16.mxu1 %vm5337_vm3, %v6802_v2 }
 0x1bd   : > { %6805 = vst [vmem:[#allocation4_spill] sm:$0xff] %v6025_v16  ;;  %5011 = vmatmul.mubr.msk.bf16.gmra.mrb[192].mxu0 %vm789_vm4, %v1967_v54  ;;  %v1975_v54 = vsel %vm504_vm5, %v1970_v9, %v1974_v50  ;;  %v1980_v16 = vshll.u32 %v5306_v36, 16 }
 0x1be   : > { %v1498_v61 = vpop.f32.mrb[88].mxu1  ;;  %5014 = vmatprep.mubr.msk.bf16.mxu0 %vm5337_vm3, %v6802_v2 }
 0x1bf   : > { %v4906_v6 = vpop.f32.mrb[89].mxu1 }
 0x1c0   : > { %v1501_v4 = vpop.f32.mrb[90].mxu1  ;;  %v1112_v32 = vpop.f32.mrb[88].mxu0  ;;  %v1976_v6 = vshrl.u32 %v5305_v24, 16  ;;  %v2666_v24 = vsel %vm2633_vm6, %v2663_v44, %v2665_v14 }
 0x1c1   : > { %v4907_v5 = vpop.f32.mrb[91].mxu1  ;;  %v6034_v45 = vadd.f32 %v1498_v61, %v1112_v32  ;;  %v4764_v29 = vpop.f32.mrb[89].mxu0 }
 0x1c2   : > { %v1115_v22 = vpop.f32.mrb[90].mxu0  ;;  %v1978_v32 = vor.u32 %v1976_v6, %v1974_v50  ;;  %v5307_v5 = vld [vmem:[%s5378_s22 + $0x90] sm:$0xff]  }
 0x1c3   : > { %6806 = vst [vmem:[#allocation5_spill] sm:$0xff] %v6034_v45  ;;  %5157 = vmatmul.mubr.msk.bf16.gmra.mrb[196].mxu1 %vm789_vm4, %v2664_v26  ;;  %v6038_v2 = vadd.f32 %v1501_v4, %v1115_v22  ;;  %v4765_v25 = vpop.f32.mrb[91].mxu0  ;;  %v1982_v26 = vrot.slane %v1980_v16, 1  ;;  %v1988_v45 = vshll.u32 %v5307_v5, 16  ;;  %v2667_v44 = vrot.slane %v5307_v5, 1 }
 0x1c4   : > { %5160 = vmatprep.mubr.msk.bf16.mxu1 %vm5337_vm3, %v6808_v53 }
 0x1c5   : > { %6807 = vst [vmem:[#allocation6_spill] sm:$0xff] %v6038_v2  ;;  %5015 = vmatmul.mubr.msk.bf16.gmra.mrb[196].mxu0 %vm789_vm4, %v1975_v54  ;;  %v1983_v54 = vsel %vm504_vm5, %v1978_v32, %v1982_v26 }
 0x1c6   : > { %v1506_v47 = vpop.f32.mrb[92].mxu1  ;;  %5018 = vmatprep.mubr.msk.bf16.mxu0 %vm5337_vm3, %v6808_v53 }
 0x1c7   : > { %v4910_v61 = vpop.f32.mrb[93].mxu1 }
 0x1c8   : > { %v1509_v9 = vpop.f32.mrb[94].mxu1  ;;  %v1120_v4 = vpop.f32.mrb[92].mxu0  ;;  %v1984_v61 = vshrl.u32 %v5306_v36, 16  ;;  %v2668_v36 = vsel %vm2633_vm6, %v2665_v14, %v2667_v44 }
 0x1c9   : > { %v4911_v29 = vpop.f32.mrb[95].mxu1  ;;  %v6047_v22 = vadd.f32 %v1506_v47, %v1120_v4  ;;  %v4768_v25 = vpop.f32.mrb[93].mxu0  ;;  %v5308_v4 = vld [vmem:[%s5378_s22 + $0x98] sm:$0xff]  }
 0x1ca   : > { %v1123_v2 = vpop.f32.mrb[94].mxu0  ;;  %v1986_v47 = vor.u32 %v1984_v61, %v1982_v26  ;;  %v2669_v14 = vrot.slane %v5308_v4, 1 }
 0x1cb   : > { %6809 = vst [vmem:[#allocation7_spill] sm:$0xff] %v6047_v22  ;;  %5161 = vmatmul.mubr.msk.bf16.gmra.mrb[200].mxu1 %vm789_vm4, %v2666_v24  ;;  %v6051_v40 = vadd.f32 %v1509_v9, %v1123_v2  ;;  %v4769_v16 = vpop.f32.mrb[95].mxu0  ;;  %v1990_v24 = vrot.slane %v1988_v45, 1 }
 0x1cc   : > { %5164 = vmatprep.mubr.msk.bf16.mxu1 %vm5337_vm3, %v6808_v53 }
 0x1cd   : > { %6810 = vst [vmem:[#allocation8_spill] sm:$0xff] %v6051_v40  ;;  %5019 = vmatmul.mubr.msk.bf16.gmra.mrb[200].mxu0 %vm789_vm4, %v1983_v54  ;;  %v1991_v54 = vsel %vm504_vm5, %v1986_v47, %v1990_v24  ;;  %v1996_v40 = vshll.u32 %v5308_v4, 16 }
 0x1ce   : > { %v1514_v50 = vpop.f32.mrb[96].mxu1  ;;  %5022 = vmatprep.mubr.msk.bf16.mxu0 %vm5337_vm3, %v6808_v53 }
 0x1cf   : > { %v4914_v6 = vpop.f32.mrb[97].mxu1 }
 0x1d0   : > { %v1517_v32 = vpop.f32.mrb[98].mxu1  ;;  %v1128_v2 = vpop.f32.mrb[96].mxu0  ;;  %v1992_v6 = vshrl.u32 %v5307_v5, 16  ;;  %v2670_v5 = vsel %vm2633_vm6, %v2667_v44, %v2669_v14 }
 0x1d1   : > { %v4915_v9 = vpop.f32.mrb[99].mxu1  ;;  %v6060_v29 = vadd.f32 %v1514_v50, %v1128_v2  ;;  %v4772_v25 = vpop.f32.mrb[97].mxu0  ;;  %v5309_v2 = vld [vmem:[%s5378_s22 + $0xa0] sm:$0xff]  }
 0x1d2   : > { %v1131_v16 = vpop.f32.mrb[98].mxu0  ;;  %v1994_v50 = vor.u32 %v1992_v6, %v1990_v24  ;;  %v2671_v44 = vrot.slane %v5309_v2, 1 }
 0x1d3   : > { %6811 = vst [vmem:[#allocation9_spill] sm:$0xff] %v6060_v29  ;;  %5165 = vmatmul.mubr.msk.bf16.gmra.mrb[204].mxu1 %vm789_vm4, %v2668_v36  ;;  %v6064_v22 = vadd.f32 %v1517_v32, %v1131_v16  ;;  %v4773_v45 = vpop.f32.mrb[99].mxu0  ;;  %v1998_v36 = vrot.slane %v1996_v40, 1 }
 0x1d4   : > { %5168 = vmatprep.mubr.msk.bf16.mxu1 %vm5337_vm3, %v6808_v53 }
 0x1d5   : > { %6812 = vst [vmem:[#allocation10_spill] sm:$0xff] %v6064_v22  ;;  %5023 = vmatmul.mubr.msk.bf16.gmra.mrb[204].mxu0 %vm789_vm4, %v1991_v54  ;;  %v1999_v54 = vsel %vm504_vm5, %v1994_v50, %v1998_v36  ;;  %v2004_v22 = vshll.u32 %v5309_v2, 16 }
 0x1d6   : > { %v1522_v26 = vpop.f32.mrb[100].mxu1  ;;  %5026 = vmatprep.mubr.msk.bf16.mxu0 %vm5337_vm3, %v6808_v53 }
 0x1d7   : > { %v4918_v61 = vpop.f32.mrb[101].mxu1 }
 0x1d8   : > { %v1525_v47 = vpop.f32.mrb[102].mxu1  ;;  %v1136_v32 = vpop.f32.mrb[100].mxu0  ;;  %v2000_v61 = vshrl.u32 %v5308_v4, 16  ;;  %v2672_v4 = vsel %vm2633_vm6, %v2669_v14, %v2671_v44 }
 0x1d9   : > { %v4919_v9 = vpop.f32.mrb[103].mxu1  ;;  %v6073_v25 = vadd.f32 %v1522_v26, %v1136_v32  ;;  %v4776_v16 = vpop.f32.mrb[101].mxu0  ;;  %v5310_v32 = vld [vmem:[%s5378_s22 + $0xa8] sm:$0xff]  }
 0x1da   : > { %v1139_v45 = vpop.f32.mrb[102].mxu0  ;;  %v2002_v26 = vor.u32 %v2000_v61, %v1998_v36  ;;  %v2673_v14 = vrot.slane %v5310_v32, 1 }
 0x1db   : > { %6813 = vst [vmem:[#allocation11_spill] sm:$0xff] %v6073_v25  ;;  %5169 = vmatmul.mubr.msk.bf16.gmra.mrb[208].mxu1 %vm789_vm4, %v2670_v5  ;;  %v6077_v29 = vadd.f32 %v1525_v47, %v1139_v45  ;;  %v4777_v40 = vpop.f32.mrb[103].mxu0  ;;  %v2006_v5 = vrot.slane %v2004_v22, 1 }
 0x1dc   : > { %5172 = vmatprep.mubr.msk.bf16.mxu1 %vm5337_vm3, %v6808_v53 }
 0x1dd   : > { %6814 = vst [vmem:[#allocation12_spill] sm:$0xff] %v6077_v29  ;;  %5027 = vmatmul.mubr.msk.bf16.gmra.mrb[208].mxu0 %vm789_vm4, %v1999_v54  ;;  %v2007_v54 = vsel %vm504_vm5, %v2002_v26, %v2006_v5  ;;  %v2012_v29 = vshll.u32 %v5310_v32, 16 }
 0x1de   : > { %v1530_v24 = vpop.f32.mrb[104].mxu1  ;;  %5030 = vmatprep.mubr.msk.bf16.mxu0 %vm5337_vm3, %v6808_v53 }
 0x1df   : > { %v4922_v6 = vpop.f32.mrb[105].mxu1 }
 0x1e0   : > { %v1533_v50 = vpop.f32.mrb[106].mxu1  ;;  %v1144_v47 = vpop.f32.mrb[104].mxu0  ;;  %v2008_v6 = vshrl.u32 %v5309_v2, 16  ;;  %v2674_v2 = vsel %vm2633_vm6, %v2671_v44, %v2673_v14 }
 0x1e1   : > { %v4923_v9 = vpop.f32.mrb[107].mxu1  ;;  %v6086_v16 = vadd.f32 %v1530_v24, %v1144_v47  ;;  %v4780_v45 = vpop.f32.mrb[105].mxu0  ;;  %v5311_v47 = vld [vmem:[%s5378_s22 + $0xb0] sm:$0xff]  }
 0x1e2   : > { %v1147_v40 = vpop.f32.mrb[106].mxu0  ;;  %v2010_v24 = vor.u32 %v2008_v6, %v2006_v5  ;;  %v2675_v44 = vrot.slane %v5311_v47, 1 }
 0x1e3   : > { %6815 = vst [vmem:[#allocation13_spill] sm:$0xff] %v6086_v16  ;;  %5173 = vmatmul.mubr.msk.bf16.gmra.mrb[212].mxu1 %vm789_vm4, %v2672_v4  ;;  %v6090_v25 = vadd.f32 %v1533_v50, %v1147_v40  ;;  %v4781_v22 = vpop.f32.mrb[107].mxu0  ;;  %v2014_v4 = vrot.slane %v2012_v29, 1 }
 0x1e4   : > { %5176 = vmatprep.mubr.msk.bf16.mxu1 %vm5337_vm3, %v6808_v53 }
 0x1e5   : > { %6816 = vst [vmem:[#allocation14_spill] sm:$0xff] %v6090_v25  ;;  %5031 = vmatmul.mubr.msk.bf16.gmra.mrb[212].mxu0 %vm789_vm4, %v2007_v54  ;;  %v2015_v54 = vsel %vm504_vm5, %v2010_v24, %v2014_v4  ;;  %v2020_v25 = vshll.u32 %v5311_v47, 16 }
 0x1e6   : > { %v1538_v36 = vpop.f32.mrb[108].mxu1  ;;  %5034 = vmatprep.mubr.msk.bf16.mxu0 %vm5337_vm3, %v6808_v53 }
 0x1e7   : > { %v4926_v61 = vpop.f32.mrb[109].mxu1 }
 0x1e8   : > { %v1541_v26 = vpop.f32.mrb[110].mxu1  ;;  %v1152_v50 = vpop.f32.mrb[108].mxu0  ;;  %v2016_v61 = vshrl.u32 %v5310_v32, 16  ;;  %v2676_v32 = vsel %vm2633_vm6, %v2673_v14, %v2675_v44 }
 0x1e9   : > { %v4927_v9 = vpop.f32.mrb[111].mxu1  ;;  %v6099_v45 = vadd.f32 %v1538_v36, %v1152_v50  ;;  %v4784_v40 = vpop.f32.mrb[109].mxu0  ;;  %v5312_v50 = vld [vmem:[%s5378_s22 + $0xb8] sm:$0xff]  }
 0x1ea   : > { %v1155_v22 = vpop.f32.mrb[110].mxu0  ;;  %v2018_v36 = vor.u32 %v2016_v61, %v2014_v4  ;;  %v2677_v14 = vrot.slane %v5312_v50, 1 }
 0x1eb   : > { %6817 = vst [vmem:[#allocation15_spill] sm:$0xff] %v6099_v45  ;;  %5177 = vmatmul.mubr.msk.bf16.gmra.mrb[216].mxu1 %vm789_vm4, %v2674_v2  ;;  %v6103_v16 = vadd.f32 %v1541_v26, %v1155_v22  ;;  %v4785_v29 = vpop.f32.mrb[111].mxu0  ;;  %v2022_v2 = vrot.slane %v2020_v25, 1 }
 0x1ec   : > { %5180 = vmatprep.mubr.msk.bf16.mxu1 %vm5337_vm3, %v6808_v53 }
 0x1ed   : > { %6818 = vst [vmem:[#allocation16_spill] sm:$0xff] %v6103_v16  ;;  %5035 = vmatmul.mubr.msk.bf16.gmra.mrb[216].mxu0 %vm789_vm4, %v2015_v54  ;;  %v2023_v54 = vsel %vm504_vm5, %v2018_v36, %v2022_v2  ;;  %v2028_v16 = vshll.u32 %v5312_v50, 16 }
 0x1ee   : > { %v1546_v5 = vpop.f32.mrb[112].mxu1  ;;  %5038 = vmatprep.mubr.msk.bf16.mxu0 %vm5337_vm3, %v6808_v53 }
 0x1ef   : > { %v4930_v6 = vpop.f32.mrb[113].mxu1 }
 0x1f0   : > { %v1549_v24 = vpop.f32.mrb[114].mxu1  ;;  %v1160_v26 = vpop.f32.mrb[112].mxu0  ;;  %v2024_v6 = vshrl.u32 %v5311_v47, 16  ;;  %v2678_v47 = vsel %vm2633_vm6, %v2675_v44, %v2677_v14 }
 0x1f1   : > { %v4931_v9 = vpop.f32.mrb[115].mxu1  ;;  %v6112_v40 = vadd.f32 %v1546_v5, %v1160_v26  ;;  %v4788_v22 = vpop.f32.mrb[113].mxu0  ;;  %v5313_v26 = vld [vmem:[%s5378_s22 + $0xc0] sm:$0xff]  }
 0x1f2   : > { %v1163_v29 = vpop.f32.mrb[114].mxu0  ;;  %v2026_v5 = vor.u32 %v2024_v6, %v2022_v2  ;;  %v2679_v44 = vrot.slane %v5313_v26, 1 }
 0x1f3   : > { %6819 = vst [vmem:[#allocation17_spill] sm:$0xff] %v6112_v40  ;;  %5181 = vmatmul.mubr.msk.bf16.gmra.mrb[220].mxu1 %vm789_vm4, %v2676_v32  ;;  %v6116_v45 = vadd.f32 %v1549_v24, %v1163_v29  ;;  %v4789_v25 = vpop.f32.mrb[115].mxu0  ;;  %v2030_v32 = vrot.slane %v2028_v16, 1 }
 0x1f4   : > { %5184 = vmatprep.mubr.msk.bf16.mxu1 %vm5337_vm3, %v6808_v53 }
 0x1f5   : > { %6820 = vst [vmem:[#allocation18_spill] sm:$0xff] %v6116_v45  ;;  %5039 = vmatmul.mubr.msk.bf16.gmra.mrb[220].mxu0 %vm789_vm4, %v2023_v54  ;;  %v2031_v54 = vsel %vm504_vm5, %v2026_v5, %v2030_v32  ;;  %v2036_v45 = vshll.u32 %v5313_v26, 16 }
 0x1f6   : > { %v1554_v4 = vpop.f32.mrb[116].mxu1  ;;  %5042 = vmatprep.mubr.msk.bf16.mxu0 %vm5337_vm3, %v6808_v53 }
 0x1f7   : > { %v4934_v61 = vpop.f32.mrb[117].mxu1 }
 0x1f8   : > { %v1557_v36 = vpop.f32.mrb[118].mxu1  ;;  %v1168_v24 = vpop.f32.mrb[116].mxu0  ;;  %v2032_v61 = vshrl.u32 %v5312_v50, 16  ;;  %v2680_v50 = vsel %vm2633_vm6, %v2677_v14, %v2679_v44 }
 0x1f9   : > { %v4935_v9 = vpop.f32.mrb[119].mxu1  ;;  %v6125_v22 = vadd.f32 %v1554_v4, %v1168_v24  ;;  %v4792_v29 = vpop.f32.mrb[117].mxu0  ;;  %v5314_v24 = vld [vmem:[%s5378_s22 + $0xc8] sm:$0xff]  }
 0x1fa   : > { %v1171_v25 = vpop.f32.mrb[118].mxu0  ;;  %v2034_v4 = vor.u32 %v2032_v61, %v2030_v32  ;;  %v2681_v14 = vrot.slane %v5314_v24, 1 }
 0x1fb   : > { %6821 = vst [vmem:[#allocation19_spill] sm:$0xff] %v6125_v22  ;;  %5185 = vmatmul.mubr.msk.bf16.gmra.mrb[224].mxu1 %vm789_vm4, %v2678_v47  ;;  %v6129_v40 = vadd.f32 %v1557_v36, %v1171_v25  ;;  %v4793_v16 = vpop.f32.mrb[119].mxu0  ;;  %v2038_v47 = vrot.slane %v2036_v45, 1 }
 0x1fc   : > { %5188 = vmatprep.mubr.msk.bf16.mxu1 %vm5337_vm3, %v6808_v53 }
 0x1fd   : > { %6822 = vst [vmem:[#allocation20_spill] sm:$0xff] %v6129_v40  ;;  %5043 = vmatmul.mubr.msk.bf16.gmra.mrb[224].mxu0 %vm789_vm4, %v2031_v54  ;;  %v2039_v54 = vsel %vm504_vm5, %v2034_v4, %v2038_v47  ;;  %v2044_v40 = vshll.u32 %v5314_v24, 16 }
 0x1fe   : > { %v1562_v2 = vpop.f32.mrb[120].mxu1  ;;  %5046 = vmatprep.mubr.msk.bf16.mxu0 %vm5337_vm3, %v6808_v53 }
 0x1ff   : > { %v4938_v6 = vpop.f32.mrb[121].mxu1 }
 0x200   : > { %v1565_v5 = vpop.f32.mrb[122].mxu1  ;;  %v1176_v36 = vpop.f32.mrb[120].mxu0  ;;  %v2040_v6 = vshrl.u32 %v5313_v26, 16  ;;  %v2682_v26 = vsel %vm2633_vm6, %v2679_v44, %v2681_v14 }
 0x201   : > { %v4939_v9 = vpop.f32.mrb[123].mxu1  ;;  %v6138_v29 = vadd.f32 %v1562_v2, %v1176_v36  ;;  %v4796_v25 = vpop.f32.mrb[121].mxu0  ;;  %v5315_v36 = vld [vmem:[%s5378_s22 + $0xd0] sm:$0xff]  }
 0x202   : > { %v1179_v16 = vpop.f32.mrb[122].mxu0  ;;  %v2042_v2 = vor.u32 %v2040_v6, %v2038_v47  ;;  %v2683_v44 = vrot.slane %v5315_v36, 1 }
 0x203   : > { %6823 = vst [vmem:[#allocation21_spill] sm:$0xff] %v6138_v29  ;;  %5189 = vmatmul.mubr.msk.bf16.gmra.mrb[228].mxu1 %vm789_vm4, %v2680_v50  ;;  %v6142_v22 = vadd.f32 %v1565_v5, %v1179_v16  ;;  %v4797_v45 = vpop.f32.mrb[123].mxu0  ;;  %v2046_v50 = vrot.slane %v2044_v40, 1 }
 0x204   : > { %5192 = vmatprep.mubr.msk.bf16.mxu1 %vm5337_vm3, %v6808_v53 }
 0x205   : > { %6824 = vst [vmem:[#allocation22_spill] sm:$0xff] %v6142_v22  ;;  %5047 = vmatmul.mubr.msk.bf16.gmra.mrb[228].mxu0 %vm789_vm4, %v2039_v54  ;;  %v2047_v54 = vsel %vm504_vm5, %v2042_v2, %v2046_v50  ;;  %v2052_v22 = vshll.u32 %v5315_v36, 16 }
 0x206   : > { %v1570_v32 = vpop.f32.mrb[124].mxu1  ;;  %5050 = vmatprep.mubr.msk.bf16.mxu0 %vm5337_vm3, %v6808_v53 }
 0x207   : > { %v4942_v61 = vpop.f32.mrb[125].mxu1 }
 0x208   : > { %v1573_v4 = vpop.f32.mrb[126].mxu1  ;;  %v1184_v5 = vpop.f32.mrb[124].mxu0  ;;  %v2048_v61 = vshrl.u32 %v5314_v24, 16  ;;  %v2684_v24 = vsel %vm2633_vm6, %v2681_v14, %v2683_v44 }
 0x209   : > { %v4943_v9 = vpop.f32.mrb[127].mxu1  ;;  %v6151_v25 = vadd.f32 %v1570_v32, %v1184_v5  ;;  %v4800_v16 = vpop.f32.mrb[125].mxu0  ;;  %v5316_v5 = vld [vmem:[%s5378_s22 + $0xd8] sm:$0xff]  }
 0x20a   : > { %v1187_v45 = vpop.f32.mrb[126].mxu0  ;;  %v2050_v32 = vor.u32 %v2048_v61, %v2046_v50  ;;  %v2685_v14 = vrot.slane %v5316_v5, 1 }
 0x20b   : > { %6825 = vst [vmem:[#allocation23_spill] sm:$0xff] %v6151_v25  ;;  %5193 = vmatmul.mubr.msk.bf16.gmra.mrb[232].mxu1 %vm789_vm4, %v2682_v26  ;;  %v6155_v29 = vadd.f32 %v1573_v4, %v1187_v45  ;;  %v4801_v40 = vpop.f32.mrb[127].mxu0  ;;  %v2054_v26 = vrot.slane %v2052_v22, 1 }
 0x20c   : > { %5196 = vmatprep.mubr.msk.bf16.mxu1 %vm5337_vm3, %v6808_v53 }
 0x20d   : > { %6826 = vst [vmem:[#allocation24_spill] sm:$0xff] %v6155_v29  ;;  %5051 = vmatmul.mubr.msk.bf16.gmra.mrb[232].mxu0 %vm789_vm4, %v2047_v54  ;;  %v2055_v54 = vsel %vm504_vm5, %v2050_v32, %v2054_v26  ;;  %v2060_v29 = vshll.u32 %v5316_v5, 16 }
 0x20e   : > { %v1578_v47 = vpop.f32.mrb[128].mxu1  ;;  %5054 = vmatprep.mubr.msk.bf16.mxu0 %vm5337_vm3, %v6808_v53 }
 0x20f   : > { %v4946_v6 = vpop.f32.mrb[129].mxu1 }
 0x210   : > { %v1581_v2 = vpop.f32.mrb[130].mxu1  ;;  %v1192_v4 = vpop.f32.mrb[128].mxu0  ;;  %v2056_v6 = vshrl.u32 %v5315_v36, 16  ;;  %v2686_v36 = vsel %vm2633_vm6, %v2683_v44, %v2685_v14 }
 0x211   : > { %v4947_v9 = vpop.f32.mrb[131].mxu1  ;;  %v6164_v16 = vadd.f32 %v1578_v47, %v1192_v4  ;;  %v4804_v45 = vpop.f32.mrb[129].mxu0  ;;  %v5317_v4 = vld [vmem:[%s5378_s22 + $0xe0] sm:$0xff]  }
 0x212   : > { %v1195_v40 = vpop.f32.mrb[130].mxu0  ;;  %v2058_v47 = vor.u32 %v2056_v6, %v2054_v26  ;;  %v2687_v44 = vrot.slane %v5317_v4, 1 }
 0x213   : > { %6827 = vst [vmem:[#allocation25_spill] sm:$0xff] %v6164_v16  ;;  %5197 = vmatmul.mubr.msk.bf16.gmra.mrb[236].mxu1 %vm789_vm4, %v2684_v24  ;;  %v6168_v25 = vadd.f32 %v1581_v2, %v1195_v40  ;;  %v4805_v22 = vpop.f32.mrb[131].mxu0  ;;  %v2062_v24 = vrot.slane %v2060_v29, 1 }
 0x214   : > { %5200 = vmatprep.mubr.msk.bf16.mxu1 %vm5337_vm3, %v6808_v53 }
 0x215   : > { %6828 = vst [vmem:[#allocation26_spill] sm:$0xff] %v6168_v25  ;;  %5055 = vmatmul.mubr.msk.bf16.gmra.mrb[236].mxu0 %vm789_vm4, %v2055_v54  ;;  %v2063_v54 = vsel %vm504_vm5, %v2058_v47, %v2062_v24  ;;  %v2068_v25 = vshll.u32 %v5317_v4, 16 }
 0x216   : > { %v1586_v50 = vpop.f32.mrb[132].mxu1  ;;  %5058 = vmatprep.mubr.msk.bf16.mxu0 %vm5337_vm3, %v6808_v53 }
 0x217   : > { %v4950_v61 = vpop.f32.mrb[133].mxu1 }
 0x218   : > { %v1589_v32 = vpop.f32.mrb[134].mxu1  ;;  %v1200_v2 = vpop.f32.mrb[132].mxu0  ;;  %v2064_v61 = vshrl.u32 %v5316_v5, 16  ;;  %v2688_v5 = vsel %vm2633_vm6, %v2685_v14, %v2687_v44 }
 0x219   : > { %v4951_v9 = vpop.f32.mrb[135].mxu1  ;;  %v6177_v45 = vadd.f32 %v1586_v50, %v1200_v2  ;;  %v4808_v40 = vpop.f32.mrb[133].mxu0  ;;  %v5318_v2 = vld [vmem:[%s5378_s22 + $0xe8] sm:$0xff]  }
 0x21a   : > { %v1203_v22 = vpop.f32.mrb[134].mxu0  ;;  %v2066_v50 = vor.u32 %v2064_v61, %v2062_v24  ;;  %v2689_v14 = vrot.slane %v5318_v2, 1 }
 0x21b   : > { %6829 = vst [vmem:[#allocation27_spill] sm:$0xff] %v6177_v45  ;;  %5201 = vmatmul.mubr.msk.bf16.gmra.mrb[240].mxu1 %vm789_vm4, %v2686_v36  ;;  %v6181_v16 = vadd.f32 %v1589_v32, %v1203_v22  ;;  %v4809_v29 = vpop.f32.mrb[135].mxu0  ;;  %v2070_v36 = vrot.slane %v2068_v25, 1 }
 0x21c   : > { %5204 = vmatprep.mubr.msk.bf16.mxu1 %vm5337_vm3, %v6808_v53 }
 0x21d   : > { %6830 = vst [vmem:[#allocation28_spill] sm:$0xff] %v6181_v16  ;;  %5059 = vmatmul.mubr.msk.bf16.gmra.mrb[240].mxu0 %vm789_vm4, %v2063_v54  ;;  %v2071_v54 = vsel %vm504_vm5, %v2066_v50, %v2070_v36  ;;  %v2076_v16 = vshll.u32 %v5318_v2, 16  ;;  %v2690_v50 = vsel %vm2633_vm6, %v2687_v44, %v2689_v14  ;;  %v3197_v44 = vld [vmem:[#allocation2 + $0x8] sm:$0xff] }
 0x21e   : > { %v1594_v26 = vpop.f32.mrb[136].mxu1  ;;  %5062 = vmatprep.mubr.msk.bf16.mxu0 %vm5337_vm3, %v6808_v53 }
 0x21f   : > { %v4954_v6 = vpop.f32.mrb[137].mxu1 }
 0x220   : > { %v1597_v47 = vpop.f32.mrb[138].mxu1  ;;  %v1208_v32 = vpop.f32.mrb[136].mxu0  ;;  %v2072_v6 = vshrl.u32 %v5317_v4, 16 }
 0x221   : > { %v4955_v9 = vpop.f32.mrb[139].mxu1  ;;  %v6190_v40 = vadd.f32 %v1594_v26, %v1208_v32  ;;  %v4812_v22 = vpop.f32.mrb[137].mxu0  ;;  %v6202_v32 = vld [vmem:[%s5378_s22 + $0xf0] sm:$0xff]  }
 0x222   : > { %v1211_v29 = vpop.f32.mrb[138].mxu0  ;;  %v2074_v26 = vor.u32 %v2072_v6, %v2070_v36 }
 0x223   : > { %6831 = vst [vmem:[#allocation29_spill] sm:$0xff] %v6190_v40  ;;  %5205 = vmatmul.mubr.msk.bf16.gmra.mrb[244].mxu1 %vm789_vm4, %v2688_v5  ;;  %v6194_v45 = vadd.f32 %v1597_v47, %v1211_v29  ;;  %v4813_v25 = vpop.f32.mrb[139].mxu0  ;;  %v2078_v5 = vrot.slane %v2076_v16, 1  ;;  %v2084_v16 = vshll.u32 %v6202_v32, 16 }
 0x224   : > { %5208 = vmatprep.mubr.msk.bf16.mxu1 %vm5337_vm3, %v6808_v53  ;;  %v3196_v25 = vld [vmem:[#allocation2] sm:$0xff] }
 0x225   : > { %6832 = vst [vmem:[#allocation30_spill] sm:$0xff] %v6194_v45  ;;  %5063 = vmatmul.mubr.msk.bf16.gmra.mrb[244].mxu0 %vm789_vm4, %v2071_v54  ;;  %v2079_v54 = vsel %vm504_vm5, %v2074_v26, %v2078_v5 }
 0x226   : > { %v2847_v24 = vpop.f32.mrb[140].mxu1  ;;  %5066 = vmatprep.mubr.msk.bf16.mxu0 %vm5337_vm3, %v6808_v53 }
 0x227   : > { %v5102_v61 = vpop.f32.mrb[141].mxu1 }
 0x228   : > { %v2850_v4 = vpop.f32.mrb[142].mxu1  ;;  %v2278_v47 = vpop.f32.mrb[140].mxu0  ;;  %v2080_v61 = vshrl.u32 %v5318_v2, 16  ;;  %v6217_v2 = vld [vmem:[%s5378_s22 + $0xf8] sm:$0xff]  }
 0x229   : > { %v5103_v9 = vpop.f32.mrb[143].mxu1  ;;  %v2557_v22 = vadd.f32 %v2278_v47, %v5752_v0  ;;  %v4960_v29 = vpop.f32.mrb[141].mxu0  ;;  %v2691_v0 = vrot.slane %v6202_v32, 1 }
 0x22a   : > { %v2281_v45 = vpop.f32.mrb[142].mxu0 }
 0x22b   : > { %5209 = vmatmul.mubr.msk.bf16.gmra.mrb[248].mxu1 %vm789_vm4, %v2690_v50  ;;  %v3126_v36 = vadd.f32 %v2847_v24, %v2557_v22  ;;  %v2558_v6 = vadd.f32 %v2281_v45, %v5758_v7  ;;  %v4961_v40 = vpop.f32.mrb[143].mxu0  ;;  %v2082_v7 = vor.u32 %v2080_v61, %v2078_v5  ;;  %v2086_v45 = vrot.slane %v2084_v16, 1 }
 0x22c   : > { %5212 = vmatprep.mubr.msk.bf16.mxu1 %vm5337_vm3, %v6808_v53  ;;  %v2692_v22 = vsel %vm2633_vm6, %v2689_v14, %v2691_v0  ;;  %v2088_v61 = vshrl.u32 %v6202_v32, 16  ;;  %v2092_v16 = vshll.u32 %v6217_v2, 16 }
 0x22d   : > { %v3266_v47 = vadd.f32 %v3196_v25, %v3126_v36  ;;  %v3127_v9 = vadd.f32 %v2850_v4, %v2558_v6  ;;  %5067 = vmatmul.mubr.msk.bf16.gmra.mrb[248].mxu0 %vm789_vm4, %v2079_v54  ;;  %v3198_v36 = vld [vmem:[#allocation2 + $0x10] sm:$0xff]  ;;  %v2087_v5 = vsel %vm504_vm5, %v2082_v7, %v2086_v45 }
 0x22e   : > { %v2855_v26 = vpop.f32.mrb[144].mxu1  ;;  %5070 = vmatprep.mubr.msk.bf16.mxu0 %vm5337_vm3, %v6808_v53  ;;  %v2094_v32 = vrot.slane %v2092_v16, 1  ;;  %v2096_v16 = vshrl.u32 %v6217_v2, 16 }
 0x22f   : > { %v5106_v50 = vpop.f32.mrb[145].mxu1  ;;  %3337 = vst.msk [vmem:[#allocation2] sm:$0xff] %vm3336_vm7, %v3266_v47  ;;  %v3267_v40 = vadd.f32 %v3197_v44, %v3127_v9  ;;  %v2693_v9 = vrot.slane %v6217_v2, 1 }
 0x230   : > { %v2858_v24 = vpop.f32.mrb[146].mxu1  ;;  %v2286_v29 = vpop.f32.mrb[144].mxu0  ;;  %v2098_v2 = vor.u32 %v2096_v16, %v2094_v32 }
 0x231   : > { %v5107_v25 = vpop.f32.mrb[147].mxu1  ;;  %3338 = vst.msk [vmem:[#allocation2 + $0x8] sm:$0xff] %vm3336_vm7, %v3267_v40  ;;  %v2559_v4 = vadd.f32 %v2286_v29, %v5764_v17  ;;  %v4964_v54 = vpop.f32.mrb[145].mxu0  ;;  %v3199_v17 = vld [vmem:[#allocation2 + $0x18] sm:$0xff] }
 0x232   : > { %v2289_v6 = vpop.f32.mrb[146].mxu0  ;;  %v2694_v25 = vsel %vm2633_vm6, %v2691_v0, %v2693_v9 }
 0x233   : > { %5213 = vmatmul.mubr.msk.bf16.gmra.mrb[252].mxu1 %vm789_vm4, %v2692_v22  ;;  %v3128_v44 = vadd.f32 %v2855_v26, %v2559_v4  ;;  %v2560_v14 = vadd.f32 %v2289_v6, %v5770_v23  ;;  %v4965_v47 = vpop.f32.mrb[147].mxu0  ;;  %v2090_v22 = vor.u32 %v2088_v61, %v2086_v45  ;;  %v6235_v26 = vld [vmem:[%s5378_s22 + $0x100] sm:$0xff]  }
 0x234   : > { %5216 = vmatprep.mubr.msk.bf16.mxu1 %vm5337_vm3, %v6808_v53 }
 0x235   : > { %v3268_v50 = vadd.f32 %v3198_v36, %v3128_v44  ;;  %v3129_v40 = vadd.f32 %v2858_v24, %v2560_v14  ;;  %5071 = vmatmul.mubr.msk.bf16.gmra.mrb[252].mxu0 %vm789_vm4, %v2087_v5  ;;  %v2095_v6 = vsel %vm504_vm5, %v2090_v22, %v2094_v32  ;;  %v3200_v5 = vld [vmem:[#allocation2 + $0x20] sm:$0xff]  ;;  %v2100_v44 = vshll.u32 %v6235_v26, 16 }
 0x236   : > { %v2863_v7 = vpop.f32.mrb[148].mxu1  ;;  %5074 = vmatprep.mubr.msk.bf16.mxu0 %vm5337_vm3, %v6808_v53 }
 0x237   : > { %v5110_v29 = vpop.f32.mrb[149].mxu1  ;;  %3339 = vst.msk [vmem:[#allocation2 + $0x10] sm:$0xff] %vm3336_vm7, %v3268_v50  ;;  %v3269_v23 = vadd.f32 %v3199_v17, %v3129_v40  ;;  %v3201_v17 = vld [vmem:[#allocation2 + $0x28] sm:$0xff] }
 0x238   : > { %v2866_v4 = vpop.f32.mrb[150].mxu1  ;;  %v2294_v54 = vpop.f32.mrb[148].mxu0 }
 0x239   : > { %v5111_v36 = vpop.f32.mrb[151].mxu1  ;;  %3340 = vst.msk [vmem:[#allocation2 + $0x18] sm:$0xff] %vm3336_vm7, %v3269_v23  ;;  %v2561_v24 = vadd.f32 %v2294_v54, %v5776_v33  ;;  %v4968_v45 = vpop.f32.mrb[149].mxu0  ;;  %v2695_v33 = vrot.slane %v6235_v26, 1  ;;  %v6253_v23 = vld [vmem:[%s5378_s22 + $0x108] sm:$0xff]  }
 0x23a   : > { %v2297_v61 = vpop.f32.mrb[150].mxu0  ;;  %v2108_v16 = vshll.u32 %v6253_v23, 16 }
 0x23b   : > { %5217 = vmatmul.mubr.msk.bf16.gmra.mrb[0].mxu1 %vm789_vm4, %v2694_v25  ;;  %v3130_v0 = vadd.f32 %v2863_v7, %v2561_v24  ;;  %v2562_v14 = vadd.f32 %v2297_v61, %v5782_v39  ;;  %v4969_v47 = vpop.f32.mrb[151].mxu0  ;;  %v2102_v7 = vrot.slane %v2100_v44, 1  ;;  %v2696_v54 = vsel %vm2633_vm6, %v2693_v9, %v2695_v33 }
 0x23c   : > { %5220 = vmatprep.mubr.msk.bf16.mxu1 %vm5337_vm3, %v6808_v53  ;;  %v2104_v61 = vshrl.u32 %v6235_v26, 16 }
 0x23d   : > { %v3270_v50 = vadd.f32 %v3200_v5, %v3130_v0  ;;  %v3131_v40 = vadd.f32 %v2866_v4, %v2562_v14  ;;  %5075 = vmatmul.mubr.msk.bf16.gmra.mrb[0].mxu0 %vm789_vm4, %v2095_v6  ;;  %v3202_v6 = vld [vmem:[#allocation2 + $0x30] sm:$0xff]  ;;  %v2103_v32 = vsel %vm504_vm5, %v2098_v2, %v2102_v7  ;;  %v3203_v14 = vld [vmem:[#allocation2 + $0x38] sm:$0xff] }
 0x23e   : > { %v2871_v22 = vpop.f32.mrb[152].mxu1  ;;  %5078 = vmatprep.mubr.msk.bf16.mxu0 %vm5337_vm3, %v6808_v53  ;;  %v2106_v26 = vor.u32 %v2104_v61, %v2102_v7 }
 0x23f   : > { %v5114_v29 = vpop.f32.mrb[153].mxu1  ;;  %3341 = vst.msk [vmem:[#allocation2 + $0x20] sm:$0xff] %vm3336_vm7, %v3270_v50  ;;  %v3271_v39 = vadd.f32 %v3201_v17, %v3131_v40 }
 0x240   : > { %v2874_v25 = vpop.f32.mrb[154].mxu1  ;;  %v2302_v36 = vpop.f32.mrb[152].mxu0  ;;  %v6271_v29 = vld [vmem:[%s5378_s22 + $0x110] sm:$0xff]  }
 0x241   : > { %v5115_v24 = vpop.f32.mrb[155].mxu1  ;;  %3342 = vst.msk [vmem:[#allocation2 + $0x28] sm:$0xff] %vm3336_vm7, %v3271_v39  ;;  %v2563_v4 = vadd.f32 %v2302_v36, %v5788_v49  ;;  %v4972_v45 = vpop.f32.mrb[153].mxu0  ;;  %v2697_v49 = vrot.slane %v6253_v23, 1 }
 0x242   : > { %v2305_v5 = vpop.f32.mrb[154].mxu0 }
 0x243   : > { %5221 = vmatmul.mubr.msk.bf16.gmra.mrb[4].mxu1 %vm789_vm4, %v2696_v54  ;;  %v3132_v44 = vadd.f32 %v2871_v22, %v2563_v4  ;;  %v2564_v9 = vadd.f32 %v2305_v5, %v5794_v55  ;;  %v4973_v0 = vpop.f32.mrb[155].mxu0  ;;  %v2110_v22 = vrot.slane %v2108_v16, 1  ;;  %v2698_v39 = vsel %vm2633_vm6, %v2695_v33, %v2697_v49  ;;  %v3204_v4 = vld [vmem:[#allocation2 + $0x40] sm:$0xff]  ;;  %v3205_v16 = vld [vmem:[#allocation2 + $0x48] sm:$0xff] }
 0x244   : > { %5224 = vmatprep.mubr.msk.bf16.mxu1 %vm5337_vm3, %v6808_v53  ;;  %v2116_v5 = vshll.u32 %v6271_v29, 16 }
 0x245   : > { %v3272_v47 = vadd.f32 %v3202_v6, %v3132_v44  ;;  %v3133_v17 = vadd.f32 %v2874_v25, %v2564_v9  ;;  %5079 = vmatmul.mubr.msk.bf16.gmra.mrb[4].mxu0 %vm789_vm4, %v2103_v32  ;;  %v2111_v7 = vsel %vm504_vm5, %v2106_v26, %v2110_v22  ;;  %v2112_v6 = vshrl.u32 %v6253_v23, 16 }
 0x246   : > { %v2879_v50 = vpop.f32.mrb[156].mxu1  ;;  %5082 = vmatprep.mubr.msk.bf16.mxu0 %vm5337_vm3, %v6808_v53 }
 0x247   : > { %v5118_v40 = vpop.f32.mrb[157].mxu1  ;;  %3343 = vst.msk [vmem:[#allocation2 + $0x30] sm:$0xff] %vm3336_vm7, %v3272_v47  ;;  %v3273_v55 = vadd.f32 %v3203_v14, %v3133_v17  ;;  %v2114_v23 = vor.u32 %v2112_v6, %v2110_v22  ;;  %v2118_v47 = vrot.slane %v2116_v5, 1  ;;  %v6289_v17 = vld [vmem:[%s5378_s22 + $0x118] sm:$0xff]  }
 0x248   : > { %v2882_v2 = vpop.f32.mrb[158].mxu1  ;;  %v2310_v54 = vpop.f32.mrb[156].mxu0 }
 0x249   : > { %v5119_v36 = vpop.f32.mrb[159].mxu1  ;;  %3344 = vst.msk [vmem:[#allocation2 + $0x38] sm:$0xff] %vm3336_vm7, %v3273_v55  ;;  %v2565_v25 = vadd.f32 %v2310_v54, %v5800_v3  ;;  %v4976_v24 = vpop.f32.mrb[157].mxu0  ;;  %v2699_v3 = vrot.slane %v6271_v29, 1  ;;  %v3206_v54 = vld [vmem:[#allocation2 + $0x50] sm:$0xff]  ;;  %v2119_v22 = vsel %vm504_vm5, %v2114_v23, %v2118_v47 }
 0x24a   : > { %v2313_v45 = vpop.f32.mrb[158].mxu0  ;;  %v2124_v24 = vshll.u32 %v6289_v17, 16 }
 0x24b   : > { %5225 = vmatmul.mubr.msk.bf16.gmra.mrb[8].mxu1 %vm789_vm4, %v2698_v39  ;;  %v3134_v32 = vadd.f32 %v2879_v50, %v2565_v25  ;;  %v2566_v33 = vadd.f32 %v2313_v45, %v5806_v10  ;;  %v4977_v61 = vpop.f32.mrb[159].mxu0  ;;  %v2700_v40 = vsel %vm2633_vm6, %v2697_v49, %v2699_v3  ;;  %v2120_v25 = vshrl.u32 %v6271_v29, 16 }
 0x24c   : > { %5228 = vmatprep.mubr.msk.bf16.mxu1 %vm5337_vm3, %v6808_v53  ;;  %v2126_v61 = vrot.slane %v2124_v24, 1 }
 0x24d   : > { %v3274_v44 = vadd.f32 %v3204_v4, %v3134_v32  ;;  %v3135_v9 = vadd.f32 %v2882_v2, %v2566_v33  ;;  %5083 = vmatmul.mubr.msk.bf16.gmra.mrb[8].mxu0 %vm789_vm4, %v2111_v7  ;;  %v3207_v7 = vld [vmem:[#allocation2 + $0x58] sm:$0xff]  ;;  %v2122_v29 = vor.u32 %v2120_v25, %v2118_v47 }
 0x24e   : > { %v2887_v0 = vpop.f32.mrb[160].mxu1  ;;  %5086 = vmatprep.mubr.msk.bf16.mxu0 %vm5337_vm3, %v6808_v53 }
 0x24f   : > { %v5122_v14 = vpop.f32.mrb[161].mxu1  ;;  %3345 = vst.msk [vmem:[#allocation2 + $0x40] sm:$0xff] %vm3336_vm7, %v3274_v44  ;;  %v3275_v10 = vadd.f32 %v3205_v16, %v3135_v9  ;;  %v5325_v16 = vld [vmem:[%s5378_s22 + $0x120] ss:$0 sps:$4 sm:$0x11]   ;;  %v2127_v47 = vsel %vm504_vm5, %v2122_v29, %v2126_v61 }
 0x250   : > { %v2890_v50 = vpop.f32.mrb[162].mxu1  ;;  %v2318_v26 = vpop.f32.mrb[160].mxu0 }
 0x251   : > { %v5123_v55 = vpop.f32.mrb[163].mxu1  ;;  %3346 = vst.msk [vmem:[#allocation2 + $0x48] sm:$0xff] %vm3336_vm7, %v3275_v10  ;;  %v2567_v2 = vadd.f32 %v2318_v26, %v5812_v21  ;;  %v4980_v39 = vpop.f32.mrb[161].mxu0  ;;  %v2701_v21 = vrot.slane %v6289_v17, 1  ;;  %v2128_v26 = vshrl.u32 %v6289_v17, 16 }
 0x252   : > { %v2321_v36 = vpop.f32.mrb[162].mxu0  ;;  %v2132_v55 = vshll.u32 %v5325_v16, 16 }
 0x253   : > { %5229 = vmatmul.mubr.msk.bf16.gmra.mrb[12].mxu1 %vm789_vm4, %v2700_v40  ;;  %v3136_v4 = vadd.f32 %v2887_v0, %v2567_v2  ;;  %v2568_v49 = vadd.f32 %v2321_v36, %v5818_v28  ;;  %v4981_v45 = vpop.f32.mrb[163].mxu0  ;;  %v2702_v9 = vsel %vm2633_vm6, %v2699_v3, %v2701_v21  ;;  %v3209_v36 = vld [vmem:[#allocation2 + $0x68] sm:$0xff]  ;;  %v2130_v17 = vor.u32 %v2128_v26, %v2126_v61 }
 0x254   : > { %5232 = vmatprep.mubr.msk.bf16.mxu1 %vm5337_vm3, %v6808_v53 }
 0x255   : > { %v3276_v6 = vadd.f32 %v3206_v54, %v3136_v4  ;;  %v3137_v5 = vadd.f32 %v2890_v50, %v2568_v49  ;;  %5087 = vmatmul.mubr.msk.bf16.gmra.mrb[12].mxu0 %vm789_vm4, %v2119_v22  ;;  %v3208_v50 = vld [vmem:[#allocation2 + $0x60] sm:$0xff]  ;;  %v2703_v54 = vrot.slane %v5325_v16, 1  ;;  %v2134_v4 = vrot.slane %v2132_v55, 1 }
 0x256   : > { %v2895_v32 = vpop.f32.mrb[164].mxu1  ;;  %5090 = vmatprep.mubr.msk.bf16.mxu0 %vm5337_vm3, %v6808_v53 }
 0x257   : > { %v5126_v33 = vpop.f32.mrb[165].mxu1  ;;  %3347 = vst.msk [vmem:[#allocation2 + $0x50] sm:$0xff] %vm3336_vm7, %v3276_v6  ;;  %v3277_v28 = vadd.f32 %v3207_v7, %v3137_v5  ;;  %v2704_v45 = vsel %vm2633_vm6, %v2701_v21, %v2703_v54 }
 0x258   : > { %v2898_v44 = vpop.f32.mrb[166].mxu1  ;;  %v2326_v0 = vpop.f32.mrb[164].mxu0  ;;  %v3210_v33 = vld [vmem:[#allocation2 + $0x70] sm:$0xff] }
 0x259   : > { %v5127_v14 = vpop.f32.mrb[167].mxu1  ;;  %3348 = vst.msk [vmem:[#allocation2 + $0x58] sm:$0xff] %vm3336_vm7, %v3277_v28  ;;  %v2569_v23 = vadd.f32 %v2326_v0, %v5826_v41  ;;  %v4984_v10 = vpop.f32.mrb[165].mxu0 }
 0x25a   : > { %v2329_v40 = vpop.f32.mrb[166].mxu0 }
 0x25b   : > { %5233 = vmatmul.mubr.msk.bf16.gmra.mrb[16].mxu1 %vm789_vm4, %v2702_v9  ;;  %v3138_v2 = vadd.f32 %v2895_v32, %v2569_v23  ;;  %v2570_v39 = vadd.f32 %v2329_v40, %v5830_v48  ;;  %v4985_v3 = vpop.f32.mrb[167].mxu0 }
 0x25c   : > { %5236 = vmatprep.mubr.msk.bf16.mxu1 %vm5337_vm3, %v6808_v53  ;;  %v3213_v3 = vld [vmem:[#allocation2 + $0x88] sm:$0xff] }
 0x25d   : > { %v3278_v41 = vadd.f32 %v3208_v50, %v3138_v2  ;;  %v3139_v22 = vadd.f32 %v2898_v44, %v2570_v39  ;;  %5091 = vmatmul.mubr.msk.bf16.gmra.mrb[16].mxu0 %vm789_vm4, %v2127_v47  ;;  %v3211_v44 = vld [vmem:[#allocation2 + $0x78] sm:$0xff] }
 0x25e   : > { %v2903_v25 = vpop.f32.mrb[168].mxu1  ;;  %5094 = vmatprep.mubr.msk.bf16.mxu0 %vm5337_vm3, %v6808_v53  ;;  %v2135_v53 = vsel %vm504_vm5, %v2130_v17, %v2134_v4 }
 0x25f   : > { %v5130_v24 = vpop.f32.mrb[169].mxu1  ;;  %3349 = vst.msk [vmem:[#allocation2 + $0x60] sm:$0xff] %vm3336_vm7, %v3278_v41  ;;  %v3279_v48 = vadd.f32 %v3209_v36, %v3139_v22 }
 0x260   : > { %v2906_v49 = vpop.f32.mrb[170].mxu1  ;;  %v2334_v7 = vpop.f32.mrb[168].mxu0 }
 0x261   : > { %v5131_v6 = vpop.f32.mrb[171].mxu1  ;;  %3350 = vst.msk [vmem:[#allocation2 + $0x68] sm:$0xff] %vm3336_vm7, %v3279_v48  ;;  %v2571_v5 = vadd.f32 %v2334_v7, %v5839_v63  ;;  %v4988_v32 = vpop.f32.mrb[169].mxu0 }
 0x262   : > { %v2337_v29 = vpop.f32.mrb[170].mxu0 }
 0x263   : > { %5237 = vmatmul.mubr.msk.bf16.gmra.mrb[20].mxu1 %vm789_vm4, %v2704_v45  ;;  %v3140_v61 = vadd.f32 %v2903_v25, %v2571_v5  ;;  %v2572_v16 = vadd.f32 %v2337_v29, %v5843_v11  ;;  %v4989_v28 = vpop.f32.mrb[171].mxu0  ;;  %v3212_v11 = vld [vmem:[#allocation2 + $0x80] sm:$0xff]  ;;  %v3215_v5 = vld [vmem:[#allocation2 + $0x98] sm:$0xff] }
 0x265   : > { %v3280_v9 = vadd.f32 %v3210_v33, %v3140_v61  ;;  %v3141_v21 = vadd.f32 %v2906_v49, %v2572_v16  ;;  %5095 = vmatmul.mubr.msk.bf16.gmra.mrb[20].mxu0 %vm789_vm4, %v2135_v53  ;;  %v3214_v49 = vld [vmem:[#allocation2 + $0x90] sm:$0xff] }
 0x266   : > { %v2911_v0 = vpop.f32.mrb[172].mxu1 }
 0x267   : > { %v5134_v14 = vpop.f32.mrb[173].mxu1  ;;  %3351 = vst.msk [vmem:[#allocation2 + $0x70] sm:$0xff] %vm3336_vm7, %v3280_v9  ;;  %v3281_v63 = vadd.f32 %v3211_v44, %v3141_v21  ;;  %v3216_v21 = vld [vmem:[#allocation2 + $0xa0] sm:$0xff] }
 0x268   : > { %v2914_v23 = vpop.f32.mrb[174].mxu1  ;;  %v2342_v10 = vpop.f32.mrb[172].mxu0 }
 0x269   : > { %v5135_v50 = vpop.f32.mrb[175].mxu1  ;;  %3352 = vst.msk [vmem:[#allocation2 + $0x78] sm:$0xff] %vm3336_vm7, %v3281_v63  ;;  %v2573_v40 = vadd.f32 %v2342_v10, %v5852_v27  ;;  %v4992_v47 = vpop.f32.mrb[173].mxu0 }
 0x26a   : > { %v2345_v26 = vpop.f32.mrb[174].mxu0 }
 0x26b   : > { %v3142_v55 = vadd.f32 %v2911_v0, %v2573_v40  ;;  %v2574_v2 = vadd.f32 %v2345_v26, %v5856_v35  ;;  %v4993_v39 = vpop.f32.mrb[175].mxu0 }
 0x26d   : > { %v3282_v54 = vadd.f32 %v3212_v11, %v3142_v55  ;;  %v3143_v36 = vadd.f32 %v2914_v23, %v2574_v2  ;;  %v3217_v23 = vld [vmem:[#allocation2 + $0xa8] sm:$0xff] }
 0x26e   : > { %v2919_v41 = vpop.f32.mrb[176].mxu1 }
 0x26f   : > { %v5138_v22 = vpop.f32.mrb[177].mxu1  ;;  %3353 = vst.msk [vmem:[#allocation2 + $0x80] sm:$0xff] %vm3336_vm7, %v3282_v54  ;;  %v3283_v25 = vadd.f32 %v3213_v3, %v3143_v36  ;;  %v3218_v3 = vld [vmem:[#allocation2 + $0xb0] sm:$0xff] }
 0x270   : > { %v2922_v24 = vpop.f32.mrb[178].mxu1  ;;  %v2350_v17 = vpop.f32.mrb[176].mxu0  ;;  %v3219_v22 = vld [vmem:[#allocation2 + $0xb8] sm:$0xff] }
 0x271   : > { %v5139_v4 = vpop.f32.mrb[179].mxu1  ;;  %3354 = vst.msk [vmem:[#allocation2 + $0x88] sm:$0xff] %vm3336_vm7, %v3283_v25  ;;  %v2575_v27 = vadd.f32 %v2350_v17, %v5865_v51  ;;  %v4996_v48 = vpop.f32.mrb[177].mxu0 }
 0x272   : > { %v2353_v45 = vpop.f32.mrb[178].mxu0 }
 0x273   : > { %v3144_v35 = vadd.f32 %v2919_v41, %v2575_v27  ;;  %v2576_v7 = vadd.f32 %v2353_v45, %v5869_v58  ;;  %v4997_v6 = vpop.f32.mrb[179].mxu0 }
 0x275   : > { %v3284_v32 = vadd.f32 %v3214_v49, %v3144_v35  ;;  %v3145_v33 = vadd.f32 %v2922_v24, %v2576_v7  ;;  %v3220_v7 = vld [vmem:[#allocation2 + $0xc0] sm:$0xff] }
 0x276   : > { %v2927_v29 = vpop.f32.mrb[180].mxu1 }
 0x277   : > { %v5142_v53 = vpop.f32.mrb[181].mxu1  ;;  %3355 = vst.msk [vmem:[#allocation2 + $0x90] sm:$0xff] %vm3336_vm7, %v3284_v32  ;;  %v3285_v61 = vadd.f32 %v3215_v5, %v3145_v33  ;;  %v3221_v33 = vld [vmem:[#allocation2 + $0xc8] sm:$0xff] }
 0x278   : > { %v2930_v16 = vpop.f32.mrb[182].mxu1  ;;  %v2358_v28 = vpop.f32.mrb[180].mxu0 }
 0x279   : > { %v5143_v44 = vpop.f32.mrb[183].mxu1  ;;  %3356 = vst.msk [vmem:[#allocation2 + $0x98] sm:$0xff] %vm3336_vm7, %v3285_v61  ;;  %v2577_v51 = vadd.f32 %v2358_v28, %v5878_v13  ;;  %v5000_v9 = vpop.f32.mrb[181].mxu0 }
 0x27a   : > { %v2361_v0 = vpop.f32.mrb[182].mxu0 }
 0x27b   : > { %v3146_v58 = vadd.f32 %v2927_v29, %v2577_v51  ;;  %v2578_v14 = vadd.f32 %v2361_v0, %v5882_v20  ;;  %v5001_v63 = vpop.f32.mrb[183].mxu0  ;;  %v3222_v0 = vld [vmem:[#allocation2 + $0xd0] sm:$0xff] }
 0x27d   : > { %v3286_v10 = vadd.f32 %v3216_v21, %v3146_v58  ;;  %v3147_v50 = vadd.f32 %v2930_v16, %v2578_v14 }
 0x27e   : > { %v2935_v40 = vpop.f32.mrb[184].mxu1 }
 0x27f   : > { %v5146_v47 = vpop.f32.mrb[185].mxu1  ;;  %3357 = vst.msk [vmem:[#allocation2 + $0xa0] sm:$0xff] %vm3336_vm7, %v3286_v10  ;;  %v3287_v11 = vadd.f32 %v3217_v23, %v3147_v50  ;;  %v3223_v23 = vld [vmem:[#allocation2 + $0xd8] sm:$0xff] }
 0x280   : > { %v2938_v26 = vpop.f32.mrb[186].mxu1  ;;  %v2366_v55 = vpop.f32.mrb[184].mxu0 }
 0x281   : > { %v5147_v2 = vpop.f32.mrb[187].mxu1  ;;  %3358 = vst.msk [vmem:[#allocation2 + $0xa8] sm:$0xff] %vm3336_vm7, %v3287_v11  ;;  %v2579_v13 = vadd.f32 %v2366_v55, %v5891_v38  ;;  %v5004_v39 = vpop.f32.mrb[185].mxu0 }
 0x282   : > { %v2369_v54 = vpop.f32.mrb[186].mxu0  ;;  %v3224_v39 = vld [vmem:[#allocation2 + $0xe0] sm:$0xff] }
 0x283   : > { %v3148_v20 = vadd.f32 %v2935_v40, %v2579_v13  ;;  %v2580_v36 = vadd.f32 %v2369_v54, %v5895_v46  ;;  %v5005_v41 = vpop.f32.mrb[187].mxu0 }
 0x285   : > { %v3288_v25 = vadd.f32 %v3218_v3, %v3148_v20  ;;  %v3149_v24 = vadd.f32 %v2938_v26, %v2580_v36  ;;  %v3225_v36 = vld [vmem:[#allocation2 + $0xe8] sm:$0xff] }
 0x286   : > { %v2943_v17 = vpop.f32.mrb[188].mxu1 }
 0x287   : > { %v5150_v4 = vpop.f32.mrb[189].mxu1  ;;  %3359 = vst.msk [vmem:[#allocation2 + $0xb0] sm:$0xff] %vm3336_vm7, %v3288_v25  ;;  %v3289_v27 = vadd.f32 %v3219_v22, %v3149_v24 }
 0x288   : > { %v2946_v48 = vpop.f32.mrb[190].mxu1  ;;  %v2374_v49 = vpop.f32.mrb[188].mxu0 }
 0x289   : > { %v5151_v45 = vpop.f32.mrb[191].mxu1  ;;  %3360 = vst.msk [vmem:[#allocation2 + $0xb8] sm:$0xff] %vm3336_vm7, %v3289_v27  ;;  %v2581_v38 = vadd.f32 %v2374_v49, %v5904_v1  ;;  %v5008_v35 = vpop.f32.mrb[189].mxu0 }
 0x28a   : > { %v2377_v6 = vpop.f32.mrb[190].mxu0  ;;  %v3226_v45 = vld [vmem:[#allocation2 + $0xf0] sm:$0xff] }
 0x28b   : > { %v3150_v46 = vadd.f32 %v2943_v17, %v2581_v38  ;;  %v2582_v5 = vadd.f32 %v2377_v6, %v5908_v12  ;;  %v5009_v32 = vpop.f32.mrb[191].mxu0  ;;  %v3227_v6 = vld [vmem:[#allocation2 + $0xf8] sm:$0xff] }
 0x28d   : > { %v3290_v29 = vadd.f32 %v3220_v7, %v3150_v46  ;;  %v3151_v53 = vadd.f32 %v2946_v48, %v2582_v5 }
 0x28e   : > { %v2951_v61 = vpop.f32.mrb[192].mxu1 }
 0x28f   : > { %v5154_v16 = vpop.f32.mrb[193].mxu1  ;;  %3361 = vst.msk [vmem:[#allocation2 + $0xc0] sm:$0xff] %vm3336_vm7, %v3290_v29  ;;  %v3291_v28 = vadd.f32 %v3221_v33, %v3151_v53 }
 0x290   : > { %v2954_v44 = vpop.f32.mrb[194].mxu1  ;;  %v2382_v51 = vpop.f32.mrb[192].mxu0 }
 0x291   : > { %v5155_v9 = vpop.f32.mrb[195].mxu1  ;;  %3362 = vst.msk [vmem:[#allocation2 + $0xc8] sm:$0xff] %vm3336_vm7, %v3291_v28  ;;  %v2583_v1 = vadd.f32 %v2382_v51, %v5917_v31  ;;  %v5012_v21 = vpop.f32.mrb[193].mxu0 }
 0x292   : > { %v2385_v58 = vpop.f32.mrb[194].mxu0  ;;  %v3229_v21 = vld [vmem:[#allocation2 + $0x108] sm:$0xff] }
 0x293   : > { %v3152_v12 = vadd.f32 %v2951_v61, %v2583_v1  ;;  %v2584_v14 = vadd.f32 %v2385_v58, %v5921_v42  ;;  %v5013_v63 = vpop.f32.mrb[195].mxu0 }
 0x295   : > { %v3292_v10 = vadd.f32 %v3222_v0, %v3152_v12  ;;  %v3153_v50 = vadd.f32 %v2954_v44, %v2584_v14  ;;  %v3228_v44 = vld [vmem:[#allocation2 + $0x100] sm:$0xff] }
 0x296   : > { %v2959_v40 = vpop.f32.mrb[196].mxu1 }
 0x297   : > { %v5158_v47 = vpop.f32.mrb[197].mxu1  ;;  %3363 = vst.msk [vmem:[#allocation2 + $0xd0] sm:$0xff] %vm3336_vm7, %v3292_v10  ;;  %v3293_v11 = vadd.f32 %v3223_v23, %v3153_v50 }
 0x298   : > { %v2962_v26 = vpop.f32.mrb[198].mxu1  ;;  %v2390_v55 = vpop.f32.mrb[196].mxu0  ;;  %v3230_v47 = vld [vmem:[#allocation2 + $0x110] sm:$0xff] }
 0x299   : > { %v5159_v2 = vpop.f32.mrb[199].mxu1  ;;  %3364 = vst.msk [vmem:[#allocation2 + $0xd8] sm:$0xff] %vm3336_vm7, %v3293_v11  ;;  %v2585_v31 = vadd.f32 %v2390_v55, %v5930_v60  ;;  %v5016_v13 = vpop.f32.mrb[197].mxu0 }
 0x29a   : > { %v2393_v3 = vpop.f32.mrb[198].mxu0  ;;  %v3231_v2 = vld [vmem:[#allocation2 + $0x118] sm:$0xff] }
 0x29b   : > { %v3154_v42 = vadd.f32 %v2959_v40, %v2585_v31  ;;  %v2586_v54 = vadd.f32 %v2393_v3, %v5934_v8  ;;  %v5017_v20 = vpop.f32.mrb[199].mxu0 }
 0x29d   : > { %v3294_v41 = vadd.f32 %v3224_v39, %v3154_v42  ;;  %v3155_v22 = vadd.f32 %v2962_v26, %v2586_v54 }
 0x29e   : > { %v2967_v25 = vpop.f32.mrb[200].mxu1 }
 0x29f   : > { %v5162_v24 = vpop.f32.mrb[201].mxu1  ;;  %3365 = vst.msk [vmem:[#allocation2 + $0xe0] sm:$0xff] %vm3336_vm7, %v3294_v41  ;;  %v3295_v17 = vadd.f32 %v3225_v36, %v3155_v22  ;;  %v3232_v22 = vld [vmem:[#allocation2 + $0x120] sm:$0xff] }
 0x2a0   : > { %v2970_v4 = vpop.f32.mrb[202].mxu1  ;;  %v2398_v27 = vpop.f32.mrb[200].mxu0 }
 0x2a1   : > { %v5163_v48 = vpop.f32.mrb[203].mxu1  ;;  %3366 = vst.msk [vmem:[#allocation2 + $0xe8] sm:$0xff] %vm3336_vm7, %v3295_v17  ;;  %v2587_v60 = vadd.f32 %v2398_v27, %v5943_v30  ;;  %v5020_v49 = vpop.f32.mrb[201].mxu0 }
 0x2a2   : > { %v2401_v38 = vpop.f32.mrb[202].mxu0 }
 0x2a3   : > { %v3156_v8 = vadd.f32 %v2967_v25, %v2587_v60  ;;  %v2588_v35 = vadd.f32 %v2401_v38, %v5947_v43  ;;  %v5021_v7 = vpop.f32.mrb[203].mxu0 }
 0x2a5   : > { %v3296_v46 = vadd.f32 %v3226_v45, %v3156_v8  ;;  %v3157_v5 = vadd.f32 %v2970_v4, %v2588_v35  ;;  %v3233_v4 = vld [vmem:[#allocation2 + $0x128] sm:$0xff] }
 0x2a6   : > { %v2975_v32 = vpop.f32.mrb[204].mxu1 }
 0x2a7   : > { %v5166_v33 = vpop.f32.mrb[205].mxu1  ;;  %3367 = vst.msk [vmem:[#allocation2 + $0xf0] sm:$0xff] %vm3336_vm7, %v3296_v46  ;;  %v3297_v29 = vadd.f32 %v3227_v6, %v3157_v5  ;;  %v3234_v6 = vld [vmem:[#allocation2 + $0x130] sm:$0xff] }
 0x2a8   : > { %v2978_v53 = vpop.f32.mrb[206].mxu1  ;;  %v2406_v61 = vpop.f32.mrb[204].mxu0  ;;  %v3235_v33 = vld [vmem:[#allocation2 + $0x138] sm:$0xff] }
 0x2a9   : > { %v5167_v16 = vpop.f32.mrb[207].mxu1  ;;  %3368 = vst.msk [vmem:[#allocation2 + $0xf8] sm:$0xff] %vm3336_vm7, %v3297_v29  ;;  %v2589_v30 = vadd.f32 %v2406_v61, %v5956_v62  ;;  %v5024_v28 = vpop.f32.mrb[205].mxu0 }
 0x2aa   : > { %v2409_v51 = vpop.f32.mrb[206].mxu0 }
 0x2ab   : > { %v3158_v43 = vadd.f32 %v2975_v32, %v2589_v30  ;;  %v2590_v9 = vadd.f32 %v2409_v51, %v5960_v18  ;;  %v5025_v1 = vpop.f32.mrb[207].mxu0 }
 0x2ad   : > { %v3298_v0 = vadd.f32 %v3228_v44, %v3158_v43  ;;  %v3159_v58 = vadd.f32 %v2978_v53, %v2590_v9  ;;  %v3236_v9 = vld [vmem:[#allocation2 + $0x140] sm:$0xff] }
 0x2ae   : > { %v2983_v12 = vpop.f32.mrb[208].mxu1 }
 0x2af   : > { %v5170_v14 = vpop.f32.mrb[209].mxu1  ;;  %3369 = vst.msk [vmem:[#allocation2 + $0x100] sm:$0xff] %vm3336_vm7, %v3298_v0  ;;  %v3299_v63 = vadd.f32 %v3229_v21, %v3159_v58  ;;  %v3237_v58 = vld [vmem:[#allocation2 + $0x148] sm:$0xff] }
 0x2b0   : > { %v2986_v23 = vpop.f32.mrb[210].mxu1  ;;  %v2414_v10 = vpop.f32.mrb[208].mxu0 }
 0x2b1   : > { %v5171_v50 = vpop.f32.mrb[211].mxu1  ;;  %3370 = vst.msk [vmem:[#allocation2 + $0x108] sm:$0xff] %vm3336_vm7, %v3299_v63  ;;  %v2591_v62 = vadd.f32 %v2414_v10, %v5969_v37  ;;  %v5028_v40 = vpop.f32.mrb[209].mxu0 }
 0x2b2   : > { %v2417_v11 = vpop.f32.mrb[210].mxu0 }
 0x2b3   : > { %v3160_v18 = vadd.f32 %v2983_v12, %v2591_v62  ;;  %v2592_v26 = vadd.f32 %v2417_v11, %v5973_v57  ;;  %v5029_v55 = vpop.f32.mrb[211].mxu0 }
 0x2b4   : > { %v6834_v55 = vld [vmem:[#allocation4_spill] sm:$0xff] }
 0x2b5   : > { %v3300_v31 = vadd.f32 %v3230_v47, %v3160_v18  ;;  %v3161_v13 = vadd.f32 %v2986_v23, %v2592_v26  ;;  %v3238_v18 = vld [vmem:[#allocation2 + $0x150] sm:$0xff] }
 0x2b6   : > { %v2991_v39 = vpop.f32.mrb[212].mxu1 }
 0x2b7   : > { %v5174_v3 = vpop.f32.mrb[213].mxu1  ;;  %3371 = vst.msk [vmem:[#allocation2 + $0x110] sm:$0xff] %vm3336_vm7, %v3300_v31  ;;  %v3301_v42 = vadd.f32 %v3231_v2, %v3161_v13  ;;  %v3239_v13 = vld [vmem:[#allocation2 + $0x158] sm:$0xff] }
 0x2b8   : > { %v2994_v54 = vpop.f32.mrb[214].mxu1  ;;  %v2422_v20 = vpop.f32.mrb[212].mxu0 }
 0x2b9   : > { %v5175_v36 = vpop.f32.mrb[215].mxu1  ;;  %3372 = vst.msk [vmem:[#allocation2 + $0x118] sm:$0xff] %vm3336_vm7, %v3301_v42  ;;  %v2593_v37 = vadd.f32 %v2422_v20, %v5982_v15  ;;  %v5032_v41 = vpop.f32.mrb[213].mxu0 }
 0x2ba   : > { %v2425_v25 = vpop.f32.mrb[214].mxu0 }
 0x2bb   : > { %v3162_v57 = vadd.f32 %v2991_v39, %v2593_v37  ;;  %v2594_v24 = vadd.f32 %v2425_v25, %v5986_v34  ;;  %v5033_v17 = vpop.f32.mrb[215].mxu0 }
 0x2bd   : > { %v3302_v27 = vadd.f32 %v3232_v22, %v3162_v57  ;;  %v3163_v48 = vadd.f32 %v2994_v54, %v2594_v24  ;;  %v6835_v22 = vld [vmem:[#allocation5_spill] sm:$0xff] }
 0x2be   : > { %v2999_v60 = vpop.f32.mrb[216].mxu1  ;;  %v3240_v24 = vld [vmem:[#allocation2 + $0x160] sm:$0xff] }
 0x2bf   : > { %v5178_v49 = vpop.f32.mrb[217].mxu1  ;;  %3373 = vst.msk [vmem:[#allocation2 + $0x120] sm:$0xff] %vm3336_vm7, %v3302_v27  ;;  %v3303_v45 = vadd.f32 %v3233_v4, %v3163_v48  ;;  %v6836_v27 = vld [vmem:[#allocation6_spill] sm:$0xff] }
 0x2c0   : > { %v3002_v38 = vpop.f32.mrb[218].mxu1  ;;  %v2430_v8 = vpop.f32.mrb[216].mxu0  ;;  %v3241_v49 = vld [vmem:[#allocation2 + $0x168] sm:$0xff] }
 0x2c1   : > { %v5179_v35 = vpop.f32.mrb[219].mxu1  ;;  %3374 = vst.msk [vmem:[#allocation2 + $0x128] sm:$0xff] %vm3336_vm7, %v3303_v45  ;;  %v2595_v15 = vadd.f32 %v2430_v8, %v5995_v59  ;;  %v5036_v7 = vpop.f32.mrb[217].mxu0 }
 0x2c2   : > { %v2433_v46 = vpop.f32.mrb[218].mxu0 }
 0x2c3   : > { %v3164_v34 = vadd.f32 %v2999_v60, %v2595_v15  ;;  %v2596_v5 = vadd.f32 %v2433_v46, %v5999_v19  ;;  %v5037_v32 = vpop.f32.mrb[219].mxu0 }
 0x2c5   : > { %v3304_v29 = vadd.f32 %v3234_v6, %v3164_v34  ;;  %v3165_v53 = vadd.f32 %v3002_v38, %v2596_v5  ;;  %v6837_v34 = vld [vmem:[#allocation7_spill] sm:$0xff] }
 0x2c6   : > { %v3007_v61 = vpop.f32.mrb[220].mxu1 }
 0x2c7   : > { %v5182_v16 = vpop.f32.mrb[221].mxu1  ;;  %3375 = vst.msk [vmem:[#allocation2 + $0x130] sm:$0xff] %vm3336_vm7, %v3304_v29  ;;  %v3305_v30 = vadd.f32 %v3235_v33, %v3165_v53  ;;  %v3242_v33 = vld [vmem:[#allocation2 + $0x170] sm:$0xff] }
 0x2c8   : > { %v3010_v28 = vpop.f32.mrb[222].mxu1  ;;  %v2438_v44 = vpop.f32.mrb[220].mxu0 }
 0x2c9   : > { %v5183_v51 = vpop.f32.mrb[223].mxu1  ;;  %3376 = vst.msk [vmem:[#allocation2 + $0x138] sm:$0xff] %vm3336_vm7, %v3305_v30  ;;  %v2597_v59 = vadd.f32 %v2438_v44, %v6008_v52  ;;  %v5040_v43 = vpop.f32.mrb[221].mxu0  ;;  %v6833_v52 = vld [vmem:[#allocation3_spill] sm:$0xff] }
 0x2ca   : > { %v2441_v1 = vpop.f32.mrb[222].mxu0 }
 0x2cb   : > { %v3166_v19 = vadd.f32 %v3007_v61, %v2597_v59  ;;  %v2598_v21 = vadd.f32 %v2441_v1, %v6012_v56  ;;  %v5041_v0 = vpop.f32.mrb[223].mxu0  ;;  %v6838_v61 = vld [vmem:[#allocation8_spill] sm:$0xff] }
 0x2cc   : > { %v6839_v0 = vld [vmem:[#allocation9_spill] sm:$0xff] }
 0x2cd   : > { %v3306_v12 = vadd.f32 %v3236_v9, %v3166_v19  ;;  %v3167_v14 = vadd.f32 %v3010_v28, %v2598_v21  ;;  %v3243_v28 = vld [vmem:[#allocation2 + $0x178] sm:$0xff] }
 0x2ce   : > { %v3015_v63 = vpop.f32.mrb[224].mxu1 }
 0x2cf   : > { %v5186_v23 = vpop.f32.mrb[225].mxu1  ;;  %3377 = vst.msk [vmem:[#allocation2 + $0x140] sm:$0xff] %vm3336_vm7, %v3306_v12  ;;  %v3307_v10 = vadd.f32 %v3237_v58, %v3167_v14  ;;  %v3244_v14 = vld [vmem:[#allocation2 + $0x180] sm:$0xff] }
 0x2d0   : > { %v3018_v50 = vpop.f32.mrb[226].mxu1  ;;  %v2446_v62 = vpop.f32.mrb[224].mxu0 }
 0x2d1   : > { %v5187_v40 = vpop.f32.mrb[227].mxu1  ;;  %3378 = vst.msk [vmem:[#allocation2 + $0x148] sm:$0xff] %vm3336_vm7, %v3307_v10  ;;  %v2599_v47 = vadd.f32 %v2446_v62, %v6833_v52  ;;  %v5044_v11 = vpop.f32.mrb[225].mxu0  ;;  %v6840_v10 = vld [vmem:[#allocation10_spill] sm:$0xff] }
 0x2d2   : > { %v2449_v26 = vpop.f32.mrb[226].mxu0  ;;  %v3245_v40 = vld [vmem:[#allocation2 + $0x188] sm:$0xff] }
 0x2d3   : > { %v3168_v56 = vadd.f32 %v3015_v63, %v2599_v47  ;;  %v2600_v2 = vadd.f32 %v2449_v26, %v6834_v55  ;;  %v5045_v31 = vpop.f32.mrb[227].mxu0 }
 0x2d4   : > { %v6841_v31 = vld [vmem:[#allocation11_spill] sm:$0xff] }
 0x2d5   : > { %v3308_v39 = vadd.f32 %v3238_v18, %v3168_v56  ;;  %v3169_v3 = vadd.f32 %v3018_v50, %v2600_v2 }
 0x2d6   : > { %v3023_v42 = vpop.f32.mrb[228].mxu1 }
 0x2d7   : > { %v5190_v54 = vpop.f32.mrb[229].mxu1  ;;  %3379 = vst.msk [vmem:[#allocation2 + $0x150] sm:$0xff] %vm3336_vm7, %v3308_v39  ;;  %v3309_v20 = vadd.f32 %v3239_v13, %v3169_v3  ;;  %v3246_v3 = vld [vmem:[#allocation2 + $0x190] sm:$0xff] }
 0x2d8   : > { %v3026_v36 = vpop.f32.mrb[230].mxu1  ;;  %v2454_v37 = vpop.f32.mrb[228].mxu0 }
 0x2d9   : > { %v5191_v41 = vpop.f32.mrb[231].mxu1  ;;  %3380 = vst.msk [vmem:[#allocation2 + $0x158] sm:$0xff] %vm3336_vm7, %v3309_v20  ;;  %v2601_v25 = vadd.f32 %v2454_v37, %v6835_v22  ;;  %v5048_v57 = vpop.f32.mrb[229].mxu0  ;;  %v6842_v20 = vld [vmem:[#allocation12_spill] sm:$0xff] }
 0x2da   : > { %v2457_v17 = vpop.f32.mrb[230].mxu0  ;;  %v3247_v41 = vld [vmem:[#allocation2 + $0x198] sm:$0xff] }
 0x2db   : > { %v3170_v4 = vadd.f32 %v3023_v42, %v2601_v25  ;;  %v2602_v48 = vadd.f32 %v2457_v17, %v6836_v27  ;;  %v5049_v60 = vpop.f32.mrb[231].mxu0 }
 0x2dc   : > { %v6843_v60 = vld [vmem:[#allocation13_spill] sm:$0xff] }
 0x2dd   : > { %v3310_v45 = vadd.f32 %v3240_v24, %v3170_v4  ;;  %v3171_v38 = vadd.f32 %v3026_v36, %v2602_v48 }
 0x2de   : > { %v3031_v8 = vpop.f32.mrb[232].mxu1 }
 0x2df   : > { %v5194_v35 = vpop.f32.mrb[233].mxu1  ;;  %3381 = vst.msk [vmem:[#allocation2 + $0x160] sm:$0xff] %vm3336_vm7, %v3310_v45  ;;  %v3311_v15 = vadd.f32 %v3241_v49, %v3171_v38  ;;  %v3248_v38 = vld [vmem:[#allocation2 + $0x1a0] sm:$0xff] }
 0x2e0   : > { %v3034_v7 = vpop.f32.mrb[234].mxu1  ;;  %v2462_v6 = vpop.f32.mrb[232].mxu0 }
 0x2e1   : > { %v5195_v46 = vpop.f32.mrb[235].mxu1  ;;  %3382 = vst.msk [vmem:[#allocation2 + $0x168] sm:$0xff] %vm3336_vm7, %v3311_v15  ;;  %v2603_v5 = vadd.f32 %v2462_v6, %v6837_v34  ;;  %v5052_v32 = vpop.f32.mrb[233].mxu0  ;;  %v6844_v15 = vld [vmem:[#allocation14_spill] sm:$0xff] }
 0x2e2   : > { %v2465_v29 = vpop.f32.mrb[234].mxu0  ;;  %v3249_v46 = vld [vmem:[#allocation2 + $0x1a8] sm:$0xff] }
 0x2e3   : > { %v3172_v53 = vadd.f32 %v3031_v8, %v2603_v5  ;;  %v2604_v16 = vadd.f32 %v2465_v29, %v6838_v61  ;;  %v5053_v30 = vpop.f32.mrb[235].mxu0 }
 0x2e4   : > { %v6845_v30 = vld [vmem:[#allocation15_spill] sm:$0xff] }
 0x2e5   : > { %v3312_v44 = vadd.f32 %v3242_v33, %v3172_v53  ;;  %v3173_v51 = vadd.f32 %v3034_v7, %v2604_v16 }
 0x2e6   : > { %v3039_v59 = vpop.f32.mrb[236].mxu1 }
 0x2e7   : > { %v5198_v43 = vpop.f32.mrb[237].mxu1  ;;  %3383 = vst.msk [vmem:[#allocation2 + $0x170] sm:$0xff] %vm3336_vm7, %v3312_v44  ;;  %v3313_v9 = vadd.f32 %v3243_v28, %v3173_v51  ;;  %v3250_v51 = vld [vmem:[#allocation2 + $0x1b0] sm:$0xff] }
 0x2e8   : > { %v3042_v1 = vpop.f32.mrb[238].mxu1  ;;  %v2470_v19 = vpop.f32.mrb[236].mxu0 }
 0x2e9   : > { %v5199_v21 = vpop.f32.mrb[239].mxu1  ;;  %3384 = vst.msk [vmem:[#allocation2 + $0x178] sm:$0xff] %vm3336_vm7, %v3313_v9  ;;  %v2605_v58 = vadd.f32 %v2470_v19, %v6839_v0  ;;  %v5056_v12 = vpop.f32.mrb[237].mxu0  ;;  %v6846_v9 = vld [vmem:[#allocation16_spill] sm:$0xff] }
 0x2ea   : > { %v2473_v63 = vpop.f32.mrb[238].mxu0  ;;  %v3251_v21 = vld [vmem:[#allocation2 + $0x1b8] sm:$0xff] }
 0x2eb   : > { %v3174_v23 = vadd.f32 %v3039_v59, %v2605_v58  ;;  %v2606_v50 = vadd.f32 %v2473_v63, %v6840_v10  ;;  %v5057_v62 = vpop.f32.mrb[239].mxu0 }
 0x2ec   : > { %v6847_v62 = vld [vmem:[#allocation17_spill] sm:$0xff] }
 0x2ed   : > { %v3314_v52 = vadd.f32 %v3244_v14, %v3174_v23  ;;  %v3175_v47 = vadd.f32 %v3042_v1, %v2606_v50 }
 0x2ee   : > { %v3047_v11 = vpop.f32.mrb[240].mxu1 }
 0x2ef   : > { %v5202_v18 = vpop.f32.mrb[241].mxu1  ;;  %3385 = vst.msk [vmem:[#allocation2 + $0x180] sm:$0xff] %vm3336_vm7, %v3314_v52  ;;  %v3315_v26 = vadd.f32 %v3245_v40, %v3175_v47  ;;  %v3252_v47 = vld [vmem:[#allocation2 + $0x1c0] sm:$0xff] }
 0x2f0   : > { %v3050_v56 = vpop.f32.mrb[242].mxu1  ;;  %v2478_v55 = vpop.f32.mrb[240].mxu0 }
 0x2f1   : > { %v5203_v2 = vpop.f32.mrb[243].mxu1  ;;  %3386 = vst.msk [vmem:[#allocation2 + $0x188] sm:$0xff] %vm3336_vm7, %v3315_v26  ;;  %v2607_v13 = vadd.f32 %v2478_v55, %v6841_v31  ;;  %v5060_v39 = vpop.f32.mrb[241].mxu0  ;;  %v6848_v26 = vld [vmem:[#allocation18_spill] sm:$0xff] }
 0x2f2   : > { %v2481_v42 = vpop.f32.mrb[242].mxu0  ;;  %v3253_v2 = vld [vmem:[#allocation2 + $0x1c8] sm:$0xff] }
 0x2f3   : > { %v3176_v54 = vadd.f32 %v3047_v11, %v2607_v13  ;;  %v2608_v36 = vadd.f32 %v2481_v42, %v6842_v20  ;;  %v5061_v37 = vpop.f32.mrb[243].mxu0 }
 0x2f4   : > { %v6849_v37 = vld [vmem:[#allocation19_spill] sm:$0xff] }
 0x2f5   : > { %v3316_v22 = vadd.f32 %v3246_v3, %v3176_v54  ;;  %v3177_v25 = vadd.f32 %v3050_v56, %v2608_v36 }
 0x2f6   : > { %v3055_v57 = vpop.f32.mrb[244].mxu1 }
 0x2f7   : > { %v5206_v24 = vpop.f32.mrb[245].mxu1  ;;  %3387 = vst.msk [vmem:[#allocation2 + $0x190] sm:$0xff] %vm3336_vm7, %v3316_v22  ;;  %v3317_v17 = vadd.f32 %v3247_v41, %v3177_v25  ;;  %v3254_v25 = vld [vmem:[#allocation2 + $0x1d0] sm:$0xff] }
 0x2f8   : > { %v3058_v4 = vpop.f32.mrb[246].mxu1  ;;  %v2486_v27 = vpop.f32.mrb[244].mxu0 }
 0x2f9   : > { %v5207_v48 = vpop.f32.mrb[247].mxu1  ;;  %3388 = vst.msk [vmem:[#allocation2 + $0x198] sm:$0xff] %vm3336_vm7, %v3317_v17  ;;  %v2609_v49 = vadd.f32 %v2486_v27, %v6843_v60  ;;  %v5064_v45 = vpop.f32.mrb[245].mxu0  ;;  %v6850_v17 = vld [vmem:[#allocation20_spill] sm:$0xff] }
 0x2fa   : > { %v2489_v8 = vpop.f32.mrb[246].mxu0  ;;  %v3255_v48 = vld [vmem:[#allocation2 + $0x1d8] sm:$0xff] }
 0x2fb   : > { %v3178_v35 = vadd.f32 %v3055_v57, %v2609_v49  ;;  %v2610_v7 = vadd.f32 %v2489_v8, %v6844_v15  ;;  %v5065_v6 = vpop.f32.mrb[247].mxu0 }
 0x2fc   : > { %v6851_v6 = vld [vmem:[#allocation21_spill] sm:$0xff] }
 0x2fd   : > { %v3318_v34 = vadd.f32 %v3248_v38, %v3178_v35  ;;  %v3179_v5 = vadd.f32 %v3058_v4, %v2610_v7 }
 0x2fe   : > { %v3063_v32 = vpop.f32.mrb[248].mxu1 }
 0x2ff   : > { %v5210_v33 = vpop.f32.mrb[249].mxu1  ;;  %3389 = vst.msk [vmem:[#allocation2 + $0x1a0] sm:$0xff] %vm3336_vm7, %v3318_v34  ;;  %v3319_v29 = vadd.f32 %v3249_v46, %v3179_v5  ;;  %v3256_v5 = vld [vmem:[#allocation2 + $0x1e0] sm:$0xff] }
 0x300   : > { %v3066_v53 = vpop.f32.mrb[250].mxu1  ;;  %v2494_v61 = vpop.f32.mrb[248].mxu0 }
 0x301   : > { %v5211_v16 = vpop.f32.mrb[251].mxu1  ;;  %3390 = vst.msk [vmem:[#allocation2 + $0x1a8] sm:$0xff] %vm3336_vm7, %v3319_v29  ;;  %v2611_v28 = vadd.f32 %v2494_v61, %v6845_v30  ;;  %v5068_v44 = vpop.f32.mrb[249].mxu0  ;;  %v6852_v29 = vld [vmem:[#allocation22_spill] sm:$0xff] }
 0x302   : > { %v2497_v59 = vpop.f32.mrb[250].mxu0  ;;  %v3257_v16 = vld [vmem:[#allocation2 + $0x1e8] sm:$0xff] }
 0x303   : > { %v3180_v43 = vadd.f32 %v3063_v32, %v2611_v28  ;;  %v2612_v1 = vadd.f32 %v2497_v59, %v6846_v9  ;;  %v5069_v19 = vpop.f32.mrb[251].mxu0 }
 0x304   : > { %v6853_v19 = vld [vmem:[#allocation23_spill] sm:$0xff] }
 0x305   : > { %v3320_v0 = vadd.f32 %v3250_v51, %v3180_v43  ;;  %v3181_v58 = vadd.f32 %v3066_v53, %v2612_v1 }
 0x306   : > { %v3071_v12 = vpop.f32.mrb[252].mxu1 }
 0x307   : > { %v5214_v14 = vpop.f32.mrb[253].mxu1  ;;  %3391 = vst.msk [vmem:[#allocation2 + $0x1b0] sm:$0xff] %vm3336_vm7, %v3320_v0  ;;  %v3321_v63 = vadd.f32 %v3251_v21, %v3181_v58  ;;  %v3258_v58 = vld [vmem:[#allocation2 + $0x1f0] sm:$0xff] }
 0x308   : > { %v3074_v23 = vpop.f32.mrb[254].mxu1  ;;  %v2502_v10 = vpop.f32.mrb[252].mxu0 }
 0x309   : > { %v5215_v50 = vpop.f32.mrb[255].mxu1  ;;  %3392 = vst.msk [vmem:[#allocation2 + $0x1b8] sm:$0xff] %vm3336_vm7, %v3321_v63  ;;  %v2613_v40 = vadd.f32 %v2502_v10, %v6847_v62  ;;  %v5072_v52 = vpop.f32.mrb[253].mxu0  ;;  %v6854_v63 = vld [vmem:[#allocation24_spill] sm:$0xff] }
 0x30a   : > { %v2505_v11 = vpop.f32.mrb[254].mxu0  ;;  %v3259_v50 = vld [vmem:[#allocation2 + $0x1f8] sm:$0xff] }
 0x30b   : > { %v3182_v18 = vadd.f32 %v3071_v12, %v2613_v40  ;;  %v2614_v56 = vadd.f32 %v2505_v11, %v6848_v26  ;;  %v5073_v55 = vpop.f32.mrb[255].mxu0 }
 0x30c   : > { %v6855_v55 = vld [vmem:[#allocation25_spill] sm:$0xff] }
 0x30d   : > { %v3322_v31 = vadd.f32 %v3252_v47, %v3182_v18  ;;  %v3183_v13 = vadd.f32 %v3074_v23, %v2614_v56 }
 0x30e   : > { %v3079_v39 = vpop.f32.mrb[0].mxu1 }
 0x30f   : > { %v5218_v3 = vpop.f32.mrb[1].mxu1  ;;  %3393 = vst.msk [vmem:[#allocation2 + $0x1c0] sm:$0xff] %vm3336_vm7, %v3322_v31  ;;  %v3323_v42 = vadd.f32 %v3253_v2, %v3183_v13  ;;  %v3260_v13 = vld [vmem:[#allocation2 + $0x200] sm:$0xff] }
 0x310   : > { %v3082_v54 = vpop.f32.mrb[2].mxu1  ;;  %v2510_v20 = vpop.f32.mrb[0].mxu0 }
 0x311   : > { %v5219_v36 = vpop.f32.mrb[3].mxu1  ;;  %3394 = vst.msk [vmem:[#allocation2 + $0x1c8] sm:$0xff] %vm3336_vm7, %v3323_v42  ;;  %v2615_v41 = vadd.f32 %v2510_v20, %v6849_v37  ;;  %v5076_v22 = vpop.f32.mrb[1].mxu0  ;;  %v6856_v42 = vld [vmem:[#allocation26_spill] sm:$0xff] }
 0x312   : > { %v2513_v57 = vpop.f32.mrb[2].mxu0  ;;  %v3261_v36 = vld [vmem:[#allocation2 + $0x208] sm:$0xff] }
 0x313   : > { %v3184_v24 = vadd.f32 %v3079_v39, %v2615_v41  ;;  %v2616_v4 = vadd.f32 %v2513_v57, %v6850_v17  ;;  %v5077_v27 = vpop.f32.mrb[3].mxu0 }
 0x314   : > { %v6857_v27 = vld [vmem:[#allocation27_spill] sm:$0xff] }
 0x315   : > { %v3324_v60 = vadd.f32 %v3254_v25, %v3184_v24  ;;  %v3185_v49 = vadd.f32 %v3082_v54, %v2616_v4 }
 0x316   : > { %v3087_v45 = vpop.f32.mrb[4].mxu1 }
 0x317   : > { %v5222_v38 = vpop.f32.mrb[5].mxu1  ;;  %3395 = vst.msk [vmem:[#allocation2 + $0x1d0] sm:$0xff] %vm3336_vm7, %v3324_v60  ;;  %v3325_v8 = vadd.f32 %v3255_v48, %v3185_v49  ;;  %v3262_v49 = vld [vmem:[#allocation2 + $0x210] sm:$0xff] }
 0x318   : > { %v3090_v35 = vpop.f32.mrb[6].mxu1  ;;  %v2518_v15 = vpop.f32.mrb[4].mxu0 }
 0x319   : > { %v5223_v7 = vpop.f32.mrb[7].mxu1  ;;  %3396 = vst.msk [vmem:[#allocation2 + $0x1d8] sm:$0xff] %vm3336_vm7, %v3325_v8  ;;  %v2617_v46 = vadd.f32 %v2518_v15, %v6851_v6  ;;  %v5080_v34 = vpop.f32.mrb[5].mxu0  ;;  %v6858_v8 = vld [vmem:[#allocation28_spill] sm:$0xff] }
 0x31a   : > { %v2521_v32 = vpop.f32.mrb[6].mxu0  ;;  %v3263_v7 = vld [vmem:[#allocation2 + $0x218] sm:$0xff] }
 0x31b   : > { %v3186_v33 = vadd.f32 %v3087_v45, %v2617_v46  ;;  %v2618_v53 = vadd.f32 %v2521_v32, %v6852_v29  ;;  %v5081_v61 = vpop.f32.mrb[7].mxu0 }
 0x31c   : > { %v6859_v61 = vld [vmem:[#allocation29_spill] sm:$0xff] }
 0x31d   : > { %v3326_v30 = vadd.f32 %v3256_v5, %v3186_v33  ;;  %v3187_v28 = vadd.f32 %v3090_v35, %v2618_v53 }
 0x31e   : > { %v3095_v44 = vpop.f32.mrb[8].mxu1 }
 0x31f   : > { %v5226_v51 = vpop.f32.mrb[9].mxu1  ;;  %3397 = vst.msk [vmem:[#allocation2 + $0x1e0] sm:$0xff] %vm3336_vm7, %v3326_v30  ;;  %v3327_v59 = vadd.f32 %v3257_v16, %v3187_v28  ;;  %v3264_v28 = vld [vmem:[#allocation2 + $0x220] sm:$0xff] }
 0x320   : > { %v3098_v43 = vpop.f32.mrb[10].mxu1  ;;  %v2526_v9 = vpop.f32.mrb[8].mxu0 }
 0x321   : > { %v5227_v1 = vpop.f32.mrb[11].mxu1  ;;  %3398 = vst.msk [vmem:[#allocation2 + $0x1e8] sm:$0xff] %vm3336_vm7, %v3327_v59  ;;  %v2619_v21 = vadd.f32 %v2526_v9, %v6853_v19  ;;  %v5084_v0 = vpop.f32.mrb[9].mxu0  ;;  %v6860_v59 = vld [vmem:[#allocation30_spill] sm:$0xff] }
 0x322   : > { %v2529_v12 = vpop.f32.mrb[10].mxu0  ;;  %v3265_v1 = vld [vmem:[#allocation2 + $0x228] sm:$0xff] }
 0x323   : > { %v3188_v14 = vadd.f32 %v3095_v44, %v2619_v21  ;;  %v2620_v23 = vadd.f32 %v2529_v12, %v6854_v63  ;;  %v5085_v10 = vpop.f32.mrb[11].mxu0  ;;  %v6442_v12 = vld [vmem:[%s6800_s2] ss:$0 sm:$0xff] (!%p4383_p5) }
 0x324   : > { %v3413_v10 = vld [vmem:[#allocation2 + $0x10] sm:$0xff] (!%p4383_p5) }
 0x325   : > { %v3328_v62 = vadd.f32 %v3258_v58, %v3188_v14  ;;  %v3189_v40 = vadd.f32 %v3098_v43, %v2620_v23  ;;  %v3411_v58 = vld [vmem:[#allocation2] sm:$0xff] (!%p4383_p5)  ;;  %v3412_v14 = vld [vmem:[#allocation2 + $0x8] sm:$0xff] (!%p4383_p5) }
 0x326   : > { %v3103_v52 = vpop.f32.mrb[12].mxu1  ;;  %v3488_v63 = vadd.f32 (!%p4383_p5), %v6442_v12, %v3411_v58  ;;  %v3489_v23 = vadd.f32 (!%p4383_p5), %v6442_v12, %v3412_v14 }
 0x327   : > { %v5230_v47 = vpop.f32.mrb[13].mxu1  ;;  %3399 = vst.msk [vmem:[#allocation2 + $0x1f0] sm:$0xff] %vm3336_vm7, %v3328_v62  ;;  %v3329_v11 = vadd.f32 %v3259_v50, %v3189_v40  ;;  %v3414_v50 = vld [vmem:[#allocation2 + $0x18] sm:$0xff] (!%p4383_p5)  ;;  %v3415_v62 = vld [vmem:[#allocation2 + $0x20] sm:$0xff] (!%p4383_p5)  ;;  %v3490_v40 = vadd.f32 (!%p4383_p5), %v6442_v12, %v3413_v10 }
 0x328   : > { %v3106_v18 = vpop.f32.mrb[14].mxu1  ;;  %v2534_v26 = vpop.f32.mrb[12].mxu0  ;;  %v3492_v47 = vadd.f32 (!%p4383_p5), %v6442_v12, %v3415_v62  ;;  %vm3558_vm9 = vcmp.ge.f32.partialorder (!%p4383_p5), %v3488_v63, 0.0  ;;  %vm3559_vm10 = vcmp.ge.f32.partialorder (!%p4383_p5), %v3489_v23, 0.0  ;;  %v3427_v10 = vld [vmem:[#allocation2 + $0x80] sm:$0xff] (!%p4383_p5) }
 0x329   : > { %v5231_v56 = vpop.f32.mrb[15].mxu1  ;;  %3400 = vst.msk [vmem:[#allocation2 + $0x1f8] sm:$0xff] %vm3336_vm7, %v3329_v11  ;;  %v2621_v2 = vadd.f32 %v2534_v26, %v6855_v55  ;;  %v5088_v31 = vpop.f32.mrb[13].mxu0  ;;  %v3416_v11 = vld [vmem:[#allocation2 + $0x28] sm:$0xff] (!%p4383_p5)  ;;  %v3629_v26 = vmul.f32 (!%p4383_p5), 0.2, %v3489_v23 }
 0x32a   : > { %v2537_v39 = vpop.f32.mrb[14].mxu0  ;;  %vm3560_vm11 = vcmp.ge.f32.partialorder (!%p4383_p5), %v3490_v40, 0.0  ;;  %v3630_v56 = vmul.f32 (!%p4383_p5), 0.2, %v3490_v40  ;;  %vm3562_vm13 = vcmp.ge.f32.partialorder (!%p4383_p5), %v3492_v47, 0.0 }
 0x32b   : > { %v3190_v3 = vadd.f32 %v3103_v52, %v2621_v2  ;;  %v2622_v54 = vadd.f32 %v2537_v39, %v6856_v42  ;;  %v5089_v20 = vpop.f32.mrb[15].mxu0  ;;  %v3491_v52 = vadd.f32 (!%p4383_p5), %v6442_v12, %v3414_v50  ;;  %v3699_v31 = vsel (!%p4383_p5), %vm3559_vm10, %v3489_v23, %v3629_v26  ;;  %v3417_v39 = vld [vmem:[#allocation2 + $0x30] sm:$0xff] (!%p4383_p5)  ;;  %v3419_v42 = vld [vmem:[#allocation2 + $0x40] sm:$0xff] (!%p4383_p5) }
 0x32c   : > { %v4459_v20 = vpack.c.bf16 (!%p4383_p5), %v3699_v31, %v3699_v31  ;;  %v3429_v26 = vld [vmem:[#allocation2 + $0x90] sm:$0xff] (!%p4383_p5)  ;;  %v3504_v31 = vadd.f32 (!%p4383_p5), %v6442_v12, %v3427_v10 }
 0x32d   : > { %v3330_v37 = vadd.f32 %v3260_v13, %v3190_v3  ;;  %v3191_v41 = vadd.f32 %v3106_v18, %v2622_v54  ;;  %v3628_v18 = vmul.f32 (!%p4383_p5), 0.2, %v3488_v63  ;;  %vm3561_vm12 = vcmp.ge.f32.partialorder (!%p4383_p5), %v3491_v52, 0.0  ;;  %v3418_v3 = vld [vmem:[#allocation2 + $0x38] sm:$0xff] (!%p4383_p5) }
 0x32e   : > { %v3111_v22 = vpop.f32.mrb[16].mxu1  ;;  %v3631_v55 = vmul.f32 (!%p4383_p5), 0.2, %v3491_v52  ;;  %v3632_v13 = vmul.f32 (!%p4383_p5), 0.2, %v3492_v47  ;;  %vm3574_vm10 = vcmp.ge.f32.partialorder (!%p4383_p5), %v3504_v31, 0.0 }
 0x32f   : > { %v5234_v25 = vpop.f32.mrb[17].mxu1  ;;  %3401 = vst.msk [vmem:[#allocation2 + $0x200] sm:$0xff] %vm3336_vm7, %v3330_v37  ;;  %v3331_v57 = vadd.f32 %v3261_v36, %v3191_v41  ;;  %v3698_v2 = vsel (!%p4383_p5), %vm3558_vm9, %v3488_v63, %v3628_v18  ;;  %v3700_v36 = vsel (!%p4383_p5), %vm3560_vm11, %v3490_v40, %v3630_v56  ;;  %v3420_v41 = vld [vmem:[#allocation2 + $0x48] sm:$0xff] (!%p4383_p5) }
 0x330   : > { %v3114_v24 = vpop.f32.mrb[18].mxu1  ;;  %v2542_v17 = vpop.f32.mrb[16].mxu0  ;;  %v4458_v54 = vpack.c.bf16 (!%p4383_p5), %v3698_v2, %v3698_v2  ;;  %v3701_v37 = vsel (!%p4383_p5), %vm3561_vm12, %v3491_v52, %v3631_v55  ;;  %v4460_v25 = vpack.c.bf16 (!%p4383_p5), %v3700_v36, %v3700_v36  ;;  %4050 = vst.msk [vmem:[%s6801_s3 + $0x4] sm:$0xf] (!%p4383_p5), %vm4048_vm8, %v4459_v20  ;;  %v3428_v52 = vld [vmem:[#allocation2 + $0x88] sm:$0xff] (!%p4383_p5) }
 0x331   : > { %v5235_v4 = vpop.f32.mrb[19].mxu1  ;;  %3402 = vst.msk [vmem:[#allocation2 + $0x208] sm:$0xff] %vm3336_vm7, %v3331_v57  ;;  %v2623_v48 = vadd.f32 %v2542_v17, %v6857_v27  ;;  %v5092_v60 = vpop.f32.mrb[17].mxu0  ;;  %v4461_v57 = vpack.c.bf16 (!%p4383_p5), %v3701_v37, %v3701_v37  ;;  %v3493_v17 = vadd.f32 (!%p4383_p5), %v6442_v12, %v3416_v11  ;;  %v3494_v27 = vadd.f32 (!%p4383_p5), %v6442_v12, %v3417_v39  ;;  %v3431_v39 = vld [vmem:[#allocation2 + $0xa0] sm:$0xff] (!%p4383_p5)  ;;  %v3432_v36 = vld [vmem:[#allocation2 + $0xa8] sm:$0xff] (!%p4383_p5) }
 0x332   : > { %v2545_v45 = vpop.f32.mrb[18].mxu0  ;;  %4049 = vst.msk [vmem:[%s6801_s3] sm:$0xf] (!%p4383_p5), %vm4048_vm8, %v4458_v54  ;;  %v3496_v60 = vadd.f32 (!%p4383_p5), %v6442_v12, %v3419_v42  ;;  %4051 = vst.msk [vmem:[%s6801_s3 + $0x8] sm:$0xf] (!%p4383_p5), %vm4048_vm8, %v4460_v25  ;;  %v3505_v20 = vadd.f32 (!%p4383_p5), %v6442_v12, %v3428_v52 }
 0x333   : > { %v3192_v38 = vadd.f32 %v3111_v22, %v2623_v48  ;;  %v2624_v35 = vadd.f32 %v2545_v45, %v6858_v8  ;;  %v5093_v15 = vpop.f32.mrb[19].mxu0  ;;  %v3421_v22 = vld [vmem:[#allocation2 + $0x50] sm:$0xff] (!%p4383_p5)  ;;  %v3495_v48 = vadd.f32 (!%p4383_p5), %v6442_v12, %v3418_v3  ;;  %4052 = vst.msk [vmem:[%s6801_s3 + $0xc] sm:$0xf] (!%p4383_p5), %vm4048_vm8, %v4461_v57  ;;  %vm3563_vm14 = vcmp.ge.f32.partialorder (!%p4383_p5), %v3493_v17, 0.0 }
 0x334   : > { %v3497_v45 = vadd.f32 (!%p4383_p5), %v6442_v12, %v3420_v41  ;;  %vm3564_vm15 = vcmp.ge.f32.partialorder (!%p4383_p5), %v3494_v27, 0.0  ;;  %v3634_v8 = vmul.f32 (!%p4383_p5), 0.2, %v3494_v27  ;;  %vm3566_vm1 = vcmp.ge.f32.partialorder (!%p4383_p5), %v3496_v60, 0.0 }
 0x335   : > { %v3332_v6 = vadd.f32 %v3262_v49, %v3192_v38  ;;  %v3193_v46 = vadd.f32 %v3114_v24, %v2624_v35  ;;  %v3702_v24 = vsel (!%p4383_p5), %vm3562_vm13, %v3492_v47, %v3632_v13  ;;  %v3633_v49 = vmul.f32 (!%p4383_p5), 0.2, %v3493_v17  ;;  %v3430_v13 = vld [vmem:[#allocation2 + $0x98] sm:$0xff] (!%p4383_p5) }
 0x336   : > { %v3119_v34 = vpop.f32.mrb[20].mxu1  ;;  %v4462_v4 = vpack.c.bf16 (!%p4383_p5), %v3702_v24, %v3702_v24  ;;  %v3498_v38 = vadd.f32 (!%p4383_p5), %v6442_v12, %v3421_v22  ;;  %vm3565_vm0 = vcmp.ge.f32.partialorder (!%p4383_p5), %v3495_v48, 0.0  ;;  %v3635_v35 = vmul.f32 (!%p4383_p5), 0.2, %v3495_v48 }
 0x337   : > { %v5238_v5 = vpop.f32.mrb[21].mxu1  ;;  %3403 = vst.msk [vmem:[#allocation2 + $0x210] sm:$0xff] %vm3336_vm7, %v3332_v6  ;;  %v3333_v32 = vadd.f32 %v3263_v7, %v3193_v46  ;;  %v3703_v15 = vsel (!%p4383_p5), %vm3563_vm14, %v3493_v17, %v3633_v49  ;;  %v3636_v7 = vmul.f32 (!%p4383_p5), 0.2, %v3496_v60  ;;  %vm3567_vm2 = vcmp.ge.f32.partialorder (!%p4383_p5), %v3497_v45, 0.0  ;;  %v3422_v6 = vld [vmem:[#allocation2 + $0x58] sm:$0xff] (!%p4383_p5) }
 0x338   : > { %v3122_v33 = vpop.f32.mrb[22].mxu1  ;;  %v2550_v29 = vpop.f32.mrb[20].mxu0  ;;  %4053 = vst.msk [vmem:[%s6801_s3 + $0x10] sm:$0xf] (!%p4383_p5), %vm4048_vm8, %v4462_v4  ;;  %v4463_v46 = vpack.c.bf16 (!%p4383_p5), %v3703_v15, %v3703_v15  ;;  %v3705_v5 = vsel (!%p4383_p5), %vm3565_vm0, %v3495_v48, %v3635_v35  ;;  %vm3568_vm3 = vcmp.ge.f32.partialorder (!%p4383_p5), %v3498_v38, 0.0  ;;  %v3506_v22 = vadd.f32 (!%p4383_p5), %v6442_v12, %v3429_v26  ;;  %v3443_v26 = vld [vmem:[#allocation2 + $0x100] sm:$0xff] (!%p4383_p5) }
 0x339   : > { %v5239_v53 = vpop.f32.mrb[23].mxu1  ;;  %3404 = vst.msk [vmem:[#allocation2 + $0x218] sm:$0xff] %vm3336_vm7, %v3333_v32  ;;  %v2625_v16 = vadd.f32 %v2550_v29, %v6859_v61  ;;  %v5096_v30 = vpop.f32.mrb[21].mxu0  ;;  %v3637_v32 = vmul.f32 (!%p4383_p5), 0.2, %v3497_v45  ;;  %v3424_v29 = vld [vmem:[#allocation2 + $0x68] sm:$0xff] (!%p4383_p5)  ;;  %v3507_v57 = vadd.f32 (!%p4383_p5), %v6442_v12, %v3430_v13  ;;  %v3508_v24 = vadd.f32 (!%p4383_p5), %v6442_v12, %v3431_v39 }
 0x33a   : > { %v2553_v44 = vpop.f32.mrb[22].mxu0  ;;  %v3425_v53 = vld [vmem:[#allocation2 + $0x70] sm:$0xff] (!%p4383_p5)  ;;  %v3706_v30 = vsel (!%p4383_p5), %vm3566_vm1, %v3496_v60, %v3636_v7  ;;  %4054 = vst.msk [vmem:[%s6801_s3 + $0x14] sm:$0xf] (!%p4383_p5), %vm4048_vm8, %v4463_v46  ;;  %v3644_v41 = vmul.f32 (!%p4383_p5), 0.2, %v3504_v31 }
 0x33b   : > { %v3194_v51 = vadd.f32 %v3119_v34, %v2625_v16  ;;  %v2626_v43 = vadd.f32 %v2553_v44, %v6860_v59  ;;  %v5097_v9 = vpop.f32.mrb[23].mxu0  ;;  %3410 = sbr.rel (%p4383_p5) target bundleno = 907 (0x38b), region = 40  ;;  %v3704_v34 = vsel (!%p4383_p5), %vm3564_vm15, %v3494_v27, %v3634_v8  ;;  %v4465_v16 = vpack.c.bf16 (!%p4383_p5), %v3705_v5, %v3705_v5  ;;  %v3435_v7 = vld [vmem:[#allocation2 + $0xc0] sm:$0xff] (!%p4383_p5) }
 0x33c   : > { %v4464_v61 = vpack.c.bf16 (!%p4383_p5), %v3704_v34, %v3704_v34  ;;  %v4466_v44 = vpack.c.bf16 (!%p4383_p5), %v3706_v30, %v3706_v30  ;;  %v3638_v59 = vmul.f32 (!%p4383_p5), 0.2, %v3498_v38  ;;  %vm3575_vm11 = vcmp.ge.f32.partialorder (!%p4383_p5), %v3505_v20, 0.0 }
 0x33d   : > { %v3334_v19 = vadd.f32 %v3264_v28, %v3194_v51  ;;  %v3195_v21 = vadd.f32 %v3122_v33, %v2626_v43  ;;  %v3423_v33 = vld [vmem:[#allocation2 + $0x60] sm:$0xff] (!%p4383_p5)  ;;  %v3426_v28 = vld [vmem:[#allocation2 + $0x78] sm:$0xff] (!%p4383_p5)  ;;  %v3707_v51 = vsel (!%p4383_p5), %vm3567_vm2, %v3497_v45, %v3637_v32  ;;  %v3499_v43 = vadd.f32 (!%p4383_p5), %v6442_v12, %v3422_v6  ;;  %4056 = vst.msk [vmem:[%s6801_s3 + $0x1c] sm:$0xf] (!%p4383_p5), %vm4048_vm8, %v4465_v16  ;;  %v3433_v45 = vld [vmem:[#allocation2 + $0xb0] sm:$0xff] (!%p4383_p5) }
 0x33e   : > { %4055 = vst.msk [vmem:[%s6801_s3 + $0x18] sm:$0xf] (!%p4383_p5), %vm4048_vm8, %v4464_v61  ;;  %v4467_v9 = vpack.c.bf16 (!%p4383_p5), %v3707_v51, %v3707_v51  ;;  %4057 = vst.msk [vmem:[%s6801_s3 + $0x20] sm:$0xf] (!%p4383_p5), %vm4048_vm8, %v4466_v44  ;;  %v3503_v14 = vadd.f32 (!%p4383_p5), %v6442_v12, %v3426_v28  ;;  %v3645_v25 = vmul.f32 (!%p4383_p5), 0.2, %v3505_v20  ;;  %v3714_v17 = vsel (!%p4383_p5), %vm3574_vm10, %v3504_v31, %v3644_v41 }
 0x33f   : > { %3405 = vst.msk [vmem:[#allocation2 + $0x220] sm:$0xff] %vm3336_vm7, %v3334_v19  ;;  %v3335_v0 = vadd.f32 %v3265_v1, %v3195_v21  ;;  %v3500_v1 = vadd.f32 (!%p4383_p5), %v6442_v12, %v3423_v33  ;;  %v3501_v19 = vadd.f32 (!%p4383_p5), %v6442_v12, %v3424_v29  ;;  %v3502_v21 = vadd.f32 (!%p4383_p5), %v6442_v12, %v3425_v53  ;;  %v3436_v6 = vld [vmem:[#allocation2 + $0xc8] sm:$0xff] (!%p4383_p5)  ;;  %v3437_v44 = vld [vmem:[#allocation2 + $0xd0] sm:$0xff] (!%p4383_p5)  ;;  %v3438_v51 = vld [vmem:[#allocation2 + $0xd8] sm:$0xff] (!%p4383_p5) }
 0x340   : > { %vm3569_vm4 = vcmp.ge.f32.partialorder (!%p4383_p5), %v3499_v43, 0.0  ;;  %v3639_v58 = vmul.f32 (!%p4383_p5), 0.2, %v3499_v43  ;;  %4058 = vst.msk [vmem:[%s6801_s3 + $0x24] sm:$0xf] (!%p4383_p5), %vm4048_vm8, %v4467_v9  ;;  %vm3573_vm9 = vcmp.ge.f32.partialorder (!%p4383_p5), %v3503_v14, 0.0  ;;  %v3509_v27 = vadd.f32 (!%p4383_p5), %v6442_v12, %v3432_v36 }
 0x341   : > { %3406 = vst.msk [vmem:[#allocation2 + $0x228] sm:$0xff] %vm3336_vm7, %v3335_v0  ;;  %v3708_v0 = vsel (!%p4383_p5), %vm3568_vm3, %v3498_v38, %v3638_v59  ;;  %vm3570_vm5 = vcmp.ge.f32.partialorder (!%p4383_p5), %v3500_v1, 0.0  ;;  %v3640_v23 = vmul.f32 (!%p4383_p5), 0.2, %v3500_v1  ;;  %vm3571_vm6 = vcmp.ge.f32.partialorder (!%p4383_p5), %v3501_v19, 0.0  ;;  %v3434_v38 = vld [vmem:[#allocation2 + $0xb8] sm:$0xff] (!%p4383_p5) }
 0x342   : > { %v4468_v63 = vpack.c.bf16 %v3708_v0, %v3708_v0  ;;  %v3709_v50 = vsel %vm3569_vm4, %v3499_v43, %v3639_v58  ;;  %v3641_v62 = vmul.f32 0.2, %v3501_v19  ;;  %vm3572_vm7 = vcmp.ge.f32.partialorder %v3502_v21, 0.0  ;;  %v3439_v9 = vld [vmem:[#allocation2 + $0xe0] sm:$0xff] }
 0x343   : > { %v3642_v40 = vmul.f32 0.2, %v3502_v21  ;;  %v4469_v47 = vpack.c.bf16 %v3709_v50, %v3709_v50  ;;  %v3710_v11 = vsel %vm3570_vm5, %v3500_v1, %v3640_v23  ;;  %v3643_v18 = vmul.f32 0.2, %v3503_v14 }
 0x344   : > { %4059 = vst.msk [vmem:[%s6801_s3 + $0x28] sm:$0xf] %vm4048_vm8, %v4468_v63  ;;  %v4470_v56 = vpack.c.bf16 %v3710_v11, %v3710_v11  ;;  %v3711_v55 = vsel %vm3571_vm6, %v3501_v19, %v3641_v62  ;;  %vm3576_vm12 = vcmp.ge.f32.partialorder %v3506_v22, 0.0  ;;  %v3646_v4 = vmul.f32 0.2, %v3506_v22  ;;  %v3440_v62 = vld [vmem:[#allocation2 + $0xe8] sm:$0xff] }
 0x345   : > { %v3712_v2 = vsel %vm3572_vm7, %v3502_v21, %v3642_v40  ;;  %4060 = vst.msk [vmem:[%s6801_s3 + $0x2c] sm:$0xf] %vm4048_vm8, %v4469_v47  ;;  %v4471_v3 = vpack.c.bf16 %v3711_v55, %v3711_v55  ;;  %v3713_v54 = vsel %vm3573_vm9, %v3503_v14, %v3643_v18  ;;  %v4474_v48 = vpack.c.bf16 %v3714_v17, %v3714_v17  ;;  %v3441_v40 = vld [vmem:[#allocation2 + $0xf0] sm:$0xff]  ;;  %v3442_v18 = vld [vmem:[#allocation2 + $0xf8] sm:$0xff] }
 0x346   : > { %v4472_v42 = vpack.c.bf16 %v3712_v2, %v3712_v2  ;;  %4061 = vst.msk [vmem:[%s6801_s3 + $0x30] sm:$0xf] %vm4048_vm8, %v4470_v56  ;;  %v4473_v37 = vpack.c.bf16 %v3713_v54, %v3713_v54  ;;  %v3715_v60 = vsel %vm3575_vm11, %v3505_v20, %v3645_v25  ;;  %vm3577_vm13 = vcmp.ge.f32.partialorder %v3507_v57, 0.0  ;;  %v3445_v25 = vld [vmem:[#allocation2 + $0x110] sm:$0xff] }
 0x347   : > { %4062 = vst.msk [vmem:[%s6801_s3 + $0x34] sm:$0xf] %vm4048_vm8, %v4471_v3  ;;  %v3647_v49 = vmul.f32 0.2, %v3507_v57  ;;  %v4475_v8 = vpack.c.bf16 %v3715_v60, %v3715_v60  ;;  %v3716_v35 = vsel %vm3576_vm12, %v3506_v22, %v3646_v4  ;;  %vm3578_vm14 = vcmp.ge.f32.partialorder %v3508_v24, 0.0  ;;  %v3444_v22 = vld [vmem:[#allocation2 + $0x108] sm:$0xff] }
 0x348   : > { %4063 = vst.msk [vmem:[%s6801_s3 + $0x38] sm:$0xf] %vm4048_vm8, %v4472_v42  ;;  %4064 = vst.msk [vmem:[%s6801_s3 + $0x3c] sm:$0xf] %vm4048_vm8, %v4473_v37  ;;  %v3648_v15 = vmul.f32 0.2, %v3508_v24  ;;  %v4476_v46 = vpack.c.bf16 %v3716_v35, %v3716_v35  ;;  %v3510_v29 = vadd.f32 %v6442_v12, %v3433_v45  ;;  %v3511_v53 = vadd.f32 %v6442_v12, %v3434_v38 }
 0x349   : > { %4065 = vst.msk [vmem:[%s6801_s3 + $0x40] sm:$0xf] %vm4048_vm8, %v4474_v48  ;;  %v3717_v34 = vsel %vm3577_vm13, %v3507_v57, %v3647_v49  ;;  %vm3579_vm15 = vcmp.ge.f32.partialorder %v3509_v27, 0.0  ;;  %v3649_v5 = vmul.f32 0.2, %v3509_v27  ;;  %v3512_v30 = vadd.f32 %v6442_v12, %v3435_v7  ;;  %v3446_v38 = vld [vmem:[#allocation2 + $0x118] sm:$0xff] }
 0x34a   : > { %4066 = vst.msk [vmem:[%s6801_s3 + $0x44] sm:$0xf] %vm4048_vm8, %v4475_v8  ;;  %v4477_v32 = vpack.c.bf16 %v3717_v34, %v3717_v34  ;;  %v3718_v33 = vsel %vm3578_vm14, %v3508_v24, %v3648_v15  ;;  %4067 = vst.msk [vmem:[%s6801_s3 + $0x48] sm:$0xf] %vm4048_vm8, %v4476_v46  ;;  %v3513_v28 = vadd.f32 %v6442_v12, %v3436_v6  ;;  %vm3580_vm0 = vcmp.ge.f32.partialorder %v3510_v29, 0.0  ;;  %v3447_v8 = vld [vmem:[#allocation2 + $0x120] sm:$0xff] }
 0x34b   : > { %v4478_v61 = vpack.c.bf16 %v3718_v33, %v3718_v33  ;;  %v3719_v16 = vsel %vm3579_vm15, %v3509_v27, %v3649_v5  ;;  %v3650_v43 = vmul.f32 0.2, %v3510_v29  ;;  %vm3581_vm1 = vcmp.ge.f32.partialorder %v3511_v53, 0.0  ;;  %v3448_v46 = vld [vmem:[#allocation2 + $0x128] sm:$0xff]  ;;  %v3449_v34 = vld [vmem:[#allocation2 + $0x130] sm:$0xff]  ;;  %v3450_v5 = vld [vmem:[#allocation2 + $0x138] sm:$0xff] }
 0x34c   : > { %4068 = vst.msk [vmem:[%s6801_s3 + $0x4c] sm:$0xf] %vm4048_vm8, %v4477_v32  ;;  %v4479_v59 = vpack.c.bf16 %v3719_v16, %v3719_v16  ;;  %v3651_v1 = vmul.f32 0.2, %v3511_v53  ;;  %vm3582_vm2 = vcmp.ge.f32.partialorder %v3512_v30, 0.0  ;;  %vm3583_vm3 = vcmp.ge.f32.partialorder %v3513_v28, 0.0 }
 0x34d   : > { %4069 = vst.msk [vmem:[%s6801_s3 + $0x50] sm:$0xf] %vm4048_vm8, %v4478_v61  ;;  %v3652_v19 = vmul.f32 0.2, %v3512_v30  ;;  %v3720_v21 = vsel %vm3580_vm0, %v3510_v29, %v3650_v43  ;;  %v3653_v0 = vmul.f32 0.2, %v3513_v28  ;;  %v3514_v58 = vadd.f32 %v6442_v12, %v3437_v44 }
 0x34e   : > { %4070 = vst.msk [vmem:[%s6801_s3 + $0x54] sm:$0xf] %vm4048_vm8, %v4479_v59  ;;  %v3515_v14 = vadd.f32 %v6442_v12, %v3438_v51  ;;  %v4480_v63 = vpack.c.bf16 %v3720_v21, %v3720_v21  ;;  %v3721_v23 = vsel %vm3581_vm1, %v3511_v53, %v3651_v1  ;;  %v3516_v50 = vadd.f32 %v6442_v12, %v3439_v9  ;;  %v3451_v21 = vld [vmem:[#allocation2 + $0x140] sm:$0xff] }
 0x34f   : > { %v3722_v10 = vsel %vm3582_vm2, %v3512_v30, %v3652_v19  ;;  %v4481_v52 = vpack.c.bf16 %v3721_v23, %v3721_v23  ;;  %v3723_v11 = vsel %vm3583_vm3, %v3513_v28, %v3653_v0  ;;  %vm3584_vm4 = vcmp.ge.f32.partialorder %v3514_v58, 0.0 }
 0x350   : > { %v4482_v47 = vpack.c.bf16 %v3722_v10, %v3722_v10  ;;  %4071 = vst.msk [vmem:[%s6801_s3 + $0x58] sm:$0xf] %vm4048_vm8, %v4480_v63  ;;  %v4483_v56 = vpack.c.bf16 %v3723_v11, %v3723_v11  ;;  %v3654_v55 = vmul.f32 0.2, %v3514_v58  ;;  %vm3585_vm5 = vcmp.ge.f32.partialorder %v3515_v14, 0.0  ;;  %v3452_v63 = vld [vmem:[#allocation2 + $0x148] sm:$0xff] }
 0x351   : > { %v3655_v2 = vmul.f32 0.2, %v3515_v14  ;;  %4072 = vst.msk [vmem:[%s6801_s3 + $0x5c] sm:$0xf] %vm4048_vm8, %v4481_v52  ;;  %vm3586_vm6 = vcmp.ge.f32.partialorder %v3516_v50, 0.0  ;;  %v3517_v13 = vadd.f32 %v6442_v12, %v3440_v62  ;;  %v3518_v39 = vadd.f32 %v6442_v12, %v3441_v40  ;;  %v3453_v62 = vld [vmem:[#allocation2 + $0x150] sm:$0xff] }
 0x352   : > { %4073 = vst.msk [vmem:[%s6801_s3 + $0x60] sm:$0xf] %vm4048_vm8, %v4482_v47  ;;  %v3656_v31 = vmul.f32 0.2, %v3516_v50  ;;  %4074 = vst.msk [vmem:[%s6801_s3 + $0x64] sm:$0xf] %vm4048_vm8, %v4483_v56  ;;  %v3724_v3 = vsel %vm3584_vm4, %v3514_v58, %v3654_v55  ;;  %v3519_v54 = vadd.f32 %v6442_v12, %v3442_v18  ;;  %v3520_v20 = vadd.f32 %v6442_v12, %v3443_v26 }
 0x353   : > { %v3725_v42 = vsel %vm3585_vm5, %v3515_v14, %v3655_v2  ;;  %v4484_v36 = vpack.c.bf16 %v3724_v3, %v3724_v3  ;;  %vm3587_vm7 = vcmp.ge.f32.partialorder %v3517_v13, 0.0  ;;  %v3657_v24 = vmul.f32 0.2, %v3517_v13  ;;  %v3454_v18 = vld [vmem:[#allocation2 + $0x158] sm:$0xff]  ;;  %v3455_v26 = vld [vmem:[#allocation2 + $0x160] sm:$0xff] }
 0x354   : > { %v4485_v37 = vpack.c.bf16 %v3725_v42, %v3725_v42  ;;  %v3726_v41 = vsel %vm3586_vm6, %v3516_v50, %v3656_v31  ;;  %vm3588_vm9 = vcmp.ge.f32.partialorder %v3518_v39, 0.0  ;;  %v3658_v17 = vmul.f32 0.2, %v3518_v39 }
 0x355   : > { %v4486_v57 = vpack.c.bf16 %v3726_v41, %v3726_v41  ;;  %4075 = vst.msk [vmem:[%s6801_s3 + $0x68] sm:$0xf] %vm4048_vm8, %v4484_v36  ;;  %vm3589_vm10 = vcmp.ge.f32.partialorder %v3519_v54, 0.0  ;;  %v3659_v4 = vmul.f32 0.2, %v3519_v54  ;;  %vm3590_vm11 = vcmp.ge.f32.partialorder %v3520_v20, 0.0 }
 0x356   : > { %4076 = vst.msk [vmem:[%s6801_s3 + $0x6c] sm:$0xf] %vm4048_vm8, %v4485_v37  ;;  %v3660_v27 = vmul.f32 0.2, %v3520_v20  ;;  %v3727_v48 = vsel %vm3587_vm7, %v3517_v13, %v3657_v24  ;;  %v3728_v60 = vsel %vm3588_vm9, %v3518_v39, %v3658_v17  ;;  %v3521_v49 = vadd.f32 %v6442_v12, %v3444_v22  ;;  %v3456_v13 = vld [vmem:[#allocation2 + $0x168] sm:$0xff]  ;;  %v3457_v17 = vld [vmem:[#allocation2 + $0x170] sm:$0xff] }
 0x357   : > { %4077 = vst.msk [vmem:[%s6801_s3 + $0x70] sm:$0xf] %vm4048_vm8, %v4486_v57  ;;  %v3522_v45 = vadd.f32 %v6442_v12, %v3445_v25  ;;  %v4487_v35 = vpack.c.bf16 %v3727_v48, %v3727_v48  ;;  %v4488_v15 = vpack.c.bf16 %v3728_v60, %v3728_v60  ;;  %v3729_v7 = vsel %vm3589_vm10, %v3519_v54, %v3659_v4  ;;  %v3458_v4 = vld [vmem:[#allocation2 + $0x178] sm:$0xff] }
 0x358   : > { %v3730_v6 = vsel %vm3590_vm11, %v3520_v20, %v3660_v27  ;;  %v4489_v32 = vpack.c.bf16 %v3729_v7, %v3729_v7  ;;  %vm3591_vm12 = vcmp.ge.f32.partialorder %v3521_v49, 0.0  ;;  %v3661_v29 = vmul.f32 0.2, %v3521_v49 }
 0x359   : > { %v4490_v33 = vpack.c.bf16 %v3730_v6, %v3730_v6  ;;  %4078 = vst.msk [vmem:[%s6801_s3 + $0x74] sm:$0xf] %vm4048_vm8, %v4487_v35  ;;  %4079 = vst.msk [vmem:[%s6801_s3 + $0x78] sm:$0xf] %vm4048_vm8, %v4488_v15  ;;  %vm3592_vm13 = vcmp.ge.f32.partialorder %v3522_v45, 0.0  ;;  %v3523_v61 = vadd.f32 %v6442_v12, %v3446_v38  ;;  %v3524_v16 = vadd.f32 %v6442_v12, %v3447_v8 }
 0x35a   : > { %v3662_v53 = vmul.f32 0.2, %v3522_v45  ;;  %4080 = vst.msk [vmem:[%s6801_s3 + $0x7c] sm:$0xf] %vm4048_vm8, %v4489_v32  ;;  %v3731_v30 = vsel %vm3591_vm12, %v3521_v49, %v3661_v29  ;;  %v3525_v28 = vadd.f32 %v6442_v12, %v3448_v46  ;;  %v3526_v44 = vadd.f32 %v6442_v12, %v3449_v34  ;;  %v3459_v49 = vld [vmem:[#allocation2 + $0x180] sm:$0xff]  ;;  %v3461_v29 = vld [vmem:[#allocation2 + $0x190] sm:$0xff] }
 0x35b   : > { %4081 = vst.msk [vmem:[%s6801_s3 + $0x80] sm:$0xf] %vm4048_vm8, %v4490_v33  ;;  %v3527_v51 = vadd.f32 %v6442_v12, %v3450_v5  ;;  %v4491_v59 = vpack.c.bf16 %v3731_v30, %v3731_v30  ;;  %vm3593_vm14 = vcmp.ge.f32.partialorder %v3523_v61, 0.0  ;;  %v3663_v9 = vmul.f32 0.2, %v3523_v61  ;;  %v3463_v30 = vld [vmem:[#allocation2 + $0x1a0] sm:$0xff] }
 0x35c   : > { %v3732_v43 = vsel %vm3592_vm13, %v3522_v45, %v3662_v53  ;;  %vm3594_vm15 = vcmp.ge.f32.partialorder %v3524_v16, 0.0  ;;  %v3664_v19 = vmul.f32 0.2, %v3524_v16  ;;  %vm3595_vm0 = vcmp.ge.f32.partialorder %v3525_v28, 0.0  ;;  %v3460_v45 = vld [vmem:[#allocation2 + $0x188] sm:$0xff]  ;;  %v3462_v53 = vld [vmem:[#allocation2 + $0x198] sm:$0xff] }
 0x35d   : > { %v4492_v1 = vpack.c.bf16 %v3732_v43, %v3732_v43  ;;  %4082 = vst.msk [vmem:[%s6801_s3 + $0x84] sm:$0xf] %vm4048_vm8, %v4491_v59  ;;  %v3733_v0 = vsel %vm3593_vm14, %v3523_v61, %v3663_v9  ;;  %v3665_v58 = vmul.f32 0.2, %v3525_v28  ;;  %vm3596_vm1 = vcmp.ge.f32.partialorder %v3526_v44, 0.0 }
 0x35e   : > { %v3666_v14 = vmul.f32 0.2, %v3526_v44  ;;  %v4493_v23 = vpack.c.bf16 %v3733_v0, %v3733_v0  ;;  %v3734_v10 = vsel %vm3594_vm15, %v3524_v16, %v3664_v19  ;;  %vm3597_vm2 = vcmp.ge.f32.partialorder %v3527_v51, 0.0 }
 0x35f   : > { %4083 = vst.msk [vmem:[%s6801_s3 + $0x88] sm:$0xf] %vm4048_vm8, %v4492_v1  ;;  %v3667_v50 = vmul.f32 0.2, %v3527_v51  ;;  %v4494_v40 = vpack.c.bf16 %v3734_v10, %v3734_v10  ;;  %v3735_v52 = vsel %vm3595_vm0, %v3525_v28, %v3665_v58  ;;  %v3528_v11 = vadd.f32 %v6442_v12, %v3451_v21  ;;  %v3464_v58 = vld [vmem:[#allocation2 + $0x1a8] sm:$0xff] }
 0x360   : > { %v3736_v47 = vsel %vm3596_vm1, %v3526_v44, %v3666_v14  ;;  %4084 = vst.msk [vmem:[%s6801_s3 + $0x8c] sm:$0xf] %vm4048_vm8, %v4493_v23  ;;  %v4495_v56 = vpack.c.bf16 %v3735_v52, %v3735_v52  ;;  %v3529_v31 = vadd.f32 %v6442_v12, %v3452_v63  ;;  %v3530_v42 = vadd.f32 %v6442_v12, %v3453_v62  ;;  %v3465_v14 = vld [vmem:[#allocation2 + $0x1b0] sm:$0xff]  ;;  %v3467_v62 = vld [vmem:[#allocation2 + $0x1c0] sm:$0xff] }
 0x361   : > { %v4496_v55 = vpack.c.bf16 %v3736_v47, %v3736_v47  ;;  %v3737_v2 = vsel %vm3597_vm2, %v3527_v51, %v3667_v50  ;;  %4085 = vst.msk [vmem:[%s6801_s3 + $0x90] sm:$0xf] %vm4048_vm8, %v4494_v40  ;;  %vm3598_vm3 = vcmp.ge.f32.partialorder %v3528_v11, 0.0  ;;  %v3668_v3 = vmul.f32 0.2, %v3528_v11  ;;  %v3466_v50 = vld [vmem:[#allocation2 + $0x1b8] sm:$0xff] }
 0x362   : > { %v4497_v39 = vpack.c.bf16 %v3737_v2, %v3737_v2  ;;  %4086 = vst.msk [vmem:[%s6801_s3 + $0x94] sm:$0xf] %vm4048_vm8, %v4495_v56  ;;  %vm3599_vm4 = vcmp.ge.f32.partialorder %v3529_v31, 0.0  ;;  %v3669_v54 = vmul.f32 0.2, %v3529_v31  ;;  %v3531_v20 = vadd.f32 %v6442_v12, %v3454_v18 }
 0x363   : > { %4087 = vst.msk [vmem:[%s6801_s3 + $0x98] sm:$0xf] %vm4048_vm8, %v4496_v55  ;;  %v3532_v36 = vadd.f32 %v6442_v12, %v3455_v26  ;;  %v3738_v37 = vsel %vm3598_vm3, %v3528_v11, %v3668_v3  ;;  %vm3600_vm5 = vcmp.ge.f32.partialorder %v3530_v42, 0.0  ;;  %v3670_v41 = vmul.f32 0.2, %v3530_v42 }
 0x364   : > { %4088 = vst.msk [vmem:[%s6801_s3 + $0x9c] sm:$0xf] %vm4048_vm8, %v4497_v39  ;;  %v3533_v22 = vadd.f32 %v6442_v12, %v3456_v13  ;;  %v4498_v25 = vpack.c.bf16 %v3738_v37, %v3738_v37  ;;  %v3739_v57 = vsel %vm3599_vm4, %v3529_v31, %v3669_v54  ;;  %vm3601_vm6 = vcmp.ge.f32.partialorder %v3531_v20, 0.0  ;;  %v3469_v54 = vld [vmem:[#allocation2 + $0x1d0] sm:$0xff] }
 0x365   : > { %v3671_v24 = vmul.f32 0.2, %v3531_v20  ;;  %v4499_v27 = vpack.c.bf16 %v3739_v57, %v3739_v57  ;;  %v3740_v48 = vsel %vm3600_vm5, %v3530_v42, %v3670_v41  ;;  %vm3602_vm7 = vcmp.ge.f32.partialorder %v3532_v36, 0.0  ;;  %v3468_v42 = vld [vmem:[#allocation2 + $0x1c8] sm:$0xff] }
 0x366   : > { %v3672_v60 = vmul.f32 0.2, %v3532_v36  ;;  %4089 = vst.msk [vmem:[%s6801_s3 + $0xa0] sm:$0xf] %vm4048_vm8, %v4498_v25  ;;  %v4500_v38 = vpack.c.bf16 %v3740_v48, %v3740_v48  ;;  %vm3603_vm9 = vcmp.ge.f32.partialorder %v3533_v22, 0.0  ;;  %v3534_v6 = vadd.f32 %v6442_v12, %v3457_v17 }
 0x367   : > { %v3741_v8 = vsel %vm3601_vm6, %v3531_v20, %v3671_v24  ;;  %v3673_v35 = vmul.f32 0.2, %v3533_v22  ;;  %4090 = vst.msk [vmem:[%s6801_s3 + $0xa4] sm:$0xf] %vm4048_vm8, %v4499_v27  ;;  %v3535_v46 = vadd.f32 %v6442_v12, %v3458_v4  ;;  %v3536_v32 = vadd.f32 %v6442_v12, %v3459_v49  ;;  %v3470_v4 = vld [vmem:[#allocation2 + $0x1d8] sm:$0xff]  ;;  %v3471_v27 = vld [vmem:[#allocation2 + $0x1e0] sm:$0xff] }
 0x368   : > { %v4501_v15 = vpack.c.bf16 %v3741_v8, %v3741_v8  ;;  %v3742_v7 = vsel %vm3602_vm7, %v3532_v36, %v3672_v60  ;;  %4091 = vst.msk [vmem:[%s6801_s3 + $0xa8] sm:$0xf] %vm4048_vm8, %v4500_v38  ;;  %v3537_v33 = vadd.f32 %v6442_v12, %v3460_v45  ;;  %vm3604_vm10 = vcmp.ge.f32.partialorder %v3534_v6, 0.0  ;;  %v3472_v38 = vld [vmem:[#allocation2 + $0x1e8] sm:$0xff]  ;;  %v3473_v8 = vld [vmem:[#allocation2 + $0x1f0] sm:$0xff] }
 0x369   : > { %v4502_v34 = vpack.c.bf16 %v3742_v7, %v3742_v7  ;;  %v3743_v5 = vsel %vm3603_vm9, %v3533_v22, %v3673_v35  ;;  %v3674_v16 = vmul.f32 0.2, %v3534_v6  ;;  %vm3605_vm11 = vcmp.ge.f32.partialorder %v3535_v46, 0.0  ;;  %v3474_v35 = vld [vmem:[#allocation2 + $0x1f8] sm:$0xff] }
 0x36a   : > { %4092 = vst.msk [vmem:[%s6801_s3 + $0xac] sm:$0xf] %vm4048_vm8, %v4501_v15  ;;  %v4503_v61 = vpack.c.bf16 %v3743_v5, %v3743_v5  ;;  %v3675_v28 = vmul.f32 0.2, %v3535_v46  ;;  %vm3606_vm12 = vcmp.ge.f32.partialorder %v3536_v32, 0.0  ;;  %vm3607_vm13 = vcmp.ge.f32.partialorder %v3537_v33, 0.0 }
 0x36b   : > { %4093 = vst.msk [vmem:[%s6801_s3 + $0xb0] sm:$0xf] %vm4048_vm8, %v4502_v34  ;;  %v3676_v44 = vmul.f32 0.2, %v3536_v32  ;;  %v3744_v51 = vsel %vm3604_vm10, %v3534_v6, %v3674_v16  ;;  %v3677_v59 = vmul.f32 0.2, %v3537_v33  ;;  %v3538_v43 = vadd.f32 %v6442_v12, %v3461_v29 }
 0x36c   : > { %4094 = vst.msk [vmem:[%s6801_s3 + $0xb4] sm:$0xf] %vm4048_vm8, %v4503_v61  ;;  %v3539_v9 = vadd.f32 %v6442_v12, %v3462_v53  ;;  %v4504_v1 = vpack.c.bf16 %v3744_v51, %v3744_v51  ;;  %v3745_v19 = vsel %vm3605_vm11, %v3535_v46, %v3675_v28  ;;  %v3540_v0 = vadd.f32 %v6442_v12, %v3463_v30  ;;  %v3475_v51 = vld [vmem:[#allocation2 + $0x200] sm:$0xff] }
 0x36d   : > { %v3746_v21 = vsel %vm3606_vm12, %v3536_v32, %v3676_v44  ;;  %v4505_v63 = vpack.c.bf16 %v3745_v19, %v3745_v19  ;;  %v3747_v10 = vsel %vm3607_vm13, %v3537_v33, %v3677_v59  ;;  %vm3608_vm14 = vcmp.ge.f32.partialorder %v3538_v43, 0.0 }
 0x36e   : > { %v4506_v23 = vpack.c.bf16 %v3746_v21, %v3746_v21  ;;  %4095 = vst.msk [vmem:[%s6801_s3 + $0xb8] sm:$0xf] %vm4048_vm8, %v4504_v1  ;;  %v4507_v40 = vpack.c.bf16 %v3747_v10, %v3747_v10  ;;  %v3678_v52 = vmul.f32 0.2, %v3538_v43  ;;  %vm3609_vm15 = vcmp.ge.f32.partialorder %v3539_v9, 0.0  ;;  %v3476_v1 = vld [vmem:[#allocation2 + $0x208] sm:$0xff] }
 0x36f   : > { %v3679_v47 = vmul.f32 0.2, %v3539_v9  ;;  %4096 = vst.msk [vmem:[%s6801_s3 + $0xbc] sm:$0xf] %vm4048_vm8, %v4505_v63  ;;  %vm3610_vm0 = vcmp.ge.f32.partialorder %v3540_v0, 0.0  ;;  %v3541_v18 = vadd.f32 %v6442_v12, %v3464_v58  ;;  %v3542_v26 = vadd.f32 %v6442_v12, %v3465_v14  ;;  %v3477_v58 = vld [vmem:[#allocation2 + $0x210] sm:$0xff] }
 0x370   : > { %4097 = vst.msk [vmem:[%s6801_s3 + $0xc0] sm:$0xf] %vm4048_vm8, %v4506_v23  ;;  %v3680_v11 = vmul.f32 0.2, %v3540_v0  ;;  %4098 = vst.msk [vmem:[%s6801_s3 + $0xc4] sm:$0xf] %vm4048_vm8, %v4507_v40  ;;  %v3748_v56 = vsel %vm3608_vm14, %v3538_v43, %v3678_v52  ;;  %v3543_v2 = vadd.f32 %v6442_v12, %v3466_v50  ;;  %v3544_v31 = vadd.f32 %v6442_v12, %v3467_v62 }
 0x371   : > { %v3749_v55 = vsel %vm3609_vm15, %v3539_v9, %v3679_v47  ;;  %v4508_v13 = vpack.c.bf16 %v3748_v56, %v3748_v56  ;;  %vm3611_vm1 = vcmp.ge.f32.partialorder %v3541_v18, 0.0  ;;  %v3681_v36 = vmul.f32 0.2, %v3541_v18  ;;  %v3478_v50 = vld [vmem:[#allocation2 + $0x218] sm:$0xff]  ;;  %v3479_v62 = vld [vmem:[#allocation2 + $0x220] sm:$0xff] }
 0x372   : > { %v4509_v39 = vpack.c.bf16 %v3749_v55, %v3749_v55  ;;  %v3750_v3 = vsel %vm3610_vm0, %v3540_v0, %v3680_v11  ;;  %vm3612_vm2 = vcmp.ge.f32.partialorder %v3542_v26, 0.0  ;;  %v3682_v37 = vmul.f32 0.2, %v3542_v26 }
 0x373   : > { %v4510_v20 = vpack.c.bf16 %v3750_v3, %v3750_v3  ;;  %4099 = vst.msk [vmem:[%s6801_s3 + $0xc8] sm:$0xf] %vm4048_vm8, %v4508_v13  ;;  %vm3613_vm3 = vcmp.ge.f32.partialorder %v3543_v2, 0.0  ;;  %v3683_v41 = vmul.f32 0.2, %v3543_v2  ;;  %vm3614_vm4 = vcmp.ge.f32.partialorder %v3544_v31, 0.0 }
 0x374   : > { %4100 = vst.msk [vmem:[%s6801_s3 + $0xcc] sm:$0xf] %vm4048_vm8, %v4509_v39  ;;  %v3684_v22 = vmul.f32 0.2, %v3544_v31  ;;  %v3751_v25 = vsel %vm3611_vm1, %v3541_v18, %v3681_v36  ;;  %v3752_v57 = vsel %vm3612_vm2, %v3542_v26, %v3682_v37  ;;  %v3545_v24 = vadd.f32 %v6442_v12, %v3468_v42  ;;  %v3480_v18 = vld [vmem:[#allocation2 + $0x228] sm:$0xff] }
 0x375   : > { %4101 = vst.msk [vmem:[%s6801_s3 + $0xd0] sm:$0xf] %vm4048_vm8, %v4510_v20  ;;  %v3546_v17 = vadd.f32 %v6442_v12, %v3469_v54  ;;  %v4511_v48 = vpack.c.bf16 %v3751_v25, %v3751_v25  ;;  %v4512_v60 = vpack.c.bf16 %v3752_v57, %v3752_v57  ;;  %v3753_v49 = vsel %vm3613_vm3, %v3543_v2, %v3683_v41 }
 0x376   : > { %v3754_v45 = vsel %vm3614_vm4, %v3544_v31, %v3684_v22  ;;  %v4513_v15 = vpack.c.bf16 %v3753_v49, %v3753_v49  ;;  %vm3615_vm5 = vcmp.ge.f32.partialorder %v3545_v24, 0.0  ;;  %v3685_v6 = vmul.f32 0.2, %v3545_v24 }
 0x377   : > { %v4514_v7 = vpack.c.bf16 %v3754_v45, %v3754_v45  ;;  %4102 = vst.msk [vmem:[%s6801_s3 + $0xd4] sm:$0xf] %vm4048_vm8, %v4511_v48  ;;  %4103 = vst.msk [vmem:[%s6801_s3 + $0xd8] sm:$0xf] %vm4048_vm8, %v4512_v60  ;;  %vm3616_vm6 = vcmp.ge.f32.partialorder %v3546_v17, 0.0  ;;  %v3547_v34 = vadd.f32 %v6442_v12, %v3470_v4  ;;  %v3548_v5 = vadd.f32 %v6442_v12, %v3471_v27 }
 0x378   : > { %v3686_v46 = vmul.f32 0.2, %v3546_v17  ;;  %4104 = vst.msk [vmem:[%s6801_s3 + $0xdc] sm:$0xf] %vm4048_vm8, %v4513_v15  ;;  %v3755_v32 = vsel %vm3615_vm5, %v3545_v24, %v3685_v6  ;;  %v3549_v33 = vadd.f32 %v6442_v12, %v3472_v38  ;;  %v3550_v29 = vadd.f32 %v6442_v12, %v3473_v8 }
 0x379   : > { %4105 = vst.msk [vmem:[%s6801_s3 + $0xe0] sm:$0xf] %vm4048_vm8, %v4514_v7  ;;  %v3551_v53 = vadd.f32 %v6442_v12, %v3474_v35  ;;  %v4515_v61 = vpack.c.bf16 %v3755_v32, %v3755_v32  ;;  %vm3617_vm7 = vcmp.ge.f32.partialorder %v3547_v34, 0.0  ;;  %v3687_v30 = vmul.f32 0.2, %v3547_v34 }
 0x37a   : > { %v3756_v16 = vsel %vm3616_vm6, %v3546_v17, %v3686_v46  ;;  %vm3618_vm9 = vcmp.ge.f32.partialorder %v3548_v5, 0.0  ;;  %v3688_v44 = vmul.f32 0.2, %v3548_v5  ;;  %vm3619_vm10 = vcmp.ge.f32.partialorder %v3549_v33, 0.0 }
 0x37b   : > { %v4516_v28 = vpack.c.bf16 %v3756_v16, %v3756_v16  ;;  %4106 = vst.msk [vmem:[%s6801_s3 + $0xe4] sm:$0xf] %vm4048_vm8, %v4515_v61  ;;  %v3757_v59 = vsel %vm3617_vm7, %v3547_v34, %v3687_v30  ;;  %v3689_v43 = vmul.f32 0.2, %v3549_v33  ;;  %vm3620_vm11 = vcmp.ge.f32.partialorder %v3550_v29, 0.0 }
 0x37c   : > { %v3690_v9 = vmul.f32 0.2, %v3550_v29  ;;  %v4517_v19 = vpack.c.bf16 %v3757_v59, %v3757_v59  ;;  %v3758_v21 = vsel %vm3618_vm9, %v3548_v5, %v3688_v44  ;;  %vm3621_vm12 = vcmp.ge.f32.partialorder %v3551_v53, 0.0 }
 0x37d   : > { %4107 = vst.msk [vmem:[%s6801_s3 + $0xe8] sm:$0xf] %vm4048_vm8, %v4516_v28  ;;  %v3691_v0 = vmul.f32 0.2, %v3551_v53  ;;  %v4518_v14 = vpack.c.bf16 %v3758_v21, %v3758_v21  ;;  %v3759_v63 = vsel %vm3619_vm10, %v3549_v33, %v3689_v43  ;;  %v3552_v10 = vadd.f32 %v6442_v12, %v3475_v51 }
 0x37e   : > { %v3760_v23 = vsel %vm3620_vm11, %v3550_v29, %v3690_v9  ;;  %4108 = vst.msk [vmem:[%s6801_s3 + $0xec] sm:$0xf] %vm4048_vm8, %v4517_v19  ;;  %v4519_v40 = vpack.c.bf16 %v3759_v63, %v3759_v63  ;;  %v3553_v11 = vadd.f32 %v6442_v12, %v3476_v1  ;;  %v3554_v55 = vadd.f32 %v6442_v12, %v3477_v58 }
 0x37f   : > { %v4520_v52 = vpack.c.bf16 %v3760_v23, %v3760_v23  ;;  %v3761_v47 = vsel %vm3621_vm12, %v3551_v53, %v3691_v0  ;;  %4109 = vst.msk [vmem:[%s6801_s3 + $0xf0] sm:$0xf] %vm4048_vm8, %v4518_v14  ;;  %vm3622_vm13 = vcmp.ge.f32.partialorder %v3552_v10, 0.0  ;;  %v3692_v56 = vmul.f32 0.2, %v3552_v10 }
 0x380   : > { %v4521_v26 = vpack.c.bf16 %v3761_v47, %v3761_v47  ;;  %4110 = vst.msk [vmem:[%s6801_s3 + $0xf4] sm:$0xf] %vm4048_vm8, %v4519_v40  ;;  %vm3623_vm14 = vcmp.ge.f32.partialorder %v3553_v11, 0.0  ;;  %v3693_v2 = vmul.f32 0.2, %v3553_v11  ;;  %v3555_v31 = vadd.f32 %v6442_v12, %v3478_v50 }
 0x381   : > { %4111 = vst.msk [vmem:[%s6801_s3 + $0xf8] sm:$0xf] %vm4048_vm8, %v4520_v52  ;;  %v3556_v13 = vadd.f32 %v6442_v12, %v3479_v62  ;;  %v3762_v39 = vsel %vm3622_vm13, %v3552_v10, %v3692_v56  ;;  %vm3624_vm15 = vcmp.ge.f32.partialorder %v3554_v55, 0.0  ;;  %v3694_v3 = vmul.f32 0.2, %v3554_v55 }
 0x382   : > { %4112 = vst.msk [vmem:[%s6801_s3 + $0xfc] sm:$0xf] %vm4048_vm8, %v4521_v26  ;;  %v3557_v42 = vadd.f32 %v6442_v12, %v3480_v18  ;;  %v4522_v54 = vpack.c.bf16 %v3762_v39, %v3762_v39  ;;  %v3763_v20 = vsel %vm3623_vm14, %v3553_v11, %v3693_v2  ;;  %vm3625_vm0 = vcmp.ge.f32.partialorder %v3555_v31, 0.0 }
 0x383   : > { %v3695_v36 = vmul.f32 0.2, %v3555_v31  ;;  %v4523_v37 = vpack.c.bf16 %v3763_v20, %v3763_v20  ;;  %v3764_v41 = vsel %vm3624_vm15, %v3554_v55, %v3694_v3  ;;  %vm3626_vm1 = vcmp.ge.f32.partialorder %v3556_v13, 0.0 }
 0x384   : > { %v3696_v22 = vmul.f32 0.2, %v3556_v13  ;;  %4113 = vst.msk [vmem:[%s6801_s3 + $0x100] sm:$0xf] %vm4048_vm8, %v4522_v54  ;;  %v4524_v25 = vpack.c.bf16 %v3764_v41, %v3764_v41  ;;  %vm3627_vm2 = vcmp.ge.f32.partialorder %v3557_v42, 0.0 }
 0x385   : > { %v3765_v57 = vsel %vm3625_vm0, %v3555_v31, %v3695_v36  ;;  %v3697_v24 = vmul.f32 0.2, %v3557_v42  ;;  %4114 = vst.msk [vmem:[%s6801_s3 + $0x104] sm:$0xf] %vm4048_vm8, %v4523_v37 }
 0x386   : > { %v4525_v12 = vpack.c.bf16 %v3765_v57, %v3765_v57  ;;  %v3766_v17 = vsel %vm3626_vm1, %v3556_v13, %v3696_v22  ;;  %4115 = vst.msk [vmem:[%s6801_s3 + $0x108] sm:$0xf] %vm4048_vm8, %v4524_v25 }
 0x387   : > { %v4526_v4 = vpack.c.bf16 %v3766_v17, %v3766_v17  ;;  %v3767_v27 = vsel %vm3627_vm2, %v3557_v42, %v3697_v24 }
 0x388   : > { %4116 = vst.msk [vmem:[%s6801_s3 + $0x10c] sm:$0xf] %vm4048_vm8, %v4525_v12  ;;  %v4527_v48 = vpack.c.bf16 %v3767_v27, %v3767_v27 }
 0x389   : > { %4117 = vst.msk [vmem:[%s6801_s3 + $0x110] sm:$0xf] %vm4048_vm8, %v4526_v4 }
 0x38a   : > { %4118 = vst.msk [vmem:[%s6801_s3 + $0x114] sm:$0xf] %vm4048_vm8, %v4527_v48 }
 0x38b PF: > { %s13_s12 = sadd.s32 1, %s5332_s12  }
 0x38c   : > { %p10_p6 = scmp.ge.s32.totalorder %s13_s12, 6  }
 0x38e   :  { %12 = sbr.rel (!%p10_p6) target bundleno = 1 (0x1), region = 72 }

// kernel: discriminator_forward.5
= control target key start
LH: loop header
LB: loop body
LE: loop exit
PB: predicated region body
PF: predicated region fallthrough
CT: control target
= control target key end

     0   :  { %s1699_s23 = smov 0   ;;  %s1910_s0 = inlined_call_operand.vmem [shape: bf16[4,50,128], index: 0, kind: input, shape index: {}]   ;;  %s1911_s1 = inlined_call_operand.vmem [shape: bf16[4,4,128,256], index: 1, kind: input, shape index: {}]   ;;  %s1912_s2 = inlined_call_operand.vmem [shape: f32[1,256], index: 2, kind: input, shape index: {}]   ;;  %s1913_s3 = inlined_call_operand.vmem [shape: f32[44,256], index: 3, kind: input, shape index: {}]   ;;  %s1914_s4 = inlined_call_operand.vmem [shape: f32[2,44], index: 4, kind: input, shape index: {}]   ;;  %s1915_s5 = inlined_call_operand.<no memory space> [shape: f32[1,1], index: 5, kind: input, shape index: {}]   ;;  %s1916_s6 = inlined_call_operand.vmem [shape: f32[2,1], index: 6, kind: output, shape index: {}]  }
   0x1   :  { %v11_v0 = vstv %s1915_s5 }
   0x2   :  { %12 = vst [vmem:[#allocation3] sm:$0x1] %v11_v0 }
   0x3 LB: > { %s1705_s24 = sadd.s32 4294967295, %s1655_s23   ;;  %p1347_p0 = scmp.ge.s32.totalorder %s1655_s23, 1  ;;  %s1655_s23 = sphi %s1699_s23, %s18_s23  }
   0x4   : > { %p219_p1 = scmp.lt.s32.totalorder %s1655_s23, 5 }
   0x6   : > { %p220_p2 = pnand %p1347_p0, %p219_p1 }
   0x7   : > { %p249_p3 = scmp.lt.s32.totalorder (!%p220_p2), %s1705_s24, 3  ;;  %p1351_p4 = scmp.ne.s32.totalorder (!%p220_p2), %s1705_s24, 0 }
   0x8   : > { %223 = sbr.rel (%p220_p2) target bundleno = 707 (0x2c3), region = 44 }
   0xf   : > { %s250_s5 = scalar_select %p249_p3, %s1705_s24, 3 }
  0x10   : > { %263 = sbr.rel (%p1351_p4) target bundleno = 23 (0x17), region = 48  ;;  %v1657_v1 = vmov (!%p1351_p4), 0.0  }
  0x11   : > { %s1531_s25 = smul.u32 28, %s250_s5  ;;  %s1480_s26 = sshll.u32 %s250_s5, 9  ;;  %264 = vst [vmem:[#allocation2] sm:$0xff] (!%p1351_p4), %v1657_v1  ;;  %265 = vst [vmem:[#allocation2 + $0x8] sm:$0xff] (!%p1351_p4), %v1657_v1 }
  0x12   : > { %s1714_s29 = scalar_lea.vmem %s1911_s1, %s1480_s26  ;;  %266 = vst [vmem:[#allocation2 + $0x10] sm:$0xff] (!%p1351_p4), %v1657_v1  ;;  %267 = vst [vmem:[#allocation2 + $0x18] sm:$0xff] (!%p1351_p4), %v1657_v1 }
  0x13   : > { %s1719_s8 = scalar_lea.vmem %s1910_s0, %s1531_s25  ;;  %268 = vst [vmem:[#allocation2 + $0x20] sm:$0xff] (!%p1351_p4), %v1657_v1  ;;  %269 = vst [vmem:[#allocation2 + $0x28] sm:$0xff] (!%p1351_p4), %v1657_v1 }
  0x14   : > { %270 = vst [vmem:[#allocation2 + $0x30] sm:$0xff] (!%p1351_p4), %v1657_v1  ;;  %271 = vst [vmem:[#allocation2 + $0x38] sm:$0xff] (!%p1351_p4), %v1657_v1 }
  0x15   : > { %272 = vst [vmem:[#allocation2 + $0x40] sm:$0xff] (!%p1351_p4), %v1657_v1  ;;  %273 = vst [vmem:[#allocation2 + $0x48] sm:$0xff] (!%p1351_p4), %v1657_v1 }
  0x16   : > { %274 = vst [vmem:[#allocation2 + $0x50] sm:$0xf] (!%p1351_p4), %v1657_v1  ;;  %275 = vst [vmem:[#allocation2 + $0x58] sm:$0xf] (!%p1351_p4), %v1657_v1 }
  0x17 PF: > { %v1544_v2 = vld [vmem:[%s1714_s29 + $0x84] ss:$8 sps:$4 sm:$0xff]   ;;  %v1658_v4 = vmov 0   ;;  %v1548_v5 = vld [vmem:[%s1714_s29 + $0x80] ss:$8 sps:$4 sm:$0xff]   ;;  %vm903_vm2 = vcmask 1044480  }
  0x18   : > { %v1546_v3 = vld [vmem:[%s1714_s29 + $0x104] ss:$8 sps:$4 sm:$0xff]   ;;  %470 = vmatprep.mubr.bf16.mxu1 %v1658_v4  ;;  %839 = vmatprep.mubr.bf16.mxu0 %v1658_v4  ;;  %v1549_v6 = vld [vmem:[%s1714_s29 + $0x100] ss:$8 sps:$4 sm:$0xff]   ;;  %v1550_v7 = vld [vmem:[%s1714_s29 + $0x94] ss:$8 sps:$4 sm:$0xff]  }
  0x19   : > { %438 = vmatprep.subr.bf16.mxu1 %v1544_v2  ;;  %807 = vmatprep.subr.bf16.mxu0 %v1546_v3  ;;  %v1552_v8 = vld [vmem:[%s1714_s29 + $0x114] ss:$8 sps:$4 sm:$0xff]   ;;  %v1554_v9 = vld [vmem:[%s1714_s29 + $0x90] ss:$8 sps:$4 sm:$0xff]   ;;  %v1556_v11 = vld [vmem:[%s1714_s29 + $0xa4] ss:$8 sps:$4 sm:$0xff]  }
  0x1a   : > { %439 = vmatpush1.bf16.msra.mxu1 %v1548_v5  ;;  %808 = vmatpush1.bf16.msra.mxu0 %v1549_v6  ;;  %v1555_v10 = vld [vmem:[%s1714_s29 + $0x110] ss:$8 sps:$4 sm:$0xff]   ;;  %v1558_v12 = vld [vmem:[%s1714_s29 + $0x124] ss:$8 sps:$4 sm:$0xff]   ;;  %v1560_v13 = vld [vmem:[%s1714_s29 + $0xa0] ss:$8 sps:$4 sm:$0xff]  }
  0x1b   : > { %440 = vmatprep.subr.bf16.mxu1 %v1550_v7  ;;  %809 = vmatprep.subr.bf16.mxu0 %v1552_v8  ;;  %v1561_v14 = vld [vmem:[%s1714_s29 + $0x120] ss:$8 sps:$4 sm:$0xff]   ;;  %v1562_v15 = vld [vmem:[%s1714_s29 + $0xb4] ss:$8 sps:$4 sm:$0xff]   ;;  %v1566_v17 = vld [vmem:[%s1714_s29 + $0xb0] ss:$8 sps:$4 sm:$0xff]  }
  0x1c   : > { %v1564_v16 = vld [vmem:[%s1714_s29 + $0x134] ss:$8 sps:$4 sm:$0xff]   ;;  %v1567_v18 = vld [vmem:[%s1714_s29 + $0x130] ss:$8 sps:$4 sm:$0xff]   ;;  %v1568_v19 = vld [vmem:[%s1714_s29 + $0xc4] ss:$8 sps:$4 sm:$0xff]  }
  0x1d   : > { %v1570_v20 = vld [vmem:[%s1714_s29 + $0x144] ss:$8 sps:$4 sm:$0xff]   ;;  %v1572_v21 = vld [vmem:[%s1714_s29 + $0xc0] ss:$8 sps:$4 sm:$0xff]   ;;  %v1574_v23 = vld [vmem:[%s1714_s29 + $0xd4] ss:$8 sps:$4 sm:$0xff]  }
  0x1e   : > { %441 = vmatpush1.bf16.msra.mxu1 %v1554_v9  ;;  %810 = vmatpush1.bf16.msra.mxu0 %v1555_v10  ;;  %v1573_v22 = vld [vmem:[%s1714_s29 + $0x140] ss:$8 sps:$4 sm:$0xff]   ;;  %v1576_v24 = vld [vmem:[%s1714_s29 + $0x154] ss:$8 sps:$4 sm:$0xff]   ;;  %v1578_v25 = vld [vmem:[%s1714_s29 + $0xd0] ss:$8 sps:$4 sm:$0xff]  }
  0x1f   : > { %442 = vmatprep.subr.bf16.mxu1 %v1556_v11  ;;  %811 = vmatprep.subr.bf16.mxu0 %v1558_v12  ;;  %v1579_v26 = vld [vmem:[%s1714_s29 + $0x150] ss:$8 sps:$4 sm:$0xff]   ;;  %v1580_v27 = vld [vmem:[%s1714_s29 + $0xe4] ss:$8 sps:$4 sm:$0xff]   ;;  %v1584_v29 = vld [vmem:[%s1714_s29 + $0xe0] ss:$8 sps:$4 sm:$0xff]  }
  0x20   : > { %v1582_v28 = vld [vmem:[%s1714_s29 + $0x164] ss:$8 sps:$4 sm:$0xff]   ;;  %v1585_v30 = vld [vmem:[%s1714_s29 + $0x160] ss:$8 sps:$4 sm:$0xff]   ;;  %v1586_v31 = vld [vmem:[%s1714_s29 + $0xf4] ss:$8 sps:$4 sm:$0xff]  }
  0x21   : > { %v1588_v32 = vld [vmem:[%s1714_s29 + $0x174] ss:$8 sps:$4 sm:$0xff]   ;;  %v1755_v33 = vld [vmem:[%s1719_s8] sm:$0xff]   ;;  %v1758_v34 = vld [vmem:[%s1719_s8 + $0x8] sm:$0xff]   ;;  %vm331_vm0 = vsmask.f32 7424 }
  0x22   : > { %443 = vmatpush1.bf16.msra.mxu1 %v1560_v13  ;;  %812 = vmatpush1.bf16.msra.mxu0 %v1561_v14  ;;  %v1590_v35 = vld [vmem:[%s1714_s29 + $0xf0] ss:$8 sps:$4 sm:$0xff]   ;;  %v650_v37 = vld [vmem:[%s1719_s8] sm:$0xc]  ;;  %v1764_v38 = vld [vmem:[%s1719_s8 + $0x4] sm:$0xf] }
  0x23   : > { %444 = vmatprep.subr.bf16.mxu1 %v1562_v15  ;;  %813 = vmatprep.subr.bf16.mxu0 %v1564_v16  ;;  %v1591_v36 = vld [vmem:[%s1714_s29 + $0x170] ss:$8 sps:$4 sm:$0xff]   ;;  %v333_v39 = vshrl.u32 %v1755_v33, 16  ;;  %v335_v40 = vshll.u32 %v1755_v33, 16  ;;  %v340_v41 = vshll.u32 %v1758_v34, 16  ;;  %v1420_v42 = vcombine.low %v650_v37, %v1764_v38  ;;  %v1771_v43 = vld [vmem:[%s1719_s8 + $0x8] sm:$0xff]  }
  0x24   : > { %v1594_v44 = vld [vmem:[%s1714_s29 + $0x4] ss:$8 sps:$4 sm:$0xff]   ;;  %v702_v50 = vshrl.u32 %v1771_v43, 16  ;;  %v705_v51 = vshll.u32 %v1771_v43, 16  ;;  %v1592_v55 = vld [vmem:[%s1714_s29] ss:$8 sps:$4 sm:$0xff]  }
  0x25   : > { %v1597_v45 = vld [vmem:[%s1714_s29 + $0x184] ss:$8 sps:$4 sm:$0xff]   ;;  %v337_v46 = vrot.slane %v335_v40, 1  ;;  %v342_v47 = vrot.slane %v340_v41, 1  ;;  %v694_v48 = vshrl.u32 %v1420_v42, 16  ;;  %v697_v49 = vshll.u32 %v1420_v42, 16 }
  0x26   : > { %445 = vmatpush1.bf16.msra.mxu1 %v1566_v17  ;;  %814 = vmatpush1.bf16.msra.mxu0 %v1567_v18  ;;  %v704_v56 = vrot.slane %v702_v50, 2  ;;  %v707_v57 = vrot.slane %v705_v51, 3  ;;  %vm692_vm1 = vsmask.f32 5376  ;;  %v1604_v60 = vld [vmem:[%s1714_s29 + $0x14] ss:$8 sps:$4 sm:$0xff]  }
  0x27   : > { %446 = vmatprep.subr.bf16.mxu1 %v1568_v19  ;;  %815 = vmatprep.subr.bf16.mxu0 %v1570_v20  ;;  %v338_v52 = vor.u32 %v337_v46, %v333_v39  ;;  %v696_v53 = vrot.slane %v694_v48, 2  ;;  %v699_v54 = vrot.slane %v697_v49, 3  ;;  %v1595_v61 = vld [vmem:[%s1714_s29 + $0x180] ss:$8 sps:$4 sm:$0xff]   ;;  %v1607_v63 = vld [vmem:[%s1714_s29 + $0x194] ss:$8 sps:$4 sm:$0xff]  }
  0x28   : > { %v708_v62 = vor.u32 %v707_v57, %v704_v56  ;;  %v1602_v1 = vld [vmem:[%s1714_s29 + $0x10] ss:$8 sps:$4 sm:$0xff]   ;;  %v1610_v2 = vld [vmem:[%s1714_s29 + $0x24] ss:$8 sps:$4 sm:$0xff]   ;;  %v344_v3 = vshrl.u32 %v1758_v34, 16  ;;  %v905_v56 = vrot.slane %v1771_v43, 3 }
  0x29   : > { %v343_v58 = vsel %vm331_vm0, %v338_v52, %v342_v47  ;;  %v700_v59 = vor.u32 %v699_v54, %v696_v53  ;;  %v1788_v5 = vld [vmem:[%s1719_s8 + $0x10] sm:$0xf]  ;;  %v298_v6 = vld [vmem:[%s1719_s8 + $0x14] sm:$0x7]  ;;  %v1613_v8 = vld [vmem:[%s1714_s29 + $0x1a4] ss:$8 sps:$4 sm:$0xff]  }
  0x2a   : > { %447 = vmatpush1.bf16.msra.mxu1 %v1572_v21  ;;  %816 = vmatpush1.bf16.msra.mxu0 %v1573_v22  ;;  %v1605_v7 = vld [vmem:[%s1714_s29 + $0x190] ss:$8 sps:$4 sm:$0xff]   ;;  %v1370_v9 = vcombine.low %v1788_v5, %v298_v6  ;;  %v1608_v11 = vld [vmem:[%s1714_s29 + $0x20] ss:$8 sps:$4 sm:$0xff]   ;;  %v346_v12 = vor.u32 %v344_v3, %v342_v47  ;;  %v1616_v14 = vld [vmem:[%s1714_s29 + $0x34] ss:$8 sps:$4 sm:$0xff]  }
  0x2b   : > { %448 = vmatprep.subr.bf16.mxu1 %v1574_v23  ;;  %817 = vmatprep.subr.bf16.mxu0 %v1576_v24  ;;  %v709_v0 = vsel %vm692_vm1, %v700_v59, %v708_v62  ;;  %v1796_v10 = vld [vmem:[%s1719_s8 + $0x10] sm:$0xff]   ;;  %v1611_v17 = vld [vmem:[%s1714_s29 + $0x1a0] ss:$8 sps:$4 sm:$0xff]   ;;  %v1623_v24 = vld [vmem:[%s1714_s29 + $0x44] ss:$8 sps:$4 sm:$0xff]   ;;  %p1473_p5 = scmp.ne.s32.totalorder %s1705_s24, 3 }
  0x2c   : > { %v348_v13 = vshll.u32 %v1370_v9, 16  ;;  %v711_v15 = vshrl.u32 %v1796_v10, 16  ;;  %v714_v16 = vshll.u32 %v1796_v10, 16  ;;  %v1619_v19 = vld [vmem:[%s1714_s29 + $0x1b4] ss:$8 sps:$4 sm:$0xff]   ;;  %v1070_v3 = vld [vmem:[#allocation2 + $0x8] sm:$0xff] }
  0x2d   : > { %v1614_v22 = vld [vmem:[%s1714_s29 + $0x30] ss:$8 sps:$4 sm:$0xff]   ;;  %v1625_v37 = vld [vmem:[%s1714_s29 + $0x1c0] ss:$8 sps:$4 sm:$0xff]   ;;  %v1633_v40 = vld [vmem:[%s1714_s29 + $0x1d4] ss:$8 sps:$4 sm:$0xff]  }
  0x2e   : > { %449 = vmatpush1.bf16.msra.mxu1 %v1578_v25  ;;  %818 = vmatpush1.bf16.msra.mxu0 %v1579_v26  ;;  %v350_v18 = vrot.slane %v348_v13, 1  ;;  %v713_v20 = vrot.slane %v711_v15, 2  ;;  %v716_v21 = vrot.slane %v714_v16, 3  ;;  %v352_v26 = vshrl.u32 %v1370_v9, 16  ;;  %v1628_v41 = vld [vmem:[%s1714_s29 + $0x50] ss:$8 sps:$4 sm:$0xff]  }
  0x2f   : > { %450 = vmatprep.subr.bf16.mxu1 %v1580_v27  ;;  %819 = vmatprep.subr.bf16.mxu0 %v1582_v28  ;;  %v1617_v27 = vld [vmem:[%s1714_s29 + $0x1b0] ss:$8 sps:$4 sm:$0xff]   ;;  %v1636_v42 = vld [vmem:[%s1714_s29 + $0x64] ss:$8 sps:$4 sm:$0xff]   ;;  %v882_v47 = vld [vmem:[%s1719_s8] sm:$0x8] }
  0x30   : > { %v351_v23 = vsel %vm331_vm0, %v346_v12, %v350_v18  ;;  %v717_v25 = vor.u32 %v716_v21, %v713_v20  ;;  %v1810_v28 = vld [vmem:[%s1719_s8 + $0x18] ss:$0 sps:$4 sm:$0x11]   ;;  %v1640_v46 = vld [vmem:[%s1714_s29 + $0x1e4] ss:$8 sps:$4 sm:$0xff]   ;;  %v1456_v51 = vcombine.low %v882_v47, %v1764_v38  ;;  %v907_v38 = vrot.slane %v1796_v10, 3 }
  0x31   : > { %v1634_v48 = vld [vmem:[%s1714_s29 + $0x60] ss:$8 sps:$4 sm:$0xff]   ;;  %v1643_v49 = vld [vmem:[%s1714_s29 + $0x74] ss:$8 sps:$4 sm:$0xff]   ;;  %v1641_v53 = vld [vmem:[%s1714_s29 + $0x70] ss:$8 sps:$4 sm:$0xff]  }
  0x32   : > { %451 = vmatpush1.bf16.msra.mxu1 %v1584_v29  ;;  %820 = vmatpush1.bf16.msra.mxu0 %v1585_v30  ;;  %v718_v29 = vsel %vm692_vm1, %v708_v62, %v717_v25  ;;  %v1627_v30 = vld [vmem:[%s1714_s29 + $0x1c4] ss:$8 sps:$4 sm:$0xff]   ;;  %v1638_v50 = vld [vmem:[%s1714_s29 + $0x1e0] ss:$8 sps:$4 sm:$0xff]   ;;  %v1646_v52 = vld [vmem:[%s1714_s29 + $0x1f4] ss:$8 sps:$4 sm:$0xff]  }
  0x33   : > { %452 = vmatprep.subr.bf16.mxu1 %v1586_v31  ;;  %821 = vmatprep.subr.bf16.mxu0 %v1588_v32  ;;  %v1621_v31 = vld [vmem:[%s1714_s29 + $0x40] ss:$8 sps:$4 sm:$0xff]   ;;  %v720_v32 = vshll.u32 %v1810_v28, 16  ;;  %v1644_v54 = vld [vmem:[%s1714_s29 + $0x1f0] ss:$8 sps:$4 sm:$0xff]   ;;  %v909_v59 = vrot.slane %v1810_v28, 3 }
  0x34   : > { %v281_v43 = vld [vmem:[%s1719_s8 + $0x14] sm:$0x3]  ;;  %v1078_v47 = vld [vmem:[#allocation2 + $0x48] sm:$0xff]  ;;  %vm1210_vm9 = vcmask (!%p1473_p5), 1043456   ;;  %vm1660_vm0 = vmmov (!%p1473_p5), 1  }
  0x35   : > { %v722_v39 = vrot.slane %v720_v32, 3 }
  0x36   : > { %453 = vmatpush1.bf16.msra.mxu1 %v1590_v35  ;;  %822 = vmatpush1.bf16.msra.mxu0 %v1591_v36  ;;  %v1630_v35 = vld [vmem:[%s1714_s29 + $0x54] ss:$8 sps:$4 sm:$0xff]   ;;  %v354_v36 = vor.u32 %v352_v26, %v350_v18 }
  0x37   : > { %587 = vmatprep.subr.bf16.mxu1 %v1594_v44  ;;  %994 = vmatprep.subr.bf16.mxu0 %v1597_v45  ;;  %v723_v44 = vsel %vm692_vm1, %v717_v25, %v722_v39  ;;  %v1631_v45 = vld [vmem:[%s1714_s29 + $0x1d0] ss:$8 sps:$4 sm:$0xff]   ;;  %vm1490_vm1 = vmpackc.low (!%p1473_p5), %vm1210_vm9, %vm1660_vm0 }
  0x39   : > { %471 = vmatmul.mubr.bf16.vlgmr.msra.gmra.mrb[0].mxu1 %v343_v58  ;;  %840 = vmatmul.mubr.bf16.vlgmr.msra.gmra.mrb[0].mxu0 %v709_v0  ;;  %v908_v58 = vsel %vm903_vm2, %v905_v56, %v907_v38  ;;  %v1069_v0 = vld [vmem:[#allocation2] sm:$0xff] }
  0x3a   : > { %588 = vmatpush1.bf16.msra.mxu1 %v1592_v55  ;;  %480 = vmatprep.mubr.bf16.mxu1 %v1658_v4  ;;  %v904_v55 = vrot.slane %v1456_v51, 3  ;;  %v1079_v51 = vld [vmem:[#allocation2 + $0x50] sm:$0xf] }
  0x3b   : > { %589 = vmatprep.subr.bf16.mxu1 %v1604_v60  ;;  %995 = vmatpush1.bf16.msra.mxu0 %v1595_v61  ;;  %v910_v60 = vsel %vm903_vm2, %v907_v38, %v909_v59 }
  0x3c   : > { %849 = vmatprep.mubr.bf16.mxu0 %v1658_v4  ;;  %996 = vmatprep.subr.bf16.mxu0 %v1607_v63  ;;  %v906_v57 = vsel %vm903_vm2, %v904_v55, %v905_v56  ;;  %v1080_v55 = vld [vmem:[#allocation2 + $0x58] sm:$0xf]  ;;  %vm1206_vm2 = vcmask (!%p1473_p5), 359424  }
  0x3e   : > { %590 = vmatpush1.bf16.msra.mxu1 %v1602_v1 }
  0x3f   : > { %591 = vmatprep.subr.bf16.mxu1 %v1610_v2  ;;  %997 = vmatpush1.bf16.msra.mxu0 %v1605_v7 }
  0x40   : > { %998 = vmatprep.subr.bf16.mxu0 %v1613_v8 }
  0x41   : > { %481 = vmatmul.mubr.bf16.gmra.mrb[4].mxu1 %v351_v23  ;;  %850 = vmatmul.mubr.bf16.gmra.mrb[4].mxu0 %v718_v29  ;;  %v1074_v23 = vld [vmem:[#allocation2 + $0x28] sm:$0xff] }
  0x42   : > { %592 = vmatpush1.bf16.msra.mxu1 %v1608_v11  ;;  %490 = vmatprep.mubr.bf16.mxu1 %v1658_v4 }
  0x43   : > { %593 = vmatprep.subr.bf16.mxu1 %v1616_v14  ;;  %999 = vmatpush1.bf16.msra.mxu0 %v1611_v17 }
  0x44   : > { %1000 = vmatprep.subr.bf16.mxu0 %v1619_v19  ;;  %859 = vmatprep.mubr.bf16.mxu0 %v1658_v4  ;;  %v1073_v19 = vld [vmem:[#allocation2 + $0x20] sm:$0xff] }
  0x46   : > { %594 = vmatpush1.bf16.msra.mxu1 %v1614_v22 }
  0x47   : > { %595 = vmatprep.subr.bf16.mxu1 %v1623_v24  ;;  %1001 = vmatpush1.bf16.msra.mxu0 %v1617_v27  ;;  %v1075_v27 = vld [vmem:[#allocation2 + $0x30] sm:$0xff] }
  0x48   : > { %1002 = vmatprep.subr.bf16.mxu0 %v1627_v30 }
  0x49   : > { %491 = vmatmul.mubr.bf16.gmra.mrb[8].mxu1 %v354_v36  ;;  %860 = vmatmul.mubr.bf16.gmra.mrb[8].mxu0 %v723_v44 }
  0x4a   : > { %596 = vmatpush1.bf16.msra.mxu1 %v1621_v31  ;;  %619 = vmatprep.mubr.bf16.mxu1 %v1658_v4  ;;  %v1076_v31 = vld [vmem:[#allocation2 + $0x38] sm:$0xff] }
  0x4b   : > { %597 = vmatprep.subr.bf16.mxu1 %v1630_v35  ;;  %1003 = vmatpush1.bf16.msra.mxu0 %v1625_v37 }
  0x4c   : > { %1004 = vmatprep.subr.bf16.mxu0 %v1633_v40  ;;  %1026 = vmatprep.mubr.bf16.mxu0 %v1658_v4 }
  0x4e   : > { %598 = vmatpush1.bf16.msra.mxu1 %v1628_v41 }
  0x4f   : > { %599 = vmatprep.subr.bf16.mxu1 %v1636_v42  ;;  %1005 = vmatpush1.bf16.msra.mxu0 %v1631_v45  ;;  %v1077_v42 = vld [vmem:[#allocation2 + $0x40] sm:$0xff] }
  0x50   : > { %1006 = vmatprep.subr.bf16.mxu0 %v1640_v46 }
  0x52   : > { %600 = vmatpush1.bf16.msra.mxu1 %v1634_v48 }
  0x53   : > { %601 = vmatprep.subr.bf16.mxu1 %v1643_v49  ;;  %1007 = vmatpush1.bf16.msra.mxu0 %v1638_v50 }
  0x54   : > { %1008 = vmatprep.subr.bf16.mxu0 %v1646_v52 }
  0x56   : > { %602 = vmatpush1.bf16.msra.mxu1 %v1641_v53 }
  0x57   : > { %1009 = vmatpush1.bf16.msra.mxu0 %v1644_v54 }
  0x59   : > { %620 = vmatmul.mubr.bf16.vlgmr.msra.gmra.mrb[0].mxu1 %v1755_v33  ;;  %v1387_v33 = vcombine.low %v1788_v5, %v281_v43  ;;  %v1072_v5 = vld [vmem:[#allocation2 + $0x18] sm:$0xff]  ;;  %v1123_v43 = vlaneseq (!%p1473_p5) }
  0x5a   : > { %629 = vmatprep.mubr.bf16.mxu1 %v1658_v4  ;;  %1027 = vmatmul.mubr.bf16.vlgmr.msra.gmra.mrb[0].mxu0 %v906_v57 }
  0x5b   : > { %1036 = vmatprep.mubr.bf16.mxu0 %v1658_v4  ;;  %v1124_v59 = vshrl.u32 (!%p1473_p5), %v1123_v43, 7 }
  0x61   : > { %630 = vmatmul.mubr.bf16.gmra.mrb[4].mxu1 %v1758_v34 }
  0x62   : > { %639 = vmatprep.mubr.bf16.mxu1 %v1658_v4  ;;  %1037 = vmatmul.mubr.bf16.gmra.mrb[4].mxu0 %v908_v58 }
  0x63   : > { %1046 = vmatprep.mubr.bf16.mxu0 %v1658_v4  ;;  %v1071_v4 = vld [vmem:[#allocation2 + $0x10] sm:$0xff] }
  0x69   : > { %640 = vmatmul.mubr.bf16.gmra.mrb[8].mxu1 %v1387_v33  ;;  %v1659_v33 = vmov (!%p1473_p5), 0.0  }
  0x6a   : > { %1047 = vmatmul.mubr.bf16.gmra.mrb[8].mxu0 %v910_v60  ;;  %v1121_v60 = vld [vmem:[%s1912_s2] sm:$0x3] (!%p1473_p5) }
  0x6b   : > { %1281 = vmatprep.mubr.f32.mxu0 (!%p1473_p5), %v1659_v33 }
 0x12c   : > { %v621_v61 = vpop.f32.mrb[0].mxu1 }
 0x12d   : > { %v623_v62 = vpop.f32.mrb[1].mxu1  ;;  %v1028_v63 = vpop.f32.mrb[0].mxu0 }
 0x12e   : > { %v625_v1 = vpop.f32.mrb[2].mxu1  ;;  %v1495_v34 = vadd.f32 %v1028_v63, %v621_v61  ;;  %v1030_v2 = vpop.f32.mrb[1].mxu0  ;;  %v1129_v63 = vsub.s32 (!%p1473_p5), 1, %v1124_v59 }
 0x12f   : > { %v627_v6 = vpop.f32.mrb[3].mxu1  ;;  %v1496_v7 = vadd.f32 %v1030_v2, %v623_v62  ;;  %v1032_v8 = vpop.f32.mrb[2].mxu0 }
 0x130   : > { %v1081_v9 = vadd.f32 %v1495_v34, %v1069_v0  ;;  %v1497_v10 = vadd.f32 %v1032_v8, %v625_v1  ;;  %v1034_v11 = vpop.f32.mrb[3].mxu0  ;;  %v1125_v0 = vsub.s32 (!%p1473_p5), 0, %v1124_v59 }
 0x131   : > { %v1082_v12 = vadd.f32 %v1496_v7, %v1070_v3  ;;  %v1498_v13 = vadd.f32 %v1034_v11, %v627_v6  ;;  %v1130_v3 = vrot.slane (!%p1473_p5), %v1121_v60, %v1129_v63  ;;  %v1182_v11 = vld [vmem:[%s1913_s3 + $0x8] sm:$0xff] (!%p1473_p5) }
 0x132   : > { %1093 = vst [vmem:[#allocation2] sm:$0xff] %v1081_v9  ;;  %v1083_v14 = vadd.f32 %v1497_v10, %v1071_v4  ;;  %v1853_v6 = vrot.slane (!%p1473_p5), %v1121_v60, %v1125_v0  ;;  %v1190_v60 = vld [vmem:[%s1913_s3 + $0x48] sm:$0xff] (!%p1473_p5) }
 0x133   : > { %1094 = vst [vmem:[#allocation2 + $0x8] sm:$0xff] %v1082_v12  ;;  %v1084_v15 = vadd.f32 %v1498_v13, %v1072_v5  ;;  %v1184_v13 = vld [vmem:[%s1913_s3 + $0x18] sm:$0xff] (!%p1473_p5) }
 0x134   : > { %v631_v16 = vpop.f32.mrb[4].mxu1  ;;  %1095 = vst [vmem:[#allocation2 + $0x10] sm:$0xff] %v1083_v14  ;;  %v1181_v14 = vld [vmem:[%s1913_s3] sm:$0xff] (!%p1473_p5) }
 0x135   : > { %v633_v17 = vpop.f32.mrb[5].mxu1  ;;  %1096 = vst [vmem:[#allocation2 + $0x18] sm:$0xff] %v1084_v15  ;;  %v1038_v18 = vpop.f32.mrb[4].mxu0  ;;  %v1183_v15 = vld [vmem:[%s1913_s3 + $0x10] sm:$0xff] (!%p1473_p5) }
 0x136   : > { %v635_v20 = vpop.f32.mrb[6].mxu1  ;;  %v1499_v21 = vadd.f32 %v1038_v18, %v631_v16  ;;  %v1040_v22 = vpop.f32.mrb[5].mxu0 }
 0x137   : > { %v637_v24 = vpop.f32.mrb[7].mxu1  ;;  %v1500_v25 = vadd.f32 %v1040_v22, %v633_v17  ;;  %v1042_v26 = vpop.f32.mrb[6].mxu0 }
 0x138   : > { %v1085_v28 = vadd.f32 %v1499_v21, %v1073_v19  ;;  %v1501_v29 = vadd.f32 %v1042_v26, %v635_v20  ;;  %v1044_v30 = vpop.f32.mrb[7].mxu0 }
 0x139   : > { %v1086_v32 = vadd.f32 %v1500_v25, %v1074_v23  ;;  %v1502_v35 = vadd.f32 %v1044_v30, %v637_v24  ;;  %v1109_v1 = vld [vmem:[#allocation2] sm:$0xff] (!%p1473_p5)  ;;  %v1186_v30 = vld [vmem:[%s1913_s3 + $0x28] sm:$0xff] (!%p1473_p5) }
 0x13a   : > { %1097 = vst [vmem:[#allocation2 + $0x20] sm:$0xff] %v1085_v28  ;;  %v1087_v36 = vadd.f32 %v1501_v29, %v1075_v27  ;;  %v1110_v61 = vld [vmem:[#allocation2 + $0x8] sm:$0xff] (!%p1473_p5)  ;;  %v1133_v5 = vadd.f32 (!%p1473_p5), %v1853_v6, %v1109_v1 }
 0x13b   : > { %1098 = vst [vmem:[#allocation2 + $0x28] sm:$0xff] %v1086_v32  ;;  %v1088_v37 = vadd.f32 %v1502_v35, %v1076_v31  ;;  %v1111_v34 = vld [vmem:[#allocation2 + $0x10] sm:$0xff] (!%p1473_p5)  ;;  %v1134_v9 = vadd.f32 (!%p1473_p5), %v1130_v3, %v1110_v61  ;;  %v1188_v31 = vld [vmem:[%s1913_s3 + $0x38] sm:$0xff] (!%p1473_p5) }
 0x13c   : > { %v641_v39 = vpop.f32.mrb[8].mxu1  ;;  %1099 = vst [vmem:[#allocation2 + $0x30] sm:$0xff] %v1087_v36  ;;  %v1112_v62 = vld [vmem:[#allocation2 + $0x18] sm:$0xff] (!%p1473_p5)  ;;  %v1135_v12 = vadd.f32 (!%p1473_p5), %v1853_v6, %v1111_v34  ;;  %vm1145_vm5 = vcmp.ge.f32.partialorder (!%p1473_p5), %v1133_v5, 0.0  ;;  %v1157_v22 = vmul.f32 (!%p1473_p5), 0.2, %v1133_v5 }
 0x13d   : > { %v643_v40 = vpop.f32.mrb[9].mxu1  ;;  %1100 = vst [vmem:[#allocation2 + $0x38] sm:$0xff] %v1088_v37  ;;  %v1048_v41 = vpop.f32.mrb[8].mxu0  ;;  %v1136_v10 = vadd.f32 (!%p1473_p5), %v1130_v3, %v1112_v62  ;;  %vm1146_vm3 = vcmp.ge.f32.partialorder (!%p1473_p5), %v1134_v9, 0.0  ;;  %v1158_v20 = vmul.f32 (!%p1473_p5), 0.2, %v1134_v9 }
 0x13e   : > { %v645_v44 = vpop.f32.mrb[10].mxu1  ;;  %v1503_v45 = vadd.f32 %v1048_v41, %v641_v39  ;;  %v1050_v46 = vpop.f32.mrb[9].mxu0  ;;  %vm1147_vm6 = vcmp.ge.f32.partialorder (!%p1473_p5), %v1135_v12, 0.0  ;;  %v1159_v23 = vmul.f32 (!%p1473_p5), 0.2, %v1135_v12  ;;  %v1169_v28 = vsel (!%p1473_p5), %vm1145_vm5, %v1133_v5, %v1157_v22 }
 0x13f   : > { %v647_v48 = vpop.f32.mrb[11].mxu1  ;;  %v1504_v49 = vadd.f32 %v1050_v46, %v643_v40  ;;  %v1052_v50 = vpop.f32.mrb[10].mxu0  ;;  %1108 = sbr.rel (%p1473_p5) target bundleno = 707 (0x2c3), region = 52  ;;  %vm1148_vm4 = vcmp.ge.f32.partialorder (!%p1473_p5), %v1136_v10, 0.0  ;;  %v1160_v21 = vmul.f32 (!%p1473_p5), 0.2, %v1136_v10  ;;  %v1170_v24 = vsel (!%p1473_p5), %vm1146_vm3, %v1134_v9, %v1158_v20 }
 0x140   : > { %v1089_v52 = vadd.f32 %v1503_v45, %v1077_v42  ;;  %v1505_v53 = vadd.f32 %v1052_v50, %v645_v44  ;;  %v1054_v54 = vpop.f32.mrb[11].mxu0  ;;  %v1194_v26 = vmul.f32 (!%p1473_p5), %v1182_v11, %v1170_v24  ;;  %v1171_v29 = vsel (!%p1473_p5), %vm1147_vm6, %v1135_v12, %v1159_v23  ;;  %v1185_v44 = vld [vmem:[%s1913_s3 + $0x20] sm:$0xff] (!%p1473_p5)  ;;  %v1187_v50 = vld [vmem:[%s1913_s3 + $0x30] sm:$0xff] (!%p1473_p5)  ;;  %v1192_v62 = vld [vmem:[%s1913_s3 + $0x58] sm:$0xf] (!%p1473_p5) }
 0x141   : > { %v1090_v56 = vadd.f32 %v1504_v49, %v1078_v47  ;;  %v1506_v57 = vadd.f32 %v1054_v54, %v647_v48  ;;  %v1113_v8 = vld [vmem:[#allocation2 + $0x20] sm:$0xff] (!%p1473_p5)  ;;  %v1172_v25 = vsel (!%p1473_p5), %vm1148_vm4, %v1136_v10, %v1160_v21  ;;  %v1193_v35 = vmul.f32 (!%p1473_p5), %v1181_v14, %v1169_v28 }
 0x142   : > { %1101 = vst [vmem:[#allocation2 + $0x40] sm:$0xff] %v1089_v52  ;;  %v1091_v38 = vadd.f32 %v1505_v53, %v1079_v51  ;;  %v1114_v2 = vld [vmem:[#allocation2 + $0x28] sm:$0xff] (!%p1473_p5)  ;;  %v1137_v18 = vadd.f32 (!%p1473_p5), %v1853_v6, %v1113_v8  ;;  %v1196_v27 = vmul.f32 (!%p1473_p5), %v1184_v13, %v1172_v25  ;;  %v1195_v36 = vmul.f32 (!%p1473_p5), %v1183_v15, %v1171_v29  ;;  %v1205_v14 = vld [vmem:[%s1914_s4] sm:$0x3] (!%p1473_p5) }
 0x143   : > { %1102 = vst [vmem:[#allocation2 + $0x48] sm:$0xff] %v1090_v56  ;;  %v1092_v58 = vadd.f32 %v1506_v57, %v1080_v55  ;;  %v1115_v4 = vld [vmem:[#allocation2 + $0x30] sm:$0xff] (!%p1473_p5)  ;;  %v1138_v16 = vadd.f32 (!%p1473_p5), %v1130_v3, %v1114_v2  ;;  %v1189_v2 = vld [vmem:[%s1913_s3 + $0x40] sm:$0xff] (!%p1473_p5)  ;;  %vm1288_vm3 = vcmask (!%p1473_p5), 1041408   ;;  %vm1302_vm4 = vcmask (!%p1473_p5), 1024  }
 0x144   : > { %1103 = vst [vmem:[#allocation2 + $0x50] sm:$0xf] %v1091_v38  ;;  %v1116_v7 = vld [vmem:[#allocation2 + $0x38] sm:$0xff] (!%p1473_p5)  ;;  %v1139_v19 = vadd.f32 (!%p1473_p5), %v1853_v6, %v1115_v4  ;;  %v1481_v41 = vpack.c.bf16 (!%p1473_p5), %v1196_v27, %v1194_v26  ;;  %vm1149_vm10 = vcmp.ge.f32.partialorder (!%p1473_p5), %v1137_v18, 0.0  ;;  %v1161_v42 = vmul.f32 (!%p1473_p5), 0.2, %v1137_v18 }
 0x145   : > { %1104 = vst [vmem:[#allocation2 + $0x58] sm:$0xf] %v1092_v58  ;;  %v1140_v17 = vadd.f32 (!%p1473_p5), %v1130_v3, %v1116_v7  ;;  %vm1150_vm7 = vcmp.ge.f32.partialorder (!%p1473_p5), %v1138_v16, 0.0  ;;  %v1162_v37 = vmul.f32 (!%p1473_p5), 0.2, %v1138_v16  ;;  %v1483_v46 = vpack.c.bf16 (!%p1473_p5), %v1195_v36, %v1193_v35 }
 0x146   : > { %vm1151_vm11 = vcmp.ge.f32.partialorder %v1139_v19, 0.0  ;;  %v1163_v49 = vmul.f32 0.2, %v1139_v19  ;;  %1482 = vmatprep.subr.bf16.mxu0 %v1481_v41  ;;  %v1173_v53 = vsel %vm1149_vm10, %v1137_v18, %v1161_v42  ;;  %v1191_v4 = vld [vmem:[%s1913_s3 + $0x50] sm:$0xf] }
 0x147   : > { %vm1152_vm8 = vcmp.ge.f32.partialorder %v1140_v17, 0.0  ;;  %v1164_v39 = vmul.f32 0.2, %v1140_v17  ;;  %v1174_v47 = vsel %vm1150_vm7, %v1138_v16, %v1162_v37  ;;  %1484 = vmatpush1.bf16.msra.mxu0 %v1483_v46  ;;  %v1197_v57 = vmul.f32 %v1185_v44, %v1173_v53  ;;  %v1477_v20 = vld [vmem:[#allocation3] ss:$0 sm:$0xff] }
 0x148   : > { %v1198_v51 = vmul.f32 %v1186_v30, %v1174_v47  ;;  %v1175_v56 = vsel %vm1151_vm11, %v1139_v19, %v1163_v49 }
 0x149   : > { %v1117_v45 = vld [vmem:[#allocation2 + $0x40] sm:$0xff]  ;;  %v1176_v48 = vsel %vm1152_vm8, %v1140_v17, %v1164_v39  ;;  %v1199_v59 = vmul.f32 %v1187_v50, %v1175_v56 }
 0x14a   : > { %v1118_v32 = vld [vmem:[#allocation2 + $0x48] sm:$0xff]  ;;  %v1200_v52 = vmul.f32 %v1188_v31, %v1176_v48  ;;  %v1141_v58 = vadd.f32 %v1853_v6, %v1117_v45 }
 0x14b   : > { %v1142_v54 = vadd.f32 %v1130_v3, %v1118_v32  ;;  %v1119_v55 = vld [vmem:[#allocation2 + $0x50] sm:$0xf]  ;;  %v1487_v0 = vpack.c.bf16 %v1199_v59, %v1197_v57 }
 0x14c   : > { %v1120_v40 = vld [vmem:[#allocation2 + $0x58] sm:$0xf]  ;;  %v1485_v43 = vpack.c.bf16 %v1200_v52, %v1198_v51  ;;  %v1143_v63 = vadd.f32 %v1853_v6, %v1119_v55  ;;  %vm1153_vm14 = vcmp.ge.f32.partialorder %v1141_v58, 0.0  ;;  %v1165_v34 = vmul.f32 0.2, %v1141_v58 }
 0x14d   : > { %v1144_v38 = vadd.f32 %v1130_v3, %v1120_v40  ;;  %vm1154_vm12 = vcmp.ge.f32.partialorder %v1142_v54, 0.0  ;;  %v1166_v33 = vmul.f32 0.2, %v1142_v54 }
 0x14e   : > { %1486 = vmatprep.subr.bf16.mxu0 %v1485_v43  ;;  %vm1155_vm15 = vcmp.ge.f32.partialorder %v1143_v63, 0.0  ;;  %v1167_v8 = vmul.f32 0.2, %v1143_v63  ;;  %v1177_v6 = vsel %vm1153_vm14, %v1141_v58, %v1165_v34 }
 0x14f   : > { %vm1156_vm13 = vcmp.ge.f32.partialorder %v1144_v38, 0.0  ;;  %v1168_v61 = vmul.f32 0.2, %v1144_v38  ;;  %v1178_v1 = vsel %vm1154_vm12, %v1142_v54, %v1166_v33  ;;  %1488 = vmatpush1.bf16.msra.mxu0 %v1487_v0  ;;  %v1201_v11 = vmul.f32 %v1189_v2, %v1177_v6 }
 0x150   : > { %v1202_v7 = vmul.f32 %v1190_v60, %v1178_v1  ;;  %v1179_v10 = vsel %vm1155_vm15, %v1143_v63, %v1167_v8 }
 0x151   : > { %v1180_v3 = vsel %vm1156_vm13, %v1144_v38, %v1168_v61  ;;  %v1203_v12 = vmul.f32 %v1191_v4, %v1179_v10 }
 0x152   : > { %v1204_v9 = vmul.f32 %v1192_v62, %v1180_v3 }
 0x153   : > { %v1492_v13 = vpack.c.bf16 %v1203_v12, %v1201_v11 }
 0x154   : > { %v1489_v5 = vpack.c.bf16 %v1204_v9, %v1202_v7 }
 0x156   : > { %1491 = vmatprep.subr.msk.bf16.mxu0 %vm1490_vm1, %v1489_v5 }
 0x157   : > { %1494 = vmatpush1.bf16.msk.msra.mxu0 %vm1490_vm1, %v1492_v13 }
 0x15a   : > { %1476 = vmatmul.mubr.msk.f32.vlgmr.msra.gmra.mrb[0].mxu0 %vm1206_vm2, %v1205_v14 }
 0x22d   : > { %v1283_v15 = vpop.f32.mrb[0].mxu0 }
 0x22e   : > { %v1289_v16 = vsel %vm1288_vm3, %v1283_v15, 0.0  ;;  %v1285_v17 = vpop.f32.mrb[1].mxu0 }
 0x22f   : > { %v1290_v18 = vsel %vm1288_vm3, %v1285_v17, 0.0 }
 0x230   : > { %v1291_v19 = vadd.f32 %v1290_v18, %v1289_v16 }
 0x232   : > { %1292 = vadd.xlane.f32.xlu0 %v1291_v19 }
 0x2bf   : > { %v1293_v21 = vpop.xlane.xlu0 %1292 }
 0x2c0   : > { %v1301_v22 = vadd.f32 %v1477_v20, %v1293_v21 }
 0x2c2   : > { %1303 = vst.msk [vmem:[%s1916_s6] sm:$0x3] %vm1302_vm4, %v1301_v22 }
 0x2c3 PF: > { %s18_s23 = sadd.s32 1, %s1655_s23  }
 0x2c4   : > { %p15_p6 = scmp.ge.s32.totalorder %s18_s23, 6  }
 0x2c6   :  { %17 = sbr.rel (!%p15_p6) target bundleno = 3 (0x3), region = 84 }

</bundles_post_ra>
